<compile_context>
chip_gen: v7x
topology: tpu7x:2x2x1
jax: 0.10.0
libtpu: 0.0.40
codegen_flags: <defaults>
</compile_context>

<pallas_src>
import functools

import jax
import jax.numpy as jnp
from jax.experimental import pallas as pl
from jax.experimental.pallas import tpu as pltpu


# ----------------------------- Pallas kernel -------------------------------


def _fused_lstm_classifier_kernel(
    x_ref,                                    # (T, B, E)      embedded input
    wih0_ref, b0_ref,                         # (E, 8H), (1, 8H)   layer 0 [fwd|bwd]
    whh_f0_ref, whh_b0_ref,                   # (H, 4H) each
    wih1a_ref, wih1b_ref, b1_ref,             # (H, 8H), (H, 8H), (1, 8H)  layer 1
    whh_f1_ref, whh_b1_ref,                   # (H, 4H) each
    fc_wa_ref, fc_wb_ref, fc_b_ref,           # (H, O), (H, O), (1, O)
    out_ref,                                  # (B, O)
    gx0_ref, hf0_ref, hb0_ref, gx1_ref,       # VMEM scratch
    *, seq_len, batch, hidden_dim):
  T, B, H = seq_len, batch, hidden_dim
  G = 4 * H

  def cell(gates, c):
    # gates: (B, 4H), gate column order (i, f, o, g) after weight pre-packing.
    s = jax.nn.sigmoid(gates)                 # full-width activation (one vreg)
    g = jnp.tanh(gates[:, 3 * H:4 * H])
    i = s[:, 0:H]
    f = s[:, H:2 * H]
    o = s[:, 2 * H:3 * H]
    c_new = f * c + i * g
    h_new = o * jnp.tanh(c_new)
    return h_new, c_new

  # ---- Layer 0 input projection, both directions, off the critical path ----
  b0 = b0_ref[...]
  for t in range(T):
    gx0_ref[t] = jnp.dot(x_ref[t], wih0_ref[...],
                         preferred_element_type=jnp.float32) + b0

  # ---- Layer 0 recurrence: fwd + bwd interleaved, fully unrolled -----------
  whh_f0 = whh_f0_ref[...]
  whh_b0 = whh_b0_ref[...]
  hf = jnp.zeros((B, H), jnp.float32)
  cf = jnp.zeros((B, H), jnp.float32)
  hb = jnp.zeros((B, H), jnp.float32)
  cb = jnp.zeros((B, H), jnp.float32)
  for t in range(T):
    tr = T - 1 - t
    gf = gx0_ref[t][:, 0:G] + jnp.dot(hf, whh_f0,
                                      preferred_element_type=jnp.float32)
    gb = gx0_ref[tr][:, G:2 * G] + jnp.dot(hb, whh_b0,
                                           preferred_element_type=jnp.float32)
    hf, cf = cell(gf, cf)
    hb, cb = cell(gb, cb)
    hf0_ref[t] = hf            # stored in original time order
    hb0_ref[tr] = hb           # re-aligned to original time order

  # ---- Layer 1 input projection (no (T,B,2H) concat materialized) ----------
  b1 = b1_ref[...]
  w1a = wih1a_ref[...]
  w1b = wih1b_ref[...]
  for t in range(T):
    gx1_ref[t] = (jnp.dot(hf0_ref[t], w1a, preferred_element_type=jnp.float32)
                  + jnp.dot(hb0_ref[t], w1b, preferred_element_type=jnp.float32)
                  + b1)

  # ---- Layer 1 recurrence: only final hidden states are needed -------------
  whh_f1 = whh_f1_ref[...]
  whh_b1 = whh_b1_ref[...]
  hf1 = jnp.zeros((B, H), jnp.float32)
  cf1 = jnp.zeros((B, H), jnp.float32)
  hb1 = jnp.zeros((B, H), jnp.float32)
  cb1 = jnp.zeros((B, H), jnp.float32)
  for t in range(T):
    tr = T - 1 - t
    gf = gx1_ref[t][:, 0:G] + jnp.dot(hf1, whh_f1,
                                      preferred_element_type=jnp.float32)
    gb = gx1_ref[tr][:, G:2 * G] + jnp.dot(hb1, whh_b1,
                                           preferred_element_type=jnp.float32)
    hf1, cf1 = cell(gf, cf1)
    hb1, cb1 = cell(gb, cb1)

  # ---- Classifier epilogue: fc(concat(h[-2], h[-1])) without the concat ----
  # Dropout(0.3) is identity at inference.
  out_ref[...] = (jnp.dot(hf1, fc_wa_ref[...],
                          preferred_element_type=jnp.float32)
                  + jnp.dot(hb1, fc_wb_ref[...],
                            preferred_element_type=jnp.float32)
                  + fc_b_ref[...])


# ------------------------------ JAX wrapper ---------------------------------

_VMEM = pl.BlockSpec(memory_space=pltpu.MemorySpace.VMEM)


def lstm_classifier_forward(packed, token_ids):
  """Equivalent of LSTMClassifier.forward in eval mode. token_ids: (B, T) int32."""
  # Embedding lookup (frozen table) — glue, plain JAX gather.
  emb = jnp.take(packed["emb"], token_ids, axis=0)           # (B, T, E)
  x = jnp.transpose(emb, (1, 0, 2)).astype(jnp.float32)      # (T, B, E)
  T, B, _ = x.shape
  H = packed["whh_f0"].shape[0]
  O = packed["fc_b"].shape[-1]

  kernel = functools.partial(_fused_lstm_classifier_kernel,
                             seq_len=T, batch=B, hidden_dim=H)
  return pl.pallas_call(
      kernel,
      out_shape=jax.ShapeDtypeStruct((B, O), jnp.float32),
      in_specs=[_VMEM] * 13,
      out_specs=_VMEM,
      scratch_shapes=[
          pltpu.VMEM((T, B, 8 * H), jnp.float32),   # layer-0 gate pre-acts
          pltpu.VMEM((T, B, H), jnp.float32),       # layer-0 fwd hidden seq
          pltpu.VMEM((T, B, H), jnp.float32),       # layer-0 bwd hidden seq
          pltpu.VMEM((T, B, 8 * H), jnp.float32),   # layer-1 gate pre-acts
      ],
  )(x,
    packed["wih0"], packed["b0"], packed["whh_f0"], packed["whh_b0"],
    packed["wih1a"], packed["wih1b"], packed["b1"],
    packed["whh_f1"], packed["whh_b1"],
    packed["fc_wa"], packed["fc_wb"], packed["fc_b"])


# ------------------------- parameter pre-packing ----------------------------


def _permute_gate_rows(w):
  """Reorder PyTorch gate blocks (rows) from (i, f, g, o) to (i, f, o, g)."""
  H = w.shape[0] // 4
  return jnp.concatenate([w[0:H], w[H:2 * H], w[3 * H:4 * H], w[2 * H:3 * H]],
                         axis=0)


def pack_params(params, hidden_dim):
  """One-time conversion of PyTorch-layout params into the fused-kernel layout."""
  H = hidden_dim
  lstm = params["lstm"]

  def direction(layer, d):
    w_ih, w_hh, b_ih, b_hh = lstm[layer][d]
    w_ih_t = _permute_gate_rows(jnp.asarray(w_ih, jnp.float32)).T     # (D_in, 4H)
    w_hh_t = _permute_gate_rows(jnp.asarray(w_hh, jnp.float32)).T     # (H, 4H)
    b = _permute_gate_rows(
        (jnp.asarray(b_ih, jnp.float32)
         + jnp.asarray(b_hh, jnp.float32)).reshape(4 * H, 1)).reshape(1, 4 * H)
    return w_ih_t, w_hh_t, b

  wih_f0, whh_f0, b_f0 = direction(0, "fwd")
  wih_b0, whh_b0, b_b0 = direction(0, "bwd")
  wih_f1, whh_f1, b_f1 = direction(1, "fwd")
  wih_b1, whh_b1, b_b1 = direction(1, "bwd")

  fc_wt = jnp.asarray(params["fc_w"], jnp.float32).T                  # (2H, O)

  # TODO(synk): optionally store the packed weights in bf16 (f32 accumulation)
  # if hidden_dim is scaled up; negligible win at H=32 so kept f32 here.
  return {
      "emb": jnp.asarray(params["emb"], jnp.float32),
      # layer 0: both directions concatenated along the gate axis (8H lanes).
      "wih0": jnp.concatenate([wih_f0, wih_b0], axis=1),              # (E, 8H)
      "b0": jnp.concatenate([b_f0, b_b0], axis=1),                    # (1, 8H)
      "whh_f0": whh_f0, "whh_b0": whh_b0,                             # (H, 4H)
      # layer 1: W_ih rows split into fwd-input / bwd-input halves so the
      # (T, B, 2H) direction concat is never materialized.
      "wih1a": jnp.concatenate([wih_f1[:H], wih_b1[:H]], axis=1),     # (H, 8H)
      "wih1b": jnp.concatenate([wih_f1[H:], wih_b1[H:]], axis=1),     # (H, 8H)
      "b1": jnp.concatenate([b_f1, b_b1], axis=1),                    # (1, 8H)
      "whh_f1": whh_f1, "whh_b1": whh_b1,                             # (H, 4H)
      # classifier: split along the concat(h_fwd, h_bwd) feature axis.
      "fc_wa": fc_wt[:H],                                             # (H, O)
      "fc_wb": fc_wt[H:],                                             # (H, O)
      "fc_b": jnp.asarray(params["fc_b"], jnp.float32).reshape(1, -1),
  }


# --------------------------- parameter creation ------------------------------


def init_params(key, vocab_size, embed_dim, hidden_dim, output_dim):
  keys = jax.random.split(key, 32)
  ki = iter(range(32))

  def unif(k, shape, bound):
    return jax.random.uniform(k, shape, jnp.float32, -bound, bound)

  # Frozen embedding table (emb_matrix); PAD row set to zero by convention.
  emb = jax.random.normal(keys[next(ki)], (vocab_size, embed_dim),
                          jnp.float32) * 0.1
  emb = emb.at[0].set(0.0)

  k_lstm = 1.0 / jnp.sqrt(hidden_dim)
  lstm = []
  for layer in range(2):
    d_in = embed_dim if layer == 0 else 2 * hidden_dim
    layer_p = {}
    for direction in ("fwd", "bwd"):
      w_ih = unif(keys[next(ki)], (4 * hidden_dim, d_in), k_lstm)
      w_hh = unif(keys[next(ki)], (4 * hidden_dim, hidden_dim), k_lstm)
      b_ih = unif(keys[next(ki)], (4 * hidden_dim,), k_lstm)
      b_hh = unif(keys[next(ki)], (4 * hidden_dim,), k_lstm)
      layer_p[direction] = (w_ih, w_hh, b_ih, b_hh)
    lstm.append(layer_p)

  k_fc = 1.0 / jnp.sqrt(2 * hidden_dim)
  fc_w = unif(keys[next(ki)], (output_dim, 2 * hidden_dim), k_fc)
  fc_b = unif(keys[next(ki)], (output_dim,), k_fc)

  return {"emb": emb, "lstm": lstm, "fc_w": fc_w, "fc_b": fc_b}


# ----------------------------------- main ------------------------------------

if __name__ == "__main__":
  VOCAB, EMBED, HIDDEN, OUT = 50, 32, 32, 2
  BATCH, SEQ = 2, 8

  key = jax.random.PRNGKey(0)
  k_param, k_tok = jax.random.split(key)
  params = init_params(k_param, VOCAB, EMBED, HIDDEN, OUT)
  packed = jax.tree_util.tree_map(jax.block_until_ready,
                                  pack_params(params, HIDDEN))
  token_ids = jax.random.randint(k_tok, (BATCH, SEQ), 0, VOCAB, jnp.int32)

  logits = jax.jit(lstm_classifier_forward)(packed, token_ids)
  logits = jax.block_until_ready(logits)

  assert logits.shape == (BATCH, OUT) and logits.dtype == jnp.float32
  print("KERNEL_OK")
</pallas_src>

<mosaic_0001>
module attributes {stable_mosaic.version = 11 : i64} {
  func.func @_fused_lstm_classifier_kernel(%arg0: memref<8x2x32xf32, #tpu.memory_space<vmem>>, %arg1: memref<32x256xf32, #tpu.memory_space<vmem>>, %arg2: memref<1x256xf32, #tpu.memory_space<vmem>>, %arg3: memref<32x128xf32, #tpu.memory_space<vmem>>, %arg4: memref<32x128xf32, #tpu.memory_space<vmem>>, %arg5: memref<32x256xf32, #tpu.memory_space<vmem>>, %arg6: memref<32x256xf32, #tpu.memory_space<vmem>>, %arg7: memref<1x256xf32, #tpu.memory_space<vmem>>, %arg8: memref<32x128xf32, #tpu.memory_space<vmem>>, %arg9: memref<32x128xf32, #tpu.memory_space<vmem>>, %arg10: memref<32x2xf32, #tpu.memory_space<vmem>>, %arg11: memref<32x2xf32, #tpu.memory_space<vmem>>, %arg12: memref<1x2xf32, #tpu.memory_space<vmem>>, %arg13: memref<2x2xf32, #tpu.memory_space<vmem>>, %arg14: memref<8x2x256xf32, #tpu.memory_space<vmem>>, %arg15: memref<8x2x32xf32, #tpu.memory_space<vmem>>, %arg16: memref<8x2x32xf32, #tpu.memory_space<vmem>>, %arg17: memref<8x2x256xf32, #tpu.memory_space<vmem>>) attributes {dimension_semantics = [], scalar_prefetch = 0 : i64, scratch_operands = 4 : i64, tpu.core_type = #tpu.core_type<tc>} {
    %c0 = arith.constant 0 : index
    %c0_0 = arith.constant 0 : index
    %0 = vector.load %arg2[%c0, %c0_0] : memref<1x256xf32, #tpu.memory_space<vmem>>, vector<1x256xf32>
    %c0_1 = arith.constant 0 : index
    %c0_2 = arith.constant 0 : index
    %c0_3 = arith.constant 0 : index
    %1 = vector.load %arg0[%c0_1, %c0_2, %c0_3] : memref<8x2x32xf32, #tpu.memory_space<vmem>>, vector<1x2x32xf32>
    %2 = vector.shape_cast %1 : vector<1x2x32xf32> to vector<2x32xf32>
    %c0_4 = arith.constant 0 : index
    %c0_5 = arith.constant 0 : index
    %3 = vector.load %arg1[%c0_4, %c0_5] : memref<32x256xf32, #tpu.memory_space<vmem>>, vector<32x256xf32>
    %cst = arith.constant dense<0.000000e+00> : vector<2x256xf32>
    %4 = tpu.matmul %2, %3, %cst {dimension_numbers = #tpu.dot_dimension_numbers<[1], [0], [0], [1], [0, 0, 1, 1], [], []>} : vector<2x32xf32>, vector<32x256xf32>, vector<2x256xf32> -> vector<2x256xf32>
    %5 = vector.broadcast %0 : vector<1x256xf32> to vector<2x256xf32>
    %6 = arith.addf %4, %5 : vector<2x256xf32>
    %c0_6 = arith.constant 0 : index
    %c0_7 = arith.constant 0 : index
    %c0_8 = arith.constant 0 : index
    %7 = vector.load %arg14[%c0_6, %c0_7, %c0_8] : memref<8x2x256xf32, #tpu.memory_space<vmem>>, vector<1x2x256xf32>
    %8 = vector.shape_cast %7 : vector<1x2x256xf32> to vector<2x256xf32>
    %9 = vector.shape_cast %6 : vector<2x256xf32> to vector<1x2x256xf32>
    tpu.vector_store %arg14[%c0_6, %c0_7, %c0_8], %9 {strides = array<i32>} : memref<8x2x256xf32, #tpu.memory_space<vmem>>, vector<1x2x256xf32>,
    %c1 = arith.constant 1 : index
    %c0_9 = arith.constant 0 : index
    %c0_10 = arith.constant 0 : index
    %10 = vector.load %arg0[%c1, %c0_9, %c0_10] : memref<8x2x32xf32, #tpu.memory_space<vmem>>, vector<1x2x32xf32>
    %11 = vector.shape_cast %10 : vector<1x2x32xf32> to vector<2x32xf32>
    %c0_11 = arith.constant 0 : index
    %c0_12 = arith.constant 0 : index
    %12 = vector.load %arg1[%c0_11, %c0_12] : memref<32x256xf32, #tpu.memory_space<vmem>>, vector<32x256xf32>
    %cst_13 = arith.constant dense<0.000000e+00> : vector<2x256xf32>
    %13 = tpu.matmul %11, %12, %cst_13 {dimension_numbers = #tpu.dot_dimension_numbers<[1], [0], [0], [1], [0, 0, 1, 1], [], []>} : vector<2x32xf32>, vector<32x256xf32>, vector<2x256xf32> -> vector<2x256xf32>
    %14 = vector.broadcast %0 : vector<1x256xf32> to vector<2x256xf32>
    %15 = arith.addf %13, %14 : vector<2x256xf32>
    %c1_14 = arith.constant 1 : index
    %c0_15 = arith.constant 0 : index
    %c0_16 = arith.constant 0 : index
    %16 = vector.load %arg14[%c1_14, %c0_15, %c0_16] : memref<8x2x256xf32, #tpu.memory_space<vmem>>, vector<1x2x256xf32>
    %17 = vector.shape_cast %16 : vector<1x2x256xf32> to vector<2x256xf32>
    %18 = vector.shape_cast %15 : vector<2x256xf32> to vector<1x2x256xf32>
    tpu.vector_store %arg14[%c1_14, %c0_15, %c0_16], %18 {strides = array<i32>} : memref<8x2x256xf32, #tpu.memory_space<vmem>>, vector<1x2x256xf32>,
    %c2 = arith.constant 2 : index
    %c0_17 = arith.constant 0 : index
    %c0_18 = arith.constant 0 : index
    %19 = vector.load %arg0[%c2, %c0_17, %c0_18] : memref<8x2x32xf32, #tpu.memory_space<vmem>>, vector<1x2x32xf32>
    %20 = vector.shape_cast %19 : vector<1x2x32xf32> to vector<2x32xf32>
    %c0_19 = arith.constant 0 : index
    %c0_20 = arith.constant 0 : index
    %21 = vector.load %arg1[%c0_19, %c0_20] : memref<32x256xf32, #tpu.memory_space<vmem>>, vector<32x256xf32>
    %cst_21 = arith.constant dense<0.000000e+00> : vector<2x256xf32>
    %22 = tpu.matmul %20, %21, %cst_21 {dimension_numbers = #tpu.dot_dimension_numbers<[1], [0], [0], [1], [0, 0, 1, 1], [], []>} : vector<2x32xf32>, vector<32x256xf32>, vector<2x256xf32> -> vector<2x256xf32>
    %23 = vector.broadcast %0 : vector<1x256xf32> to vector<2x256xf32>
    %24 = arith.addf %22, %23 : vector<2x256xf32>
    %c2_22 = arith.constant 2 : index
    %c0_23 = arith.constant 0 : index
    %c0_24 = arith.constant 0 : index
    %25 = vector.load %arg14[%c2_22, %c0_23, %c0_24] : memref<8x2x256xf32, #tpu.memory_space<vmem>>, vector<1x2x256xf32>
    %26 = vector.shape_cast %25 : vector<1x2x256xf32> to vector<2x256xf32>
    %27 = vector.shape_cast %24 : vector<2x256xf32> to vector<1x2x256xf32>
    tpu.vector_store %arg14[%c2_22, %c0_23, %c0_24], %27 {strides = array<i32>} : memref<8x2x256xf32, #tpu.memory_space<vmem>>, vector<1x2x256xf32>,
    %c3 = arith.constant 3 : index
    %c0_25 = arith.constant 0 : index
    %c0_26 = arith.constant 0 : index
    %28 = vector.load %arg0[%c3, %c0_25, %c0_26] : memref<8x2x32xf32, #tpu.memory_space<vmem>>, vector<1x2x32xf32>
    %29 = vector.shape_cast %28 : vector<1x2x32xf32> to vector<2x32xf32>
    %c0_27 = arith.constant 0 : index
    %c0_28 = arith.constant 0 : index
    %30 = vector.load %arg1[%c0_27, %c0_28] : memref<32x256xf32, #tpu.memory_space<vmem>>, vector<32x256xf32>
    %cst_29 = arith.constant dense<0.000000e+00> : vector<2x256xf32>
    %31 = tpu.matmul %29, %30, %cst_29 {dimension_numbers = #tpu.dot_dimension_numbers<[1], [0], [0], [1], [0, 0, 1, 1], [], []>} : vector<2x32xf32>, vector<32x256xf32>, vector<2x256xf32> -> vector<2x256xf32>
    %32 = vector.broadcast %0 : vector<1x256xf32> to vector<2x256xf32>
    %33 = arith.addf %31, %32 : vector<2x256xf32>
    %c3_30 = arith.constant 3 : index
    %c0_31 = arith.constant 0 : index
    %c0_32 = arith.constant 0 : index
    %34 = vector.load %arg14[%c3_30, %c0_31, %c0_32] : memref<8x2x256xf32, #tpu.memory_space<vmem>>, vector<1x2x256xf32>
    %35 = vector.shape_cast %34 : vector<1x2x256xf32> to vector<2x256xf32>
    %36 = vector.shape_cast %33 : vector<2x256xf32> to vector<1x2x256xf32>
    tpu.vector_store %arg14[%c3_30, %c0_31, %c0_32], %36 {strides = array<i32>} : memref<8x2x256xf32, #tpu.memory_space<vmem>>, vector<1x2x256xf32>,
    %c4 = arith.constant 4 : index
    %c0_33 = arith.constant 0 : index
    %c0_34 = arith.constant 0 : index
    %37 = vector.load %arg0[%c4, %c0_33, %c0_34] : memref<8x2x32xf32, #tpu.memory_space<vmem>>, vector<1x2x32xf32>
    %38 = vector.shape_cast %37 : vector<1x2x32xf32> to vector<2x32xf32>
    %c0_35 = arith.constant 0 : index
    %c0_36 = arith.constant 0 : index
    %39 = vector.load %arg1[%c0_35, %c0_36] : memref<32x256xf32, #tpu.memory_space<vmem>>, vector<32x256xf32>
    %cst_37 = arith.constant dense<0.000000e+00> : vector<2x256xf32>
    %40 = tpu.matmul %38, %39, %cst_37 {dimension_numbers = #tpu.dot_dimension_numbers<[1], [0], [0], [1], [0, 0, 1, 1], [], []>} : vector<2x32xf32>, vector<32x256xf32>, vector<2x256xf32> -> vector<2x256xf32>
    %41 = vector.broadcast %0 : vector<1x256xf32> to vector<2x256xf32>
    %42 = arith.addf %40, %41 : vector<2x256xf32>
    %c4_38 = arith.constant 4 : index
    %c0_39 = arith.constant 0 : index
    %c0_40 = arith.constant 0 : index
    %43 = vector.load %arg14[%c4_38, %c0_39, %c0_40] : memref<8x2x256xf32, #tpu.memory_space<vmem>>, vector<1x2x256xf32>
    %44 = vector.shape_cast %43 : vector<1x2x256xf32> to vector<2x256xf32>
    %45 = vector.shape_cast %42 : vector<2x256xf32> to vector<1x2x256xf32>
    tpu.vector_store %arg14[%c4_38, %c0_39, %c0_40], %45 {strides = array<i32>} : memref<8x2x256xf32, #tpu.memory_space<vmem>>, vector<1x2x256xf32>,
    %c5 = arith.constant 5 : index
    %c0_41 = arith.constant 0 : index
    %c0_42 = arith.constant 0 : index
    %46 = vector.load %arg0[%c5, %c0_41, %c0_42] : memref<8x2x32xf32, #tpu.memory_space<vmem>>, vector<1x2x32xf32>
    %47 = vector.shape_cast %46 : vector<1x2x32xf32> to vector<2x32xf32>
    %c0_43 = arith.constant 0 : index
    %c0_44 = arith.constant 0 : index
    %48 = vector.load %arg1[%c0_43, %c0_44] : memref<32x256xf32, #tpu.memory_space<vmem>>, vector<32x256xf32>
    %cst_45 = arith.constant dense<0.000000e+00> : vector<2x256xf32>
    %49 = tpu.matmul %47, %48, %cst_45 {dimension_numbers = #tpu.dot_dimension_numbers<[1], [0], [0], [1], [0, 0, 1, 1], [], []>} : vector<2x32xf32>, vector<32x256xf32>, vector<2x256xf32> -> vector<2x256xf32>
    %50 = vector.broadcast %0 : vector<1x256xf32> to vector<2x256xf32>
    %51 = arith.addf %49, %50 : vector<2x256xf32>
    %c5_46 = arith.constant 5 : index
    %c0_47 = arith.constant 0 : index
    %c0_48 = arith.constant 0 : index
    %52 = vector.load %arg14[%c5_46, %c0_47, %c0_48] : memref<8x2x256xf32, #tpu.memory_space<vmem>>, vector<1x2x256xf32>
    %53 = vector.shape_cast %52 : vector<1x2x256xf32> to vector<2x256xf32>
    %54 = vector.shape_cast %51 : vector<2x256xf32> to vector<1x2x256xf32>
    tpu.vector_store %arg14[%c5_46, %c0_47, %c0_48], %54 {strides = array<i32>} : memref<8x2x256xf32, #tpu.memory_space<vmem>>, vector<1x2x256xf32>,
    %c6 = arith.constant 6 : index
    %c0_49 = arith.constant 0 : index
    %c0_50 = arith.constant 0 : index
    %55 = vector.load %arg0[%c6, %c0_49, %c0_50] : memref<8x2x32xf32, #tpu.memory_space<vmem>>, vector<1x2x32xf32>
    %56 = vector.shape_cast %55 : vector<1x2x32xf32> to vector<2x32xf32>
    %c0_51 = arith.constant 0 : index
    %c0_52 = arith.constant 0 : index
    %57 = vector.load %arg1[%c0_51, %c0_52] : memref<32x256xf32, #tpu.memory_space<vmem>>, vector<32x256xf32>
    %cst_53 = arith.constant dense<0.000000e+00> : vector<2x256xf32>
    %58 = tpu.matmul %56, %57, %cst_53 {dimension_numbers = #tpu.dot_dimension_numbers<[1], [0], [0], [1], [0, 0, 1, 1], [], []>} : vector<2x32xf32>, vector<32x256xf32>, vector<2x256xf32> -> vector<2x256xf32>
    %59 = vector.broadcast %0 : vector<1x256xf32> to vector<2x256xf32>
    %60 = arith.addf %58, %59 : vector<2x256xf32>
    %c6_54 = arith.constant 6 : index
    %c0_55 = arith.constant 0 : index
    %c0_56 = arith.constant 0 : index
    %61 = vector.load %arg14[%c6_54, %c0_55, %c0_56] : memref<8x2x256xf32, #tpu.memory_space<vmem>>, vector<1x2x256xf32>
    %62 = vector.shape_cast %61 : vector<1x2x256xf32> to vector<2x256xf32>
    %63 = vector.shape_cast %60 : vector<2x256xf32> to vector<1x2x256xf32>
    tpu.vector_store %arg14[%c6_54, %c0_55, %c0_56], %63 {strides = array<i32>} : memref<8x2x256xf32, #tpu.memory_space<vmem>>, vector<1x2x256xf32>,
    %c7 = arith.constant 7 : index
    %c0_57 = arith.constant 0 : index
    %c0_58 = arith.constant 0 : index
    %64 = vector.load %arg0[%c7, %c0_57, %c0_58] : memref<8x2x32xf32, #tpu.memory_space<vmem>>, vector<1x2x32xf32>
    %65 = vector.shape_cast %64 : vector<1x2x32xf32> to vector<2x32xf32>
    %c0_59 = arith.constant 0 : index
    %c0_60 = arith.constant 0 : index
    %66 = vector.load %arg1[%c0_59, %c0_60] : memref<32x256xf32, #tpu.memory_space<vmem>>, vector<32x256xf32>
    %cst_61 = arith.constant dense<0.000000e+00> : vector<2x256xf32>
    %67 = tpu.matmul %65, %66, %cst_61 {dimension_numbers = #tpu.dot_dimension_numbers<[1], [0], [0], [1], [0, 0, 1, 1], [], []>} : vector<2x32xf32>, vector<32x256xf32>, vector<2x256xf32> -> vector<2x256xf32>
    %68 = vector.broadcast %0 : vector<1x256xf32> to vector<2x256xf32>
    %69 = arith.addf %67, %68 : vector<2x256xf32>
    %c7_62 = arith.constant 7 : index
    %c0_63 = arith.constant 0 : index
    %c0_64 = arith.constant 0 : index
    %70 = vector.load %arg14[%c7_62, %c0_63, %c0_64] : memref<8x2x256xf32, #tpu.memory_space<vmem>>, vector<1x2x256xf32>
    %71 = vector.shape_cast %70 : vector<1x2x256xf32> to vector<2x256xf32>
    %72 = vector.shape_cast %69 : vector<2x256xf32> to vector<1x2x256xf32>
    tpu.vector_store %arg14[%c7_62, %c0_63, %c0_64], %72 {strides = array<i32>} : memref<8x2x256xf32, #tpu.memory_space<vmem>>, vector<1x2x256xf32>,
    %c0_65 = arith.constant 0 : index
    %c0_66 = arith.constant 0 : index
    %73 = vector.load %arg3[%c0_65, %c0_66] : memref<32x128xf32, #tpu.memory_space<vmem>>, vector<32x128xf32>
    %c0_67 = arith.constant 0 : index
    %c0_68 = arith.constant 0 : index
    %74 = vector.load %arg4[%c0_67, %c0_68] : memref<32x128xf32, #tpu.memory_space<vmem>>, vector<32x128xf32>
    %cst_69 = arith.constant 0.000000e+00 : f32
    %75 = vector.broadcast %cst_69 : f32 to vector<2x32xf32>
    %cst_70 = arith.constant 0.000000e+00 : f32
    %76 = vector.broadcast %cst_70 : f32 to vector<2x32xf32>
    %cst_71 = arith.constant 0.000000e+00 : f32
    %77 = vector.broadcast %cst_71 : f32 to vector<2x32xf32>
    %cst_72 = arith.constant 0.000000e+00 : f32
    %78 = vector.broadcast %cst_72 : f32 to vector<2x32xf32>
    %c0_73 = arith.constant 0 : index
    %c0_74 = arith.constant 0 : index
    %c0_75 = arith.constant 0 : index
    %79 = vector.load %arg14[%c0_73, %c0_74, %c0_75] : memref<8x2x256xf32, #tpu.memory_space<vmem>>, vector<1x2x256xf32>
    %80 = vector.shape_cast %79 : vector<1x2x256xf32> to vector<2x256xf32>
    %81 = vector.extract_strided_slice %80 {offsets = [0, 0], sizes = [2, 128], strides = [1, 1]} : vector<2x256xf32> to vector<2x128xf32>
    %cst_76 = arith.constant dense<0.000000e+00> : vector<2x128xf32>
    %82 = tpu.matmul %75, %73, %cst_76 {dimension_numbers = #tpu.dot_dimension_numbers<[1], [0], [0], [1], [0, 0, 1, 1], [], []>} : vector<2x32xf32>, vector<32x128xf32>, vector<2x128xf32> -> vector<2x128xf32>
    %83 = arith.addf %81, %82 : vector<2x128xf32>
    %c7_77 = arith.constant 7 : index
    %c0_78 = arith.constant 0 : index
    %c0_79 = arith.constant 0 : index
    %84 = vector.load %arg14[%c7_77, %c0_78, %c0_79] : memref<8x2x256xf32, #tpu.memory_space<vmem>>, vector<1x2x256xf32>
    %85 = vector.shape_cast %84 : vector<1x2x256xf32> to vector<2x256xf32>
    %86 = vector.extract_strided_slice %85 {offsets = [0, 128], sizes = [2, 128], strides = [1, 1]} : vector<2x256xf32> to vector<2x128xf32>
    %cst_80 = arith.constant dense<0.000000e+00> : vector<2x128xf32>
    %87 = tpu.matmul %77, %74, %cst_80 {dimension_numbers = #tpu.dot_dimension_numbers<[1], [0], [0], [1], [0, 0, 1, 1], [], []>} : vector<2x32xf32>, vector<32x128xf32>, vector<2x128xf32> -> vector<2x128xf32>
    %88 = arith.addf %86, %87 : vector<2x128xf32>
    %89 = arith.negf %83 : vector<2x128xf32>
    %90 = math.exp %89 : vector<2x128xf32>
    %cst_81 = arith.constant 1.000000e+00 : f32
    %91 = vector.broadcast %cst_81 : f32 to vector<2x128xf32>
    %92 = arith.addf %91, %90 : vector<2x128xf32>
    %93 = arith.divf %91, %92 : vector<2x128xf32>
    %94 = vector.extract_strided_slice %83 {offsets = [0, 96], sizes = [2, 32], strides = [1, 1]} : vector<2x128xf32> to vector<2x32xf32>
    %95 = math.tanh %94 : vector<2x32xf32>
    %96 = vector.extract_strided_slice %93 {offsets = [0, 0], sizes = [2, 32], strides = [1, 1]} : vector<2x128xf32> to vector<2x32xf32>
    %97 = vector.extract_strided_slice %93 {offsets = [0, 32], sizes = [2, 32], strides = [1, 1]} : vector<2x128xf32> to vector<2x32xf32>
    %98 = vector.extract_strided_slice %93 {offsets = [0, 64], sizes = [2, 32], strides = [1, 1]} : vector<2x128xf32> to vector<2x32xf32>
    %99 = arith.mulf %97, %76 : vector<2x32xf32>
    %100 = arith.mulf %96, %95 : vector<2x32xf32>
    %101 = arith.addf %99, %100 : vector<2x32xf32>
    %102 = math.tanh %101 : vector<2x32xf32>
    %103 = arith.mulf %98, %102 : vector<2x32xf32>
    %104 = arith.negf %88 : vector<2x128xf32>
    %105 = math.exp %104 : vector<2x128xf32>
    %cst_82 = arith.constant 1.000000e+00 : f32
    %106 = vector.broadcast %cst_82 : f32 to vector<2x128xf32>
    %107 = arith.addf %106, %105 : vector<2x128xf32>
    %108 = arith.divf %106, %107 : vector<2x128xf32>
    %109 = vector.extract_strided_slice %88 {offsets = [0, 96], sizes = [2, 32], strides = [1, 1]} : vector<2x128xf32> to vector<2x32xf32>
    %110 = math.tanh %109 : vector<2x32xf32>
    %111 = vector.extract_strided_slice %108 {offsets = [0, 0], sizes = [2, 32], strides = [1, 1]} : vector<2x128xf32> to vector<2x32xf32>
    %112 = vector.extract_strided_slice %108 {offsets = [0, 32], sizes = [2, 32], strides = [1, 1]} : vector<2x128xf32> to vector<2x32xf32>
    %113 = vector.extract_strided_slice %108 {offsets = [0, 64], sizes = [2, 32], strides = [1, 1]} : vector<2x128xf32> to vector<2x32xf32>
    %114 = arith.mulf %112, %78 : vector<2x32xf32>
    %115 = arith.mulf %111, %110 : vector<2x32xf32>
    %116 = arith.addf %114, %115 : vector<2x32xf32>
    %117 = math.tanh %116 : vector<2x32xf32>
    %118 = arith.mulf %113, %117 : vector<2x32xf32>
    %c0_83 = arith.constant 0 : index
    %c0_84 = arith.constant 0 : index
    %c0_85 = arith.constant 0 : index
    %119 = vector.load %arg15[%c0_83, %c0_84, %c0_85] : memref<8x2x32xf32, #tpu.memory_space<vmem>>, vector<1x2x32xf32>
    %120 = vector.shape_cast %119 : vector<1x2x32xf32> to vector<2x32xf32>
    %121 = vector.shape_cast %103 : vector<2x32xf32> to vector<1x2x32xf32>
    tpu.vector_store %arg15[%c0_83, %c0_84, %c0_85], %121 {strides = array<i32>} : memref<8x2x32xf32, #tpu.memory_space<vmem>>, vector<1x2x32xf32>,
    %c7_86 = arith.constant 7 : index
    %c0_87 = arith.constant 0 : index
    %c0_88 = arith.constant 0 : index
    %122 = vector.load %arg16[%c7_86, %c0_87, %c0_88] : memref<8x2x32xf32, #tpu.memory_space<vmem>>, vector<1x2x32xf32>
    %123 = vector.shape_cast %122 : vector<1x2x32xf32> to vector<2x32xf32>
    %124 = vector.shape_cast %118 : vector<2x32xf32> to vector<1x2x32xf32>
    tpu.vector_store %arg16[%c7_86, %c0_87, %c0_88], %124 {strides = array<i32>} : memref<8x2x32xf32, #tpu.memory_space<vmem>>, vector<1x2x32xf32>,
    %c1_89 = arith.constant 1 : index
    %c0_90 = arith.constant 0 : index
    %c0_91 = arith.constant 0 : index
    %125 = vector.load %arg14[%c1_89, %c0_90, %c0_91] : memref<8x2x256xf32, #tpu.memory_space<vmem>>, vector<1x2x256xf32>
    %126 = vector.shape_cast %125 : vector<1x2x256xf32> to vector<2x256xf32>
    %127 = vector.extract_strided_slice %126 {offsets = [0, 0], sizes = [2, 128], strides = [1, 1]} : vector<2x256xf32> to vector<2x128xf32>
    %cst_92 = arith.constant dense<0.000000e+00> : vector<2x128xf32>
    %128 = tpu.matmul %103, %73, %cst_92 {dimension_numbers = #tpu.dot_dimension_numbers<[1], [0], [0], [1], [0, 0, 1, 1], [], []>} : vector<2x32xf32>, vector<32x128xf32>, vector<2x128xf32> -> vector<2x128xf32>
    %129 = arith.addf %127, %128 : vector<2x128xf32>
    %c6_93 = arith.constant 6 : index
    %c0_94 = arith.constant 0 : index
    %c0_95 = arith.constant 0 : index
    %130 = vector.load %arg14[%c6_93, %c0_94, %c0_95] : memref<8x2x256xf32, #tpu.memory_space<vmem>>, vector<1x2x256xf32>
    %131 = vector.shape_cast %130 : vector<1x2x256xf32> to vector<2x256xf32>
    %132 = vector.extract_strided_slice %131 {offsets = [0, 128], sizes = [2, 128], strides = [1, 1]} : vector<2x256xf32> to vector<2x128xf32>
    %cst_96 = arith.constant dense<0.000000e+00> : vector<2x128xf32>
    %133 = tpu.matmul %118, %74, %cst_96 {dimension_numbers = #tpu.dot_dimension_numbers<[1], [0], [0], [1], [0, 0, 1, 1], [], []>} : vector<2x32xf32>, vector<32x128xf32>, vector<2x128xf32> -> vector<2x128xf32>
    %134 = arith.addf %132, %133 : vector<2x128xf32>
    %135 = arith.negf %129 : vector<2x128xf32>
    %136 = math.exp %135 : vector<2x128xf32>
    %cst_97 = arith.constant 1.000000e+00 : f32
    %137 = vector.broadcast %cst_97 : f32 to vector<2x128xf32>
    %138 = arith.addf %137, %136 : vector<2x128xf32>
    %139 = arith.divf %137, %138 : vector<2x128xf32>
    %140 = vector.extract_strided_slice %129 {offsets = [0, 96], sizes = [2, 32], strides = [1, 1]} : vector<2x128xf32> to vector<2x32xf32>
    %141 = math.tanh %140 : vector<2x32xf32>
    %142 = vector.extract_strided_slice %139 {offsets = [0, 0], sizes = [2, 32], strides = [1, 1]} : vector<2x128xf32> to vector<2x32xf32>
    %143 = vector.extract_strided_slice %139 {offsets = [0, 32], sizes = [2, 32], strides = [1, 1]} : vector<2x128xf32> to vector<2x32xf32>
    %144 = vector.extract_strided_slice %139 {offsets = [0, 64], sizes = [2, 32], strides = [1, 1]} : vector<2x128xf32> to vector<2x32xf32>
    %145 = arith.mulf %143, %101 : vector<2x32xf32>
    %146 = arith.mulf %142, %141 : vector<2x32xf32>
    %147 = arith.addf %145, %146 : vector<2x32xf32>
    %148 = math.tanh %147 : vector<2x32xf32>
    %149 = arith.mulf %144, %148 : vector<2x32xf32>
    %150 = arith.negf %134 : vector<2x128xf32>
    %151 = math.exp %150 : vector<2x128xf32>
    %cst_98 = arith.constant 1.000000e+00 : f32
    %152 = vector.broadcast %cst_98 : f32 to vector<2x128xf32>
    %153 = arith.addf %152, %151 : vector<2x128xf32>
    %154 = arith.divf %152, %153 : vector<2x128xf32>
    %155 = vector.extract_strided_slice %134 {offsets = [0, 96], sizes = [2, 32], strides = [1, 1]} : vector<2x128xf32> to vector<2x32xf32>
    %156 = math.tanh %155 : vector<2x32xf32>
    %157 = vector.extract_strided_slice %154 {offsets = [0, 0], sizes = [2, 32], strides = [1, 1]} : vector<2x128xf32> to vector<2x32xf32>
    %158 = vector.extract_strided_slice %154 {offsets = [0, 32], sizes = [2, 32], strides = [1, 1]} : vector<2x128xf32> to vector<2x32xf32>
    %159 = vector.extract_strided_slice %154 {offsets = [0, 64], sizes = [2, 32], strides = [1, 1]} : vector<2x128xf32> to vector<2x32xf32>
    %160 = arith.mulf %158, %116 : vector<2x32xf32>
    %161 = arith.mulf %157, %156 : vector<2x32xf32>
    %162 = arith.addf %160, %161 : vector<2x32xf32>
    %163 = math.tanh %162 : vector<2x32xf32>
    %164 = arith.mulf %159, %163 : vector<2x32xf32>
    %c1_99 = arith.constant 1 : index
    %c0_100 = arith.constant 0 : index
    %c0_101 = arith.constant 0 : index
    %165 = vector.load %arg15[%c1_99, %c0_100, %c0_101] : memref<8x2x32xf32, #tpu.memory_space<vmem>>, vector<1x2x32xf32>
    %166 = vector.shape_cast %165 : vector<1x2x32xf32> to vector<2x32xf32>
    %167 = vector.shape_cast %149 : vector<2x32xf32> to vector<1x2x32xf32>
    tpu.vector_store %arg15[%c1_99, %c0_100, %c0_101], %167 {strides = array<i32>} : memref<8x2x32xf32, #tpu.memory_space<vmem>>, vector<1x2x32xf32>,
    %c6_102 = arith.constant 6 : index
    %c0_103 = arith.constant 0 : index
    %c0_104 = arith.constant 0 : index
    %168 = vector.load %arg16[%c6_102, %c0_103, %c0_104] : memref<8x2x32xf32, #tpu.memory_space<vmem>>, vector<1x2x32xf32>
    %169 = vector.shape_cast %168 : vector<1x2x32xf32> to vector<2x32xf32>
    %170 = vector.shape_cast %164 : vector<2x32xf32> to vector<1x2x32xf32>
    tpu.vector_store %arg16[%c6_102, %c0_103, %c0_104], %170 {strides = array<i32>} : memref<8x2x32xf32, #tpu.memory_space<vmem>>, vector<1x2x32xf32>,
    %c2_105 = arith.constant 2 : index
    %c0_106 = arith.constant 0 : index
    %c0_107 = arith.constant 0 : index
    %171 = vector.load %arg14[%c2_105, %c0_106, %c0_107] : memref<8x2x256xf32, #tpu.memory_space<vmem>>, vector<1x2x256xf32>
    %172 = vector.shape_cast %171 : vector<1x2x256xf32> to vector<2x256xf32>
    %173 = vector.extract_strided_slice %172 {offsets = [0, 0], sizes = [2, 128], strides = [1, 1]} : vector<2x256xf32> to vector<2x128xf32>
    %cst_108 = arith.constant dense<0.000000e+00> : vector<2x128xf32>
    %174 = tpu.matmul %149, %73, %cst_108 {dimension_numbers = #tpu.dot_dimension_numbers<[1], [0], [0], [1], [0, 0, 1, 1], [], []>} : vector<2x32xf32>, vector<32x128xf32>, vector<2x128xf32> -> vector<2x128xf32>
    %175 = arith.addf %173, %174 : vector<2x128xf32>
    %c5_109 = arith.constant 5 : index
    %c0_110 = arith.constant 0 : index
    %c0_111 = arith.constant 0 : index
    %176 = vector.load %arg14[%c5_109, %c0_110, %c0_111] : memref<8x2x256xf32, #tpu.memory_space<vmem>>, vector<1x2x256xf32>
    %177 = vector.shape_cast %176 : vector<1x2x256xf32> to vector<2x256xf32>
    %178 = vector.extract_strided_slice %177 {offsets = [0, 128], sizes = [2, 128], strides = [1, 1]} : vector<2x256xf32> to vector<2x128xf32>
    %cst_112 = arith.constant dense<0.000000e+00> : vector<2x128xf32>
    %179 = tpu.matmul %164, %74, %cst_112 {dimension_numbers = #tpu.dot_dimension_numbers<[1], [0], [0], [1], [0, 0, 1, 1], [], []>} : vector<2x32xf32>, vector<32x128xf32>, vector<2x128xf32> -> vector<2x128xf32>
    %180 = arith.addf %178, %179 : vector<2x128xf32>
    %181 = arith.negf %175 : vector<2x128xf32>
    %182 = math.exp %181 : vector<2x128xf32>
    %cst_113 = arith.constant 1.000000e+00 : f32
    %183 = vector.broadcast %cst_113 : f32 to vector<2x128xf32>
    %184 = arith.addf %183, %182 : vector<2x128xf32>
    %185 = arith.divf %183, %184 : vector<2x128xf32>
    %186 = vector.extract_strided_slice %175 {offsets = [0, 96], sizes = [2, 32], strides = [1, 1]} : vector<2x128xf32> to vector<2x32xf32>
    %187 = math.tanh %186 : vector<2x32xf32>
    %188 = vector.extract_strided_slice %185 {offsets = [0, 0], sizes = [2, 32], strides = [1, 1]} : vector<2x128xf32> to vector<2x32xf32>
    %189 = vector.extract_strided_slice %185 {offsets = [0, 32], sizes = [2, 32], strides = [1, 1]} : vector<2x128xf32> to vector<2x32xf32>
    %190 = vector.extract_strided_slice %185 {offsets = [0, 64], sizes = [2, 32], strides = [1, 1]} : vector<2x128xf32> to vector<2x32xf32>
    %191 = arith.mulf %189, %147 : vector<2x32xf32>
    %192 = arith.mulf %188, %187 : vector<2x32xf32>
    %193 = arith.addf %191, %192 : vector<2x32xf32>
    %194 = math.tanh %193 : vector<2x32xf32>
    %195 = arith.mulf %190, %194 : vector<2x32xf32>
    %196 = arith.negf %180 : vector<2x128xf32>
    %197 = math.exp %196 : vector<2x128xf32>
    %cst_114 = arith.constant 1.000000e+00 : f32
    %198 = vector.broadcast %cst_114 : f32 to vector<2x128xf32>
    %199 = arith.addf %198, %197 : vector<2x128xf32>
    %200 = arith.divf %198, %199 : vector<2x128xf32>
    %201 = vector.extract_strided_slice %180 {offsets = [0, 96], sizes = [2, 32], strides = [1, 1]} : vector<2x128xf32> to vector<2x32xf32>
    %202 = math.tanh %201 : vector<2x32xf32>
    %203 = vector.extract_strided_slice %200 {offsets = [0, 0], sizes = [2, 32], strides = [1, 1]} : vector<2x128xf32> to vector<2x32xf32>
    %204 = vector.extract_strided_slice %200 {offsets = [0, 32], sizes = [2, 32], strides = [1, 1]} : vector<2x128xf32> to vector<2x32xf32>
    %205 = vector.extract_strided_slice %200 {offsets = [0, 64], sizes = [2, 32], strides = [1, 1]} : vector<2x128xf32> to vector<2x32xf32>
    %206 = arith.mulf %204, %162 : vector<2x32xf32>
    %207 = arith.mulf %203, %202 : vector<2x32xf32>
    %208 = arith.addf %206, %207 : vector<2x32xf32>
    %209 = math.tanh %208 : vector<2x32xf32>
    %210 = arith.mulf %205, %209 : vector<2x32xf32>
    %c2_115 = arith.constant 2 : index
    %c0_116 = arith.constant 0 : index
    %c0_117 = arith.constant 0 : index
    %211 = vector.load %arg15[%c2_115, %c0_116, %c0_117] : memref<8x2x32xf32, #tpu.memory_space<vmem>>, vector<1x2x32xf32>
    %212 = vector.shape_cast %211 : vector<1x2x32xf32> to vector<2x32xf32>
    %213 = vector.shape_cast %195 : vector<2x32xf32> to vector<1x2x32xf32>
    tpu.vector_store %arg15[%c2_115, %c0_116, %c0_117], %213 {strides = array<i32>} : memref<8x2x32xf32, #tpu.memory_space<vmem>>, vector<1x2x32xf32>,
    %c5_118 = arith.constant 5 : index
    %c0_119 = arith.constant 0 : index
    %c0_120 = arith.constant 0 : index
    %214 = vector.load %arg16[%c5_118, %c0_119, %c0_120] : memref<8x2x32xf32, #tpu.memory_space<vmem>>, vector<1x2x32xf32>
    %215 = vector.shape_cast %214 : vector<1x2x32xf32> to vector<2x32xf32>
    %216 = vector.shape_cast %210 : vector<2x32xf32> to vector<1x2x32xf32>
    tpu.vector_store %arg16[%c5_118, %c0_119, %c0_120], %216 {strides = array<i32>} : memref<8x2x32xf32, #tpu.memory_space<vmem>>, vector<1x2x32xf32>,
    %c3_121 = arith.constant 3 : index
    %c0_122 = arith.constant 0 : index
    %c0_123 = arith.constant 0 : index
    %217 = vector.load %arg14[%c3_121, %c0_122, %c0_123] : memref<8x2x256xf32, #tpu.memory_space<vmem>>, vector<1x2x256xf32>
    %218 = vector.shape_cast %217 : vector<1x2x256xf32> to vector<2x256xf32>
    %219 = vector.extract_strided_slice %218 {offsets = [0, 0], sizes = [2, 128], strides = [1, 1]} : vector<2x256xf32> to vector<2x128xf32>
    %cst_124 = arith.constant dense<0.000000e+00> : vector<2x128xf32>
    %220 = tpu.matmul %195, %73, %cst_124 {dimension_numbers = #tpu.dot_dimension_numbers<[1], [0], [0], [1], [0, 0, 1, 1], [], []>} : vector<2x32xf32>, vector<32x128xf32>, vector<2x128xf32> -> vector<2x128xf32>
    %221 = arith.addf %219, %220 : vector<2x128xf32>
    %c4_125 = arith.constant 4 : index
    %c0_126 = arith.constant 0 : index
    %c0_127 = arith.constant 0 : index
    %222 = vector.load %arg14[%c4_125, %c0_126, %c0_127] : memref<8x2x256xf32, #tpu.memory_space<vmem>>, vector<1x2x256xf32>
    %223 = vector.shape_cast %222 : vector<1x2x256xf32> to vector<2x256xf32>
    %224 = vector.extract_strided_slice %223 {offsets = [0, 128], sizes = [2, 128], strides = [1, 1]} : vector<2x256xf32> to vector<2x128xf32>
    %cst_128 = arith.constant dense<0.000000e+00> : vector<2x128xf32>
    %225 = tpu.matmul %210, %74, %cst_128 {dimension_numbers = #tpu.dot_dimension_numbers<[1], [0], [0], [1], [0, 0, 1, 1], [], []>} : vector<2x32xf32>, vector<32x128xf32>, vector<2x128xf32> -> vector<2x128xf32>
    %226 = arith.addf %224, %225 : vector<2x128xf32>
    %227 = arith.negf %221 : vector<2x128xf32>
    %228 = math.exp %227 : vector<2x128xf32>
    %cst_129 = arith.constant 1.000000e+00 : f32
    %229 = vector.broadcast %cst_129 : f32 to vector<2x128xf32>
    %230 = arith.addf %229, %228 : vector<2x128xf32>
    %231 = arith.divf %229, %230 : vector<2x128xf32>
    %232 = vector.extract_strided_slice %221 {offsets = [0, 96], sizes = [2, 32], strides = [1, 1]} : vector<2x128xf32> to vector<2x32xf32>
    %233 = math.tanh %232 : vector<2x32xf32>
    %234 = vector.extract_strided_slice %231 {offsets = [0, 0], sizes = [2, 32], strides = [1, 1]} : vector<2x128xf32> to vector<2x32xf32>
    %235 = vector.extract_strided_slice %231 {offsets = [0, 32], sizes = [2, 32], strides = [1, 1]} : vector<2x128xf32> to vector<2x32xf32>
    %236 = vector.extract_strided_slice %231 {offsets = [0, 64], sizes = [2, 32], strides = [1, 1]} : vector<2x128xf32> to vector<2x32xf32>
    %237 = arith.mulf %235, %193 : vector<2x32xf32>
    %238 = arith.mulf %234, %233 : vector<2x32xf32>
    %239 = arith.addf %237, %238 : vector<2x32xf32>
    %240 = math.tanh %239 : vector<2x32xf32>
    %241 = arith.mulf %236, %240 : vector<2x32xf32>
    %242 = arith.negf %226 : vector<2x128xf32>
    %243 = math.exp %242 : vector<2x128xf32>
    %cst_130 = arith.constant 1.000000e+00 : f32
    %244 = vector.broadcast %cst_130 : f32 to vector<2x128xf32>
    %245 = arith.addf %244, %243 : vector<2x128xf32>
    %246 = arith.divf %244, %245 : vector<2x128xf32>
    %247 = vector.extract_strided_slice %226 {offsets = [0, 96], sizes = [2, 32], strides = [1, 1]} : vector<2x128xf32> to vector<2x32xf32>
    %248 = math.tanh %247 : vector<2x32xf32>
    %249 = vector.extract_strided_slice %246 {offsets = [0, 0], sizes = [2, 32], strides = [1, 1]} : vector<2x128xf32> to vector<2x32xf32>
    %250 = vector.extract_strided_slice %246 {offsets = [0, 32], sizes = [2, 32], strides = [1, 1]} : vector<2x128xf32> to vector<2x32xf32>
    %251 = vector.extract_strided_slice %246 {offsets = [0, 64], sizes = [2, 32], strides = [1, 1]} : vector<2x128xf32> to vector<2x32xf32>
    %252 = arith.mulf %250, %208 : vector<2x32xf32>
    %253 = arith.mulf %249, %248 : vector<2x32xf32>
    %254 = arith.addf %252, %253 : vector<2x32xf32>
    %255 = math.tanh %254 : vector<2x32xf32>
    %256 = arith.mulf %251, %255 : vector<2x32xf32>
    %c3_131 = arith.constant 3 : index
    %c0_132 = arith.constant 0 : index
    %c0_133 = arith.constant 0 : index
    %257 = vector.load %arg15[%c3_131, %c0_132, %c0_133] : memref<8x2x32xf32, #tpu.memory_space<vmem>>, vector<1x2x32xf32>
    %258 = vector.shape_cast %257 : vector<1x2x32xf32> to vector<2x32xf32>
    %259 = vector.shape_cast %241 : vector<2x32xf32> to vector<1x2x32xf32>
    tpu.vector_store %arg15[%c3_131, %c0_132, %c0_133], %259 {strides = array<i32>} : memref<8x2x32xf32, #tpu.memory_space<vmem>>, vector<1x2x32xf32>,
    %c4_134 = arith.constant 4 : index
    %c0_135 = arith.constant 0 : index
    %c0_136 = arith.constant 0 : index
    %260 = vector.load %arg16[%c4_134, %c0_135, %c0_136] : memref<8x2x32xf32, #tpu.memory_space<vmem>>, vector<1x2x32xf32>
    %261 = vector.shape_cast %260 : vector<1x2x32xf32> to vector<2x32xf32>
    %262 = vector.shape_cast %256 : vector<2x32xf32> to vector<1x2x32xf32>
    tpu.vector_store %arg16[%c4_134, %c0_135, %c0_136], %262 {strides = array<i32>} : memref<8x2x32xf32, #tpu.memory_space<vmem>>, vector<1x2x32xf32>,
    %c4_137 = arith.constant 4 : index
    %c0_138 = arith.constant 0 : index
    %c0_139 = arith.constant 0 : index
    %263 = vector.load %arg14[%c4_137, %c0_138, %c0_139] : memref<8x2x256xf32, #tpu.memory_space<vmem>>, vector<1x2x256xf32>
    %264 = vector.shape_cast %263 : vector<1x2x256xf32> to vector<2x256xf32>
    %265 = vector.extract_strided_slice %264 {offsets = [0, 0], sizes = [2, 128], strides = [1, 1]} : vector<2x256xf32> to vector<2x128xf32>
    %cst_140 = arith.constant dense<0.000000e+00> : vector<2x128xf32>
    %266 = tpu.matmul %241, %73, %cst_140 {dimension_numbers = #tpu.dot_dimension_numbers<[1], [0], [0], [1], [0, 0, 1, 1], [], []>} : vector<2x32xf32>, vector<32x128xf32>, vector<2x128xf32> -> vector<2x128xf32>
    %267 = arith.addf %265, %266 : vector<2x128xf32>
    %c3_141 = arith.constant 3 : index
    %c0_142 = arith.constant 0 : index
    %c0_143 = arith.constant 0 : index
    %268 = vector.load %arg14[%c3_141, %c0_142, %c0_143] : memref<8x2x256xf32, #tpu.memory_space<vmem>>, vector<1x2x256xf32>
    %269 = vector.shape_cast %268 : vector<1x2x256xf32> to vector<2x256xf32>
    %270 = vector.extract_strided_slice %269 {offsets = [0, 128], sizes = [2, 128], strides = [1, 1]} : vector<2x256xf32> to vector<2x128xf32>
    %cst_144 = arith.constant dense<0.000000e+00> : vector<2x128xf32>
    %271 = tpu.matmul %256, %74, %cst_144 {dimension_numbers = #tpu.dot_dimension_numbers<[1], [0], [0], [1], [0, 0, 1, 1], [], []>} : vector<2x32xf32>, vector<32x128xf32>, vector<2x128xf32> -> vector<2x128xf32>
    %272 = arith.addf %270, %271 : vector<2x128xf32>
    %273 = arith.negf %267 : vector<2x128xf32>
    %274 = math.exp %273 : vector<2x128xf32>
    %cst_145 = arith.constant 1.000000e+00 : f32
    %275 = vector.broadcast %cst_145 : f32 to vector<2x128xf32>
    %276 = arith.addf %275, %274 : vector<2x128xf32>
    %277 = arith.divf %275, %276 : vector<2x128xf32>
    %278 = vector.extract_strided_slice %267 {offsets = [0, 96], sizes = [2, 32], strides = [1, 1]} : vector<2x128xf32> to vector<2x32xf32>
    %279 = math.tanh %278 : vector<2x32xf32>
    %280 = vector.extract_strided_slice %277 {offsets = [0, 0], sizes = [2, 32], strides = [1, 1]} : vector<2x128xf32> to vector<2x32xf32>
    %281 = vector.extract_strided_slice %277 {offsets = [0, 32], sizes = [2, 32], strides = [1, 1]} : vector<2x128xf32> to vector<2x32xf32>
    %282 = vector.extract_strided_slice %277 {offsets = [0, 64], sizes = [2, 32], strides = [1, 1]} : vector<2x128xf32> to vector<2x32xf32>
    %283 = arith.mulf %281, %239 : vector<2x32xf32>
    %284 = arith.mulf %280, %279 : vector<2x32xf32>
    %285 = arith.addf %283, %284 : vector<2x32xf32>
    %286 = math.tanh %285 : vector<2x32xf32>
    %287 = arith.mulf %282, %286 : vector<2x32xf32>
    %288 = arith.negf %272 : vector<2x128xf32>
    %289 = math.exp %288 : vector<2x128xf32>
    %cst_146 = arith.constant 1.000000e+00 : f32
    %290 = vector.broadcast %cst_146 : f32 to vector<2x128xf32>
    %291 = arith.addf %290, %289 : vector<2x128xf32>
    %292 = arith.divf %290, %291 : vector<2x128xf32>
    %293 = vector.extract_strided_slice %272 {offsets = [0, 96], sizes = [2, 32], strides = [1, 1]} : vector<2x128xf32> to vector<2x32xf32>
    %294 = math.tanh %293 : vector<2x32xf32>
    %295 = vector.extract_strided_slice %292 {offsets = [0, 0], sizes = [2, 32], strides = [1, 1]} : vector<2x128xf32> to vector<2x32xf32>
    %296 = vector.extract_strided_slice %292 {offsets = [0, 32], sizes = [2, 32], strides = [1, 1]} : vector<2x128xf32> to vector<2x32xf32>
    %297 = vector.extract_strided_slice %292 {offsets = [0, 64], sizes = [2, 32], strides = [1, 1]} : vector<2x128xf32> to vector<2x32xf32>
    %298 = arith.mulf %296, %254 : vector<2x32xf32>
    %299 = arith.mulf %295, %294 : vector<2x32xf32>
    %300 = arith.addf %298, %299 : vector<2x32xf32>
    %301 = math.tanh %300 : vector<2x32xf32>
    %302 = arith.mulf %297, %301 : vector<2x32xf32>
    %c4_147 = arith.constant 4 : index
    %c0_148 = arith.constant 0 : index
    %c0_149 = arith.constant 0 : index
    %303 = vector.load %arg15[%c4_147, %c0_148, %c0_149] : memref<8x2x32xf32, #tpu.memory_space<vmem>>, vector<1x2x32xf32>
    %304 = vector.shape_cast %303 : vector<1x2x32xf32> to vector<2x32xf32>
    %305 = vector.shape_cast %287 : vector<2x32xf32> to vector<1x2x32xf32>
    tpu.vector_store %arg15[%c4_147, %c0_148, %c0_149], %305 {strides = array<i32>} : memref<8x2x32xf32, #tpu.memory_space<vmem>>, vector<1x2x32xf32>,
    %c3_150 = arith.constant 3 : index
    %c0_151 = arith.constant 0 : index
    %c0_152 = arith.constant 0 : index
    %306 = vector.load %arg16[%c3_150, %c0_151, %c0_152] : memref<8x2x32xf32, #tpu.memory_space<vmem>>, vector<1x2x32xf32>
    %307 = vector.shape_cast %306 : vector<1x2x32xf32> to vector<2x32xf32>
    %308 = vector.shape_cast %302 : vector<2x32xf32> to vector<1x2x32xf32>
    tpu.vector_store %arg16[%c3_150, %c0_151, %c0_152], %308 {strides = array<i32>} : memref<8x2x32xf32, #tpu.memory_space<vmem>>, vector<1x2x32xf32>,
    %c5_153 = arith.constant 5 : index
    %c0_154 = arith.constant 0 : index
    %c0_155 = arith.constant 0 : index
    %309 = vector.load %arg14[%c5_153, %c0_154, %c0_155] : memref<8x2x256xf32, #tpu.memory_space<vmem>>, vector<1x2x256xf32>
    %310 = vector.shape_cast %309 : vector<1x2x256xf32> to vector<2x256xf32>
    %311 = vector.extract_strided_slice %310 {offsets = [0, 0], sizes = [2, 128], strides = [1, 1]} : vector<2x256xf32> to vector<2x128xf32>
    %cst_156 = arith.constant dense<0.000000e+00> : vector<2x128xf32>
    %312 = tpu.matmul %287, %73, %cst_156 {dimension_numbers = #tpu.dot_dimension_numbers<[1], [0], [0], [1], [0, 0, 1, 1], [], []>} : vector<2x32xf32>, vector<32x128xf32>, vector<2x128xf32> -> vector<2x128xf32>
    %313 = arith.addf %311, %312 : vector<2x128xf32>
    %c2_157 = arith.constant 2 : index
    %c0_158 = arith.constant 0 : index
    %c0_159 = arith.constant 0 : index
    %314 = vector.load %arg14[%c2_157, %c0_158, %c0_159] : memref<8x2x256xf32, #tpu.memory_space<vmem>>, vector<1x2x256xf32>
    %315 = vector.shape_cast %314 : vector<1x2x256xf32> to vector<2x256xf32>
    %316 = vector.extract_strided_slice %315 {offsets = [0, 128], sizes = [2, 128], strides = [1, 1]} : vector<2x256xf32> to vector<2x128xf32>
    %cst_160 = arith.constant dense<0.000000e+00> : vector<2x128xf32>
    %317 = tpu.matmul %302, %74, %cst_160 {dimension_numbers = #tpu.dot_dimension_numbers<[1], [0], [0], [1], [0, 0, 1, 1], [], []>} : vector<2x32xf32>, vector<32x128xf32>, vector<2x128xf32> -> vector<2x128xf32>
    %318 = arith.addf %316, %317 : vector<2x128xf32>
    %319 = arith.negf %313 : vector<2x128xf32>
    %320 = math.exp %319 : vector<2x128xf32>
    %cst_161 = arith.constant 1.000000e+00 : f32
    %321 = vector.broadcast %cst_161 : f32 to vector<2x128xf32>
    %322 = arith.addf %321, %320 : vector<2x128xf32>
    %323 = arith.divf %321, %322 : vector<2x128xf32>
    %324 = vector.extract_strided_slice %313 {offsets = [0, 96], sizes = [2, 32], strides = [1, 1]} : vector<2x128xf32> to vector<2x32xf32>
    %325 = math.tanh %324 : vector<2x32xf32>
    %326 = vector.extract_strided_slice %323 {offsets = [0, 0], sizes = [2, 32], strides = [1, 1]} : vector<2x128xf32> to vector<2x32xf32>
    %327 = vector.extract_strided_slice %323 {offsets = [0, 32], sizes = [2, 32], strides = [1, 1]} : vector<2x128xf32> to vector<2x32xf32>
    %328 = vector.extract_strided_slice %323 {offsets = [0, 64], sizes = [2, 32], strides = [1, 1]} : vector<2x128xf32> to vector<2x32xf32>
    %329 = arith.mulf %327, %285 : vector<2x32xf32>
    %330 = arith.mulf %326, %325 : vector<2x32xf32>
    %331 = arith.addf %329, %330 : vector<2x32xf32>
    %332 = math.tanh %331 : vector<2x32xf32>
    %333 = arith.mulf %328, %332 : vector<2x32xf32>
    %334 = arith.negf %318 : vector<2x128xf32>
    %335 = math.exp %334 : vector<2x128xf32>
    %cst_162 = arith.constant 1.000000e+00 : f32
    %336 = vector.broadcast %cst_162 : f32 to vector<2x128xf32>
    %337 = arith.addf %336, %335 : vector<2x128xf32>
    %338 = arith.divf %336, %337 : vector<2x128xf32>
    %339 = vector.extract_strided_slice %318 {offsets = [0, 96], sizes = [2, 32], strides = [1, 1]} : vector<2x128xf32> to vector<2x32xf32>
    %340 = math.tanh %339 : vector<2x32xf32>
    %341 = vector.extract_strided_slice %338 {offsets = [0, 0], sizes = [2, 32], strides = [1, 1]} : vector<2x128xf32> to vector<2x32xf32>
    %342 = vector.extract_strided_slice %338 {offsets = [0, 32], sizes = [2, 32], strides = [1, 1]} : vector<2x128xf32> to vector<2x32xf32>
    %343 = vector.extract_strided_slice %338 {offsets = [0, 64], sizes = [2, 32], strides = [1, 1]} : vector<2x128xf32> to vector<2x32xf32>
    %344 = arith.mulf %342, %300 : vector<2x32xf32>
    %345 = arith.mulf %341, %340 : vector<2x32xf32>
    %346 = arith.addf %344, %345 : vector<2x32xf32>
    %347 = math.tanh %346 : vector<2x32xf32>
    %348 = arith.mulf %343, %347 : vector<2x32xf32>
    %c5_163 = arith.constant 5 : index
    %c0_164 = arith.constant 0 : index
    %c0_165 = arith.constant 0 : index
    %349 = vector.load %arg15[%c5_163, %c0_164, %c0_165] : memref<8x2x32xf32, #tpu.memory_space<vmem>>, vector<1x2x32xf32>
    %350 = vector.shape_cast %349 : vector<1x2x32xf32> to vector<2x32xf32>
    %351 = vector.shape_cast %333 : vector<2x32xf32> to vector<1x2x32xf32>
    tpu.vector_store %arg15[%c5_163, %c0_164, %c0_165], %351 {strides = array<i32>} : memref<8x2x32xf32, #tpu.memory_space<vmem>>, vector<1x2x32xf32>,
    %c2_166 = arith.constant 2 : index
    %c0_167 = arith.constant 0 : index
    %c0_168 = arith.constant 0 : index
    %352 = vector.load %arg16[%c2_166, %c0_167, %c0_168] : memref<8x2x32xf32, #tpu.memory_space<vmem>>, vector<1x2x32xf32>
    %353 = vector.shape_cast %352 : vector<1x2x32xf32> to vector<2x32xf32>
    %354 = vector.shape_cast %348 : vector<2x32xf32> to vector<1x2x32xf32>
    tpu.vector_store %arg16[%c2_166, %c0_167, %c0_168], %354 {strides = array<i32>} : memref<8x2x32xf32, #tpu.memory_space<vmem>>, vector<1x2x32xf32>,
    %c6_169 = arith.constant 6 : index
    %c0_170 = arith.constant 0 : index
    %c0_171 = arith.constant 0 : index
    %355 = vector.load %arg14[%c6_169, %c0_170, %c0_171] : memref<8x2x256xf32, #tpu.memory_space<vmem>>, vector<1x2x256xf32>
    %356 = vector.shape_cast %355 : vector<1x2x256xf32> to vector<2x256xf32>
    %357 = vector.extract_strided_slice %356 {offsets = [0, 0], sizes = [2, 128], strides = [1, 1]} : vector<2x256xf32> to vector<2x128xf32>
    %cst_172 = arith.constant dense<0.000000e+00> : vector<2x128xf32>
    %358 = tpu.matmul %333, %73, %cst_172 {dimension_numbers = #tpu.dot_dimension_numbers<[1], [0], [0], [1], [0, 0, 1, 1], [], []>} : vector<2x32xf32>, vector<32x128xf32>, vector<2x128xf32> -> vector<2x128xf32>
    %359 = arith.addf %357, %358 : vector<2x128xf32>
    %c1_173 = arith.constant 1 : index
    %c0_174 = arith.constant 0 : index
    %c0_175 = arith.constant 0 : index
    %360 = vector.load %arg14[%c1_173, %c0_174, %c0_175] : memref<8x2x256xf32, #tpu.memory_space<vmem>>, vector<1x2x256xf32>
    %361 = vector.shape_cast %360 : vector<1x2x256xf32> to vector<2x256xf32>
    %362 = vector.extract_strided_slice %361 {offsets = [0, 128], sizes = [2, 128], strides = [1, 1]} : vector<2x256xf32> to vector<2x128xf32>
    %cst_176 = arith.constant dense<0.000000e+00> : vector<2x128xf32>
    %363 = tpu.matmul %348, %74, %cst_176 {dimension_numbers = #tpu.dot_dimension_numbers<[1], [0], [0], [1], [0, 0, 1, 1], [], []>} : vector<2x32xf32>, vector<32x128xf32>, vector<2x128xf32> -> vector<2x128xf32>
    %364 = arith.addf %362, %363 : vector<2x128xf32>
    %365 = arith.negf %359 : vector<2x128xf32>
    %366 = math.exp %365 : vector<2x128xf32>
    %cst_177 = arith.constant 1.000000e+00 : f32
    %367 = vector.broadcast %cst_177 : f32 to vector<2x128xf32>
    %368 = arith.addf %367, %366 : vector<2x128xf32>
    %369 = arith.divf %367, %368 : vector<2x128xf32>
    %370 = vector.extract_strided_slice %359 {offsets = [0, 96], sizes = [2, 32], strides = [1, 1]} : vector<2x128xf32> to vector<2x32xf32>
    %371 = math.tanh %370 : vector<2x32xf32>
    %372 = vector.extract_strided_slice %369 {offsets = [0, 0], sizes = [2, 32], strides = [1, 1]} : vector<2x128xf32> to vector<2x32xf32>
    %373 = vector.extract_strided_slice %369 {offsets = [0, 32], sizes = [2, 32], strides = [1, 1]} : vector<2x128xf32> to vector<2x32xf32>
    %374 = vector.extract_strided_slice %369 {offsets = [0, 64], sizes = [2, 32], strides = [1, 1]} : vector<2x128xf32> to vector<2x32xf32>
    %375 = arith.mulf %373, %331 : vector<2x32xf32>
    %376 = arith.mulf %372, %371 : vector<2x32xf32>
    %377 = arith.addf %375, %376 : vector<2x32xf32>
    %378 = math.tanh %377 : vector<2x32xf32>
    %379 = arith.mulf %374, %378 : vector<2x32xf32>
    %380 = arith.negf %364 : vector<2x128xf32>
    %381 = math.exp %380 : vector<2x128xf32>
    %cst_178 = arith.constant 1.000000e+00 : f32
    %382 = vector.broadcast %cst_178 : f32 to vector<2x128xf32>
    %383 = arith.addf %382, %381 : vector<2x128xf32>
    %384 = arith.divf %382, %383 : vector<2x128xf32>
    %385 = vector.extract_strided_slice %364 {offsets = [0, 96], sizes = [2, 32], strides = [1, 1]} : vector<2x128xf32> to vector<2x32xf32>
    %386 = math.tanh %385 : vector<2x32xf32>
    %387 = vector.extract_strided_slice %384 {offsets = [0, 0], sizes = [2, 32], strides = [1, 1]} : vector<2x128xf32> to vector<2x32xf32>
    %388 = vector.extract_strided_slice %384 {offsets = [0, 32], sizes = [2, 32], strides = [1, 1]} : vector<2x128xf32> to vector<2x32xf32>
    %389 = vector.extract_strided_slice %384 {offsets = [0, 64], sizes = [2, 32], strides = [1, 1]} : vector<2x128xf32> to vector<2x32xf32>
    %390 = arith.mulf %388, %346 : vector<2x32xf32>
    %391 = arith.mulf %387, %386 : vector<2x32xf32>
    %392 = arith.addf %390, %391 : vector<2x32xf32>
    %393 = math.tanh %392 : vector<2x32xf32>
    %394 = arith.mulf %389, %393 : vector<2x32xf32>
    %c6_179 = arith.constant 6 : index
    %c0_180 = arith.constant 0 : index
    %c0_181 = arith.constant 0 : index
    %395 = vector.load %arg15[%c6_179, %c0_180, %c0_181] : memref<8x2x32xf32, #tpu.memory_space<vmem>>, vector<1x2x32xf32>
    %396 = vector.shape_cast %395 : vector<1x2x32xf32> to vector<2x32xf32>
    %397 = vector.shape_cast %379 : vector<2x32xf32> to vector<1x2x32xf32>
    tpu.vector_store %arg15[%c6_179, %c0_180, %c0_181], %397 {strides = array<i32>} : memref<8x2x32xf32, #tpu.memory_space<vmem>>, vector<1x2x32xf32>,
    %c1_182 = arith.constant 1 : index
    %c0_183 = arith.constant 0 : index
    %c0_184 = arith.constant 0 : index
    %398 = vector.load %arg16[%c1_182, %c0_183, %c0_184] : memref<8x2x32xf32, #tpu.memory_space<vmem>>, vector<1x2x32xf32>
    %399 = vector.shape_cast %398 : vector<1x2x32xf32> to vector<2x32xf32>
    %400 = vector.shape_cast %394 : vector<2x32xf32> to vector<1x2x32xf32>
    tpu.vector_store %arg16[%c1_182, %c0_183, %c0_184], %400 {strides = array<i32>} : memref<8x2x32xf32, #tpu.memory_space<vmem>>, vector<1x2x32xf32>,
    %c7_185 = arith.constant 7 : index
    %c0_186 = arith.constant 0 : index
    %c0_187 = arith.constant 0 : index
    %401 = vector.load %arg14[%c7_185, %c0_186, %c0_187] : memref<8x2x256xf32, #tpu.memory_space<vmem>>, vector<1x2x256xf32>
    %402 = vector.shape_cast %401 : vector<1x2x256xf32> to vector<2x256xf32>
    %403 = vector.extract_strided_slice %402 {offsets = [0, 0], sizes = [2, 128], strides = [1, 1]} : vector<2x256xf32> to vector<2x128xf32>
    %cst_188 = arith.constant dense<0.000000e+00> : vector<2x128xf32>
    %404 = tpu.matmul %379, %73, %cst_188 {dimension_numbers = #tpu.dot_dimension_numbers<[1], [0], [0], [1], [0, 0, 1, 1], [], []>} : vector<2x32xf32>, vector<32x128xf32>, vector<2x128xf32> -> vector<2x128xf32>
    %405 = arith.addf %403, %404 : vector<2x128xf32>
    %c0_189 = arith.constant 0 : index
    %c0_190 = arith.constant 0 : index
    %c0_191 = arith.constant 0 : index
    %406 = vector.load %arg14[%c0_189, %c0_190, %c0_191] : memref<8x2x256xf32, #tpu.memory_space<vmem>>, vector<1x2x256xf32>
    %407 = vector.shape_cast %406 : vector<1x2x256xf32> to vector<2x256xf32>
    %408 = vector.extract_strided_slice %407 {offsets = [0, 128], sizes = [2, 128], strides = [1, 1]} : vector<2x256xf32> to vector<2x128xf32>
    %cst_192 = arith.constant dense<0.000000e+00> : vector<2x128xf32>
    %409 = tpu.matmul %394, %74, %cst_192 {dimension_numbers = #tpu.dot_dimension_numbers<[1], [0], [0], [1], [0, 0, 1, 1], [], []>} : vector<2x32xf32>, vector<32x128xf32>, vector<2x128xf32> -> vector<2x128xf32>
    %410 = arith.addf %408, %409 : vector<2x128xf32>
    %411 = arith.negf %405 : vector<2x128xf32>
    %412 = math.exp %411 : vector<2x128xf32>
    %cst_193 = arith.constant 1.000000e+00 : f32
    %413 = vector.broadcast %cst_193 : f32 to vector<2x128xf32>
    %414 = arith.addf %413, %412 : vector<2x128xf32>
    %415 = arith.divf %413, %414 : vector<2x128xf32>
    %416 = vector.extract_strided_slice %405 {offsets = [0, 96], sizes = [2, 32], strides = [1, 1]} : vector<2x128xf32> to vector<2x32xf32>
    %417 = math.tanh %416 : vector<2x32xf32>
    %418 = vector.extract_strided_slice %415 {offsets = [0, 0], sizes = [2, 32], strides = [1, 1]} : vector<2x128xf32> to vector<2x32xf32>
    %419 = vector.extract_strided_slice %415 {offsets = [0, 32], sizes = [2, 32], strides = [1, 1]} : vector<2x128xf32> to vector<2x32xf32>
    %420 = vector.extract_strided_slice %415 {offsets = [0, 64], sizes = [2, 32], strides = [1, 1]} : vector<2x128xf32> to vector<2x32xf32>
    %421 = arith.mulf %419, %377 : vector<2x32xf32>
    %422 = arith.mulf %418, %417 : vector<2x32xf32>
    %423 = arith.addf %421, %422 : vector<2x32xf32>
    %424 = math.tanh %423 : vector<2x32xf32>
    %425 = arith.mulf %420, %424 : vector<2x32xf32>
    %426 = arith.negf %410 : vector<2x128xf32>
    %427 = math.exp %426 : vector<2x128xf32>
    %cst_194 = arith.constant 1.000000e+00 : f32
    %428 = vector.broadcast %cst_194 : f32 to vector<2x128xf32>
    %429 = arith.addf %428, %427 : vector<2x128xf32>
    %430 = arith.divf %428, %429 : vector<2x128xf32>
    %431 = vector.extract_strided_slice %410 {offsets = [0, 96], sizes = [2, 32], strides = [1, 1]} : vector<2x128xf32> to vector<2x32xf32>
    %432 = math.tanh %431 : vector<2x32xf32>
    %433 = vector.extract_strided_slice %430 {offsets = [0, 0], sizes = [2, 32], strides = [1, 1]} : vector<2x128xf32> to vector<2x32xf32>
    %434 = vector.extract_strided_slice %430 {offsets = [0, 32], sizes = [2, 32], strides = [1, 1]} : vector<2x128xf32> to vector<2x32xf32>
    %435 = vector.extract_strided_slice %430 {offsets = [0, 64], sizes = [2, 32], strides = [1, 1]} : vector<2x128xf32> to vector<2x32xf32>
    %436 = arith.mulf %434, %392 : vector<2x32xf32>
    %437 = arith.mulf %433, %432 : vector<2x32xf32>
    %438 = arith.addf %436, %437 : vector<2x32xf32>
    %439 = math.tanh %438 : vector<2x32xf32>
    %440 = arith.mulf %435, %439 : vector<2x32xf32>
    %c7_195 = arith.constant 7 : index
    %c0_196 = arith.constant 0 : index
    %c0_197 = arith.constant 0 : index
    %441 = vector.load %arg15[%c7_195, %c0_196, %c0_197] : memref<8x2x32xf32, #tpu.memory_space<vmem>>, vector<1x2x32xf32>
    %442 = vector.shape_cast %441 : vector<1x2x32xf32> to vector<2x32xf32>
    %443 = vector.shape_cast %425 : vector<2x32xf32> to vector<1x2x32xf32>
    tpu.vector_store %arg15[%c7_195, %c0_196, %c0_197], %443 {strides = array<i32>} : memref<8x2x32xf32, #tpu.memory_space<vmem>>, vector<1x2x32xf32>,
    %c0_198 = arith.constant 0 : index
    %c0_199 = arith.constant 0 : index
    %c0_200 = arith.constant 0 : index
    %444 = vector.load %arg16[%c0_198, %c0_199, %c0_200] : memref<8x2x32xf32, #tpu.memory_space<vmem>>, vector<1x2x32xf32>
    %445 = vector.shape_cast %444 : vector<1x2x32xf32> to vector<2x32xf32>
    %446 = vector.shape_cast %440 : vector<2x32xf32> to vector<1x2x32xf32>
    tpu.vector_store %arg16[%c0_198, %c0_199, %c0_200], %446 {strides = array<i32>} : memref<8x2x32xf32, #tpu.memory_space<vmem>>, vector<1x2x32xf32>,
    %c0_201 = arith.constant 0 : index
    %c0_202 = arith.constant 0 : index
    %447 = vector.load %arg7[%c0_201, %c0_202] : memref<1x256xf32, #tpu.memory_space<vmem>>, vector<1x256xf32>
    %c0_203 = arith.constant 0 : index
    %c0_204 = arith.constant 0 : index
    %448 = vector.load %arg5[%c0_203, %c0_204] : memref<32x256xf32, #tpu.memory_space<vmem>>, vector<32x256xf32>
    %c0_205 = arith.constant 0 : index
    %c0_206 = arith.constant 0 : index
    %449 = vector.load %arg6[%c0_205, %c0_206] : memref<32x256xf32, #tpu.memory_space<vmem>>, vector<32x256xf32>
    %c0_207 = arith.constant 0 : index
    %c0_208 = arith.constant 0 : index
    %c0_209 = arith.constant 0 : index
    %450 = vector.load %arg15[%c0_207, %c0_208, %c0_209] : memref<8x2x32xf32, #tpu.memory_space<vmem>>, vector<1x2x32xf32>
    %451 = vector.shape_cast %450 : vector<1x2x32xf32> to vector<2x32xf32>
    %cst_210 = arith.constant dense<0.000000e+00> : vector<2x256xf32>
    %452 = tpu.matmul %451, %448, %cst_210 {dimension_numbers = #tpu.dot_dimension_numbers<[1], [0], [0], [1], [0, 0, 1, 1], [], []>} : vector<2x32xf32>, vector<32x256xf32>, vector<2x256xf32> -> vector<2x256xf32>
    %c0_211 = arith.constant 0 : index
    %c0_212 = arith.constant 0 : index
    %c0_213 = arith.constant 0 : index
    %453 = vector.load %arg16[%c0_211, %c0_212, %c0_213] : memref<8x2x32xf32, #tpu.memory_space<vmem>>, vector<1x2x32xf32>
    %454 = vector.shape_cast %453 : vector<1x2x32xf32> to vector<2x32xf32>
    %cst_214 = arith.constant dense<0.000000e+00> : vector<2x256xf32>
    %455 = tpu.matmul %454, %449, %cst_214 {dimension_numbers = #tpu.dot_dimension_numbers<[1], [0], [0], [1], [0, 0, 1, 1], [], []>} : vector<2x32xf32>, vector<32x256xf32>, vector<2x256xf32> -> vector<2x256xf32>
    %456 = arith.addf %452, %455 : vector<2x256xf32>
    %457 = vector.broadcast %447 : vector<1x256xf32> to vector<2x256xf32>
    %458 = arith.addf %456, %457 : vector<2x256xf32>
    %c0_215 = arith.constant 0 : index
    %c0_216 = arith.constant 0 : index
    %c0_217 = arith.constant 0 : index
    %459 = vector.load %arg17[%c0_215, %c0_216, %c0_217] : memref<8x2x256xf32, #tpu.memory_space<vmem>>, vector<1x2x256xf32>
    %460 = vector.shape_cast %459 : vector<1x2x256xf32> to vector<2x256xf32>
    %461 = vector.shape_cast %458 : vector<2x256xf32> to vector<1x2x256xf32>
    tpu.vector_store %arg17[%c0_215, %c0_216, %c0_217], %461 {strides = array<i32>} : memref<8x2x256xf32, #tpu.memory_space<vmem>>, vector<1x2x256xf32>,
    %c1_218 = arith.constant 1 : index
    %c0_219 = arith.constant 0 : index
    %c0_220 = arith.constant 0 : index
    %462 = vector.load %arg15[%c1_218, %c0_219, %c0_220] : memref<8x2x32xf32, #tpu.memory_space<vmem>>, vector<1x2x32xf32>
    %463 = vector.shape_cast %462 : vector<1x2x32xf32> to vector<2x32xf32>
    %cst_221 = arith.constant dense<0.000000e+00> : vector<2x256xf32>
    %464 = tpu.matmul %463, %448, %cst_221 {dimension_numbers = #tpu.dot_dimension_numbers<[1], [0], [0], [1], [0, 0, 1, 1], [], []>} : vector<2x32xf32>, vector<32x256xf32>, vector<2x256xf32> -> vector<2x256xf32>
    %c1_222 = arith.constant 1 : index
    %c0_223 = arith.constant 0 : index
    %c0_224 = arith.constant 0 : index
    %465 = vector.load %arg16[%c1_222, %c0_223, %c0_224] : memref<8x2x32xf32, #tpu.memory_space<vmem>>, vector<1x2x32xf32>
    %466 = vector.shape_cast %465 : vector<1x2x32xf32> to vector<2x32xf32>
    %cst_225 = arith.constant dense<0.000000e+00> : vector<2x256xf32>
    %467 = tpu.matmul %466, %449, %cst_225 {dimension_numbers = #tpu.dot_dimension_numbers<[1], [0], [0], [1], [0, 0, 1, 1], [], []>} : vector<2x32xf32>, vector<32x256xf32>, vector<2x256xf32> -> vector<2x256xf32>
    %468 = arith.addf %464, %467 : vector<2x256xf32>
    %469 = vector.broadcast %447 : vector<1x256xf32> to vector<2x256xf32>
    %470 = arith.addf %468, %469 : vector<2x256xf32>
    %c1_226 = arith.constant 1 : index
    %c0_227 = arith.constant 0 : index
    %c0_228 = arith.constant 0 : index
    %471 = vector.load %arg17[%c1_226, %c0_227, %c0_228] : memref<8x2x256xf32, #tpu.memory_space<vmem>>, vector<1x2x256xf32>
    %472 = vector.shape_cast %471 : vector<1x2x256xf32> to vector<2x256xf32>
    %473 = vector.shape_cast %470 : vector<2x256xf32> to vector<1x2x256xf32>
    tpu.vector_store %arg17[%c1_226, %c0_227, %c0_228], %473 {strides = array<i32>} : memref<8x2x256xf32, #tpu.memory_space<vmem>>, vector<1x2x256xf32>,
    %c2_229 = arith.constant 2 : index
    %c0_230 = arith.constant 0 : index
    %c0_231 = arith.constant 0 : index
    %474 = vector.load %arg15[%c2_229, %c0_230, %c0_231] : memref<8x2x32xf32, #tpu.memory_space<vmem>>, vector<1x2x32xf32>
    %475 = vector.shape_cast %474 : vector<1x2x32xf32> to vector<2x32xf32>
    %cst_232 = arith.constant dense<0.000000e+00> : vector<2x256xf32>
    %476 = tpu.matmul %475, %448, %cst_232 {dimension_numbers = #tpu.dot_dimension_numbers<[1], [0], [0], [1], [0, 0, 1, 1], [], []>} : vector<2x32xf32>, vector<32x256xf32>, vector<2x256xf32> -> vector<2x256xf32>
    %c2_233 = arith.constant 2 : index
    %c0_234 = arith.constant 0 : index
    %c0_235 = arith.constant 0 : index
    %477 = vector.load %arg16[%c2_233, %c0_234, %c0_235] : memref<8x2x32xf32, #tpu.memory_space<vmem>>, vector<1x2x32xf32>
    %478 = vector.shape_cast %477 : vector<1x2x32xf32> to vector<2x32xf32>
    %cst_236 = arith.constant dense<0.000000e+00> : vector<2x256xf32>
    %479 = tpu.matmul %478, %449, %cst_236 {dimension_numbers = #tpu.dot_dimension_numbers<[1], [0], [0], [1], [0, 0, 1, 1], [], []>} : vector<2x32xf32>, vector<32x256xf32>, vector<2x256xf32> -> vector<2x256xf32>
    %480 = arith.addf %476, %479 : vector<2x256xf32>
    %481 = vector.broadcast %447 : vector<1x256xf32> to vector<2x256xf32>
    %482 = arith.addf %480, %481 : vector<2x256xf32>
    %c2_237 = arith.constant 2 : index
    %c0_238 = arith.constant 0 : index
    %c0_239 = arith.constant 0 : index
    %483 = vector.load %arg17[%c2_237, %c0_238, %c0_239] : memref<8x2x256xf32, #tpu.memory_space<vmem>>, vector<1x2x256xf32>
    %484 = vector.shape_cast %483 : vector<1x2x256xf32> to vector<2x256xf32>
    %485 = vector.shape_cast %482 : vector<2x256xf32> to vector<1x2x256xf32>
    tpu.vector_store %arg17[%c2_237, %c0_238, %c0_239], %485 {strides = array<i32>} : memref<8x2x256xf32, #tpu.memory_space<vmem>>, vector<1x2x256xf32>,
    %c3_240 = arith.constant 3 : index
    %c0_241 = arith.constant 0 : index
    %c0_242 = arith.constant 0 : index
    %486 = vector.load %arg15[%c3_240, %c0_241, %c0_242] : memref<8x2x32xf32, #tpu.memory_space<vmem>>, vector<1x2x32xf32>
    %487 = vector.shape_cast %486 : vector<1x2x32xf32> to vector<2x32xf32>
    %cst_243 = arith.constant dense<0.000000e+00> : vector<2x256xf32>
    %488 = tpu.matmul %487, %448, %cst_243 {dimension_numbers = #tpu.dot_dimension_numbers<[1], [0], [0], [1], [0, 0, 1, 1], [], []>} : vector<2x32xf32>, vector<32x256xf32>, vector<2x256xf32> -> vector<2x256xf32>
    %c3_244 = arith.constant 3 : index
    %c0_245 = arith.constant 0 : index
    %c0_246 = arith.constant 0 : index
    %489 = vector.load %arg16[%c3_244, %c0_245, %c0_246] : memref<8x2x32xf32, #tpu.memory_space<vmem>>, vector<1x2x32xf32>
    %490 = vector.shape_cast %489 : vector<1x2x32xf32> to vector<2x32xf32>
    %cst_247 = arith.constant dense<0.000000e+00> : vector<2x256xf32>
    %491 = tpu.matmul %490, %449, %cst_247 {dimension_numbers = #tpu.dot_dimension_numbers<[1], [0], [0], [1], [0, 0, 1, 1], [], []>} : vector<2x32xf32>, vector<32x256xf32>, vector<2x256xf32> -> vector<2x256xf32>
    %492 = arith.addf %488, %491 : vector<2x256xf32>
    %493 = vector.broadcast %447 : vector<1x256xf32> to vector<2x256xf32>
    %494 = arith.addf %492, %493 : vector<2x256xf32>
    %c3_248 = arith.constant 3 : index
    %c0_249 = arith.constant 0 : index
    %c0_250 = arith.constant 0 : index
    %495 = vector.load %arg17[%c3_248, %c0_249, %c0_250] : memref<8x2x256xf32, #tpu.memory_space<vmem>>, vector<1x2x256xf32>
    %496 = vector.shape_cast %495 : vector<1x2x256xf32> to vector<2x256xf32>
    %497 = vector.shape_cast %494 : vector<2x256xf32> to vector<1x2x256xf32>
    tpu.vector_store %arg17[%c3_248, %c0_249, %c0_250], %497 {strides = array<i32>} : memref<8x2x256xf32, #tpu.memory_space<vmem>>, vector<1x2x256xf32>,
    %c4_251 = arith.constant 4 : index
    %c0_252 = arith.constant 0 : index
    %c0_253 = arith.constant 0 : index
    %498 = vector.load %arg15[%c4_251, %c0_252, %c0_253] : memref<8x2x32xf32, #tpu.memory_space<vmem>>, vector<1x2x32xf32>
    %499 = vector.shape_cast %498 : vector<1x2x32xf32> to vector<2x32xf32>
    %cst_254 = arith.constant dense<0.000000e+00> : vector<2x256xf32>
    %500 = tpu.matmul %499, %448, %cst_254 {dimension_numbers = #tpu.dot_dimension_numbers<[1], [0], [0], [1], [0, 0, 1, 1], [], []>} : vector<2x32xf32>, vector<32x256xf32>, vector<2x256xf32> -> vector<2x256xf32>
    %c4_255 = arith.constant 4 : index
    %c0_256 = arith.constant 0 : index
    %c0_257 = arith.constant 0 : index
    %501 = vector.load %arg16[%c4_255, %c0_256, %c0_257] : memref<8x2x32xf32, #tpu.memory_space<vmem>>, vector<1x2x32xf32>
    %502 = vector.shape_cast %501 : vector<1x2x32xf32> to vector<2x32xf32>
    %cst_258 = arith.constant dense<0.000000e+00> : vector<2x256xf32>
    %503 = tpu.matmul %502, %449, %cst_258 {dimension_numbers = #tpu.dot_dimension_numbers<[1], [0], [0], [1], [0, 0, 1, 1], [], []>} : vector<2x32xf32>, vector<32x256xf32>, vector<2x256xf32> -> vector<2x256xf32>
    %504 = arith.addf %500, %503 : vector<2x256xf32>
    %505 = vector.broadcast %447 : vector<1x256xf32> to vector<2x256xf32>
    %506 = arith.addf %504, %505 : vector<2x256xf32>
    %c4_259 = arith.constant 4 : index
    %c0_260 = arith.constant 0 : index
    %c0_261 = arith.constant 0 : index
    %507 = vector.load %arg17[%c4_259, %c0_260, %c0_261] : memref<8x2x256xf32, #tpu.memory_space<vmem>>, vector<1x2x256xf32>
    %508 = vector.shape_cast %507 : vector<1x2x256xf32> to vector<2x256xf32>
    %509 = vector.shape_cast %506 : vector<2x256xf32> to vector<1x2x256xf32>
    tpu.vector_store %arg17[%c4_259, %c0_260, %c0_261], %509 {strides = array<i32>} : memref<8x2x256xf32, #tpu.memory_space<vmem>>, vector<1x2x256xf32>,
    %c5_262 = arith.constant 5 : index
    %c0_263 = arith.constant 0 : index
    %c0_264 = arith.constant 0 : index
    %510 = vector.load %arg15[%c5_262, %c0_263, %c0_264] : memref<8x2x32xf32, #tpu.memory_space<vmem>>, vector<1x2x32xf32>
    %511 = vector.shape_cast %510 : vector<1x2x32xf32> to vector<2x32xf32>
    %cst_265 = arith.constant dense<0.000000e+00> : vector<2x256xf32>
    %512 = tpu.matmul %511, %448, %cst_265 {dimension_numbers = #tpu.dot_dimension_numbers<[1], [0], [0], [1], [0, 0, 1, 1], [], []>} : vector<2x32xf32>, vector<32x256xf32>, vector<2x256xf32> -> vector<2x256xf32>
    %c5_266 = arith.constant 5 : index
    %c0_267 = arith.constant 0 : index
    %c0_268 = arith.constant 0 : index
    %513 = vector.load %arg16[%c5_266, %c0_267, %c0_268] : memref<8x2x32xf32, #tpu.memory_space<vmem>>, vector<1x2x32xf32>
    %514 = vector.shape_cast %513 : vector<1x2x32xf32> to vector<2x32xf32>
    %cst_269 = arith.constant dense<0.000000e+00> : vector<2x256xf32>
    %515 = tpu.matmul %514, %449, %cst_269 {dimension_numbers = #tpu.dot_dimension_numbers<[1], [0], [0], [1], [0, 0, 1, 1], [], []>} : vector<2x32xf32>, vector<32x256xf32>, vector<2x256xf32> -> vector<2x256xf32>
    %516 = arith.addf %512, %515 : vector<2x256xf32>
    %517 = vector.broadcast %447 : vector<1x256xf32> to vector<2x256xf32>
    %518 = arith.addf %516, %517 : vector<2x256xf32>
    %c5_270 = arith.constant 5 : index
    %c0_271 = arith.constant 0 : index
    %c0_272 = arith.constant 0 : index
    %519 = vector.load %arg17[%c5_270, %c0_271, %c0_272] : memref<8x2x256xf32, #tpu.memory_space<vmem>>, vector<1x2x256xf32>
    %520 = vector.shape_cast %519 : vector<1x2x256xf32> to vector<2x256xf32>
    %521 = vector.shape_cast %518 : vector<2x256xf32> to vector<1x2x256xf32>
    tpu.vector_store %arg17[%c5_270, %c0_271, %c0_272], %521 {strides = array<i32>} : memref<8x2x256xf32, #tpu.memory_space<vmem>>, vector<1x2x256xf32>,
    %c6_273 = arith.constant 6 : index
    %c0_274 = arith.constant 0 : index
    %c0_275 = arith.constant 0 : index
    %522 = vector.load %arg15[%c6_273, %c0_274, %c0_275] : memref<8x2x32xf32, #tpu.memory_space<vmem>>, vector<1x2x32xf32>
    %523 = vector.shape_cast %522 : vector<1x2x32xf32> to vector<2x32xf32>
    %cst_276 = arith.constant dense<0.000000e+00> : vector<2x256xf32>
    %524 = tpu.matmul %523, %448, %cst_276 {dimension_numbers = #tpu.dot_dimension_numbers<[1], [0], [0], [1], [0, 0, 1, 1], [], []>} : vector<2x32xf32>, vector<32x256xf32>, vector<2x256xf32> -> vector<2x256xf32>
    %c6_277 = arith.constant 6 : index
    %c0_278 = arith.constant 0 : index
    %c0_279 = arith.constant 0 : index
    %525 = vector.load %arg16[%c6_277, %c0_278, %c0_279] : memref<8x2x32xf32, #tpu.memory_space<vmem>>, vector<1x2x32xf32>
    %526 = vector.shape_cast %525 : vector<1x2x32xf32> to vector<2x32xf32>
    %cst_280 = arith.constant dense<0.000000e+00> : vector<2x256xf32>
    %527 = tpu.matmul %526, %449, %cst_280 {dimension_numbers = #tpu.dot_dimension_numbers<[1], [0], [0], [1], [0, 0, 1, 1], [], []>} : vector<2x32xf32>, vector<32x256xf32>, vector<2x256xf32> -> vector<2x256xf32>
    %528 = arith.addf %524, %527 : vector<2x256xf32>
    %529 = vector.broadcast %447 : vector<1x256xf32> to vector<2x256xf32>
    %530 = arith.addf %528, %529 : vector<2x256xf32>
    %c6_281 = arith.constant 6 : index
    %c0_282 = arith.constant 0 : index
    %c0_283 = arith.constant 0 : index
    %531 = vector.load %arg17[%c6_281, %c0_282, %c0_283] : memref<8x2x256xf32, #tpu.memory_space<vmem>>, vector<1x2x256xf32>
    %532 = vector.shape_cast %531 : vector<1x2x256xf32> to vector<2x256xf32>
    %533 = vector.shape_cast %530 : vector<2x256xf32> to vector<1x2x256xf32>
    tpu.vector_store %arg17[%c6_281, %c0_282, %c0_283], %533 {strides = array<i32>} : memref<8x2x256xf32, #tpu.memory_space<vmem>>, vector<1x2x256xf32>,
    %c7_284 = arith.constant 7 : index
    %c0_285 = arith.constant 0 : index
    %c0_286 = arith.constant 0 : index
    %534 = vector.load %arg15[%c7_284, %c0_285, %c0_286] : memref<8x2x32xf32, #tpu.memory_space<vmem>>, vector<1x2x32xf32>
    %535 = vector.shape_cast %534 : vector<1x2x32xf32> to vector<2x32xf32>
    %cst_287 = arith.constant dense<0.000000e+00> : vector<2x256xf32>
    %536 = tpu.matmul %535, %448, %cst_287 {dimension_numbers = #tpu.dot_dimension_numbers<[1], [0], [0], [1], [0, 0, 1, 1], [], []>} : vector<2x32xf32>, vector<32x256xf32>, vector<2x256xf32> -> vector<2x256xf32>
    %c7_288 = arith.constant 7 : index
    %c0_289 = arith.constant 0 : index
    %c0_290 = arith.constant 0 : index
    %537 = vector.load %arg16[%c7_288, %c0_289, %c0_290] : memref<8x2x32xf32, #tpu.memory_space<vmem>>, vector<1x2x32xf32>
    %538 = vector.shape_cast %537 : vector<1x2x32xf32> to vector<2x32xf32>
    %cst_291 = arith.constant dense<0.000000e+00> : vector<2x256xf32>
    %539 = tpu.matmul %538, %449, %cst_291 {dimension_numbers = #tpu.dot_dimension_numbers<[1], [0], [0], [1], [0, 0, 1, 1], [], []>} : vector<2x32xf32>, vector<32x256xf32>, vector<2x256xf32> -> vector<2x256xf32>
    %540 = arith.addf %536, %539 : vector<2x256xf32>
    %541 = vector.broadcast %447 : vector<1x256xf32> to vector<2x256xf32>
    %542 = arith.addf %540, %541 : vector<2x256xf32>
    %c7_292 = arith.constant 7 : index
    %c0_293 = arith.constant 0 : index
    %c0_294 = arith.constant 0 : index
    %543 = vector.load %arg17[%c7_292, %c0_293, %c0_294] : memref<8x2x256xf32, #tpu.memory_space<vmem>>, vector<1x2x256xf32>
    %544 = vector.shape_cast %543 : vector<1x2x256xf32> to vector<2x256xf32>
    %545 = vector.shape_cast %542 : vector<2x256xf32> to vector<1x2x256xf32>
    tpu.vector_store %arg17[%c7_292, %c0_293, %c0_294], %545 {strides = array<i32>} : memref<8x2x256xf32, #tpu.memory_space<vmem>>, vector<1x2x256xf32>,
    %c0_295 = arith.constant 0 : index
    %c0_296 = arith.constant 0 : index
    %546 = vector.load %arg8[%c0_295, %c0_296] : memref<32x128xf32, #tpu.memory_space<vmem>>, vector<32x128xf32>
    %c0_297 = arith.constant 0 : index
    %c0_298 = arith.constant 0 : index
    %547 = vector.load %arg9[%c0_297, %c0_298] : memref<32x128xf32, #tpu.memory_space<vmem>>, vector<32x128xf32>
    %cst_299 = arith.constant 0.000000e+00 : f32
    %548 = vector.broadcast %cst_299 : f32 to vector<2x32xf32>
    %cst_300 = arith.constant 0.000000e+00 : f32
    %549 = vector.broadcast %cst_300 : f32 to vector<2x32xf32>
    %cst_301 = arith.constant 0.000000e+00 : f32
    %550 = vector.broadcast %cst_301 : f32 to vector<2x32xf32>
    %cst_302 = arith.constant 0.000000e+00 : f32
    %551 = vector.broadcast %cst_302 : f32 to vector<2x32xf32>
    %c0_303 = arith.constant 0 : index
    %c0_304 = arith.constant 0 : index
    %c0_305 = arith.constant 0 : index
    %552 = vector.load %arg17[%c0_303, %c0_304, %c0_305] : memref<8x2x256xf32, #tpu.memory_space<vmem>>, vector<1x2x256xf32>
    %553 = vector.shape_cast %552 : vector<1x2x256xf32> to vector<2x256xf32>
    %554 = vector.extract_strided_slice %553 {offsets = [0, 0], sizes = [2, 128], strides = [1, 1]} : vector<2x256xf32> to vector<2x128xf32>
    %cst_306 = arith.constant dense<0.000000e+00> : vector<2x128xf32>
    %555 = tpu.matmul %548, %546, %cst_306 {dimension_numbers = #tpu.dot_dimension_numbers<[1], [0], [0], [1], [0, 0, 1, 1], [], []>} : vector<2x32xf32>, vector<32x128xf32>, vector<2x128xf32> -> vector<2x128xf32>
    %556 = arith.addf %554, %555 : vector<2x128xf32>
    %c7_307 = arith.constant 7 : index
    %c0_308 = arith.constant 0 : index
    %c0_309 = arith.constant 0 : index
    %557 = vector.load %arg17[%c7_307, %c0_308, %c0_309] : memref<8x2x256xf32, #tpu.memory_space<vmem>>, vector<1x2x256xf32>
    %558 = vector.shape_cast %557 : vector<1x2x256xf32> to vector<2x256xf32>
    %559 = vector.extract_strided_slice %558 {offsets = [0, 128], sizes = [2, 128], strides = [1, 1]} : vector<2x256xf32> to vector<2x128xf32>
    %cst_310 = arith.constant dense<0.000000e+00> : vector<2x128xf32>
    %560 = tpu.matmul %550, %547, %cst_310 {dimension_numbers = #tpu.dot_dimension_numbers<[1], [0], [0], [1], [0, 0, 1, 1], [], []>} : vector<2x32xf32>, vector<32x128xf32>, vector<2x128xf32> -> vector<2x128xf32>
    %561 = arith.addf %559, %560 : vector<2x128xf32>
    %562 = arith.negf %556 : vector<2x128xf32>
    %563 = math.exp %562 : vector<2x128xf32>
    %cst_311 = arith.constant 1.000000e+00 : f32
    %564 = vector.broadcast %cst_311 : f32 to vector<2x128xf32>
    %565 = arith.addf %564, %563 : vector<2x128xf32>
    %566 = arith.divf %564, %565 : vector<2x128xf32>
    %567 = vector.extract_strided_slice %556 {offsets = [0, 96], sizes = [2, 32], strides = [1, 1]} : vector<2x128xf32> to vector<2x32xf32>
    %568 = math.tanh %567 : vector<2x32xf32>
    %569 = vector.extract_strided_slice %566 {offsets = [0, 0], sizes = [2, 32], strides = [1, 1]} : vector<2x128xf32> to vector<2x32xf32>
    %570 = vector.extract_strided_slice %566 {offsets = [0, 32], sizes = [2, 32], strides = [1, 1]} : vector<2x128xf32> to vector<2x32xf32>
    %571 = vector.extract_strided_slice %566 {offsets = [0, 64], sizes = [2, 32], strides = [1, 1]} : vector<2x128xf32> to vector<2x32xf32>
    %572 = arith.mulf %570, %549 : vector<2x32xf32>
    %573 = arith.mulf %569, %568 : vector<2x32xf32>
    %574 = arith.addf %572, %573 : vector<2x32xf32>
    %575 = math.tanh %574 : vector<2x32xf32>
    %576 = arith.mulf %571, %575 : vector<2x32xf32>
    %577 = arith.negf %561 : vector<2x128xf32>
    %578 = math.exp %577 : vector<2x128xf32>
    %cst_312 = arith.constant 1.000000e+00 : f32
    %579 = vector.broadcast %cst_312 : f32 to vector<2x128xf32>
    %580 = arith.addf %579, %578 : vector<2x128xf32>
    %581 = arith.divf %579, %580 : vector<2x128xf32>
    %582 = vector.extract_strided_slice %561 {offsets = [0, 96], sizes = [2, 32], strides = [1, 1]} : vector<2x128xf32> to vector<2x32xf32>
    %583 = math.tanh %582 : vector<2x32xf32>
    %584 = vector.extract_strided_slice %581 {offsets = [0, 0], sizes = [2, 32], strides = [1, 1]} : vector<2x128xf32> to vector<2x32xf32>
    %585 = vector.extract_strided_slice %581 {offsets = [0, 32], sizes = [2, 32], strides = [1, 1]} : vector<2x128xf32> to vector<2x32xf32>
    %586 = vector.extract_strided_slice %581 {offsets = [0, 64], sizes = [2, 32], strides = [1, 1]} : vector<2x128xf32> to vector<2x32xf32>
    %587 = arith.mulf %585, %551 : vector<2x32xf32>
    %588 = arith.mulf %584, %583 : vector<2x32xf32>
    %589 = arith.addf %587, %588 : vector<2x32xf32>
    %590 = math.tanh %589 : vector<2x32xf32>
    %591 = arith.mulf %586, %590 : vector<2x32xf32>
    %c1_313 = arith.constant 1 : index
    %c0_314 = arith.constant 0 : index
    %c0_315 = arith.constant 0 : index
    %592 = vector.load %arg17[%c1_313, %c0_314, %c0_315] : memref<8x2x256xf32, #tpu.memory_space<vmem>>, vector<1x2x256xf32>
    %593 = vector.shape_cast %592 : vector<1x2x256xf32> to vector<2x256xf32>
    %594 = vector.extract_strided_slice %593 {offsets = [0, 0], sizes = [2, 128], strides = [1, 1]} : vector<2x256xf32> to vector<2x128xf32>
    %cst_316 = arith.constant dense<0.000000e+00> : vector<2x128xf32>
    %595 = tpu.matmul %576, %546, %cst_316 {dimension_numbers = #tpu.dot_dimension_numbers<[1], [0], [0], [1], [0, 0, 1, 1], [], []>} : vector<2x32xf32>, vector<32x128xf32>, vector<2x128xf32> -> vector<2x128xf32>
    %596 = arith.addf %594, %595 : vector<2x128xf32>
    %c6_317 = arith.constant 6 : index
    %c0_318 = arith.constant 0 : index
    %c0_319 = arith.constant 0 : index
    %597 = vector.load %arg17[%c6_317, %c0_318, %c0_319] : memref<8x2x256xf32, #tpu.memory_space<vmem>>, vector<1x2x256xf32>
    %598 = vector.shape_cast %597 : vector<1x2x256xf32> to vector<2x256xf32>
    %599 = vector.extract_strided_slice %598 {offsets = [0, 128], sizes = [2, 128], strides = [1, 1]} : vector<2x256xf32> to vector<2x128xf32>
    %cst_320 = arith.constant dense<0.000000e+00> : vector<2x128xf32>
    %600 = tpu.matmul %591, %547, %cst_320 {dimension_numbers = #tpu.dot_dimension_numbers<[1], [0], [0], [1], [0, 0, 1, 1], [], []>} : vector<2x32xf32>, vector<32x128xf32>, vector<2x128xf32> -> vector<2x128xf32>
    %601 = arith.addf %599, %600 : vector<2x128xf32>
    %602 = arith.negf %596 : vector<2x128xf32>
    %603 = math.exp %602 : vector<2x128xf32>
    %cst_321 = arith.constant 1.000000e+00 : f32
    %604 = vector.broadcast %cst_321 : f32 to vector<2x128xf32>
    %605 = arith.addf %604, %603 : vector<2x128xf32>
    %606 = arith.divf %604, %605 : vector<2x128xf32>
    %607 = vector.extract_strided_slice %596 {offsets = [0, 96], sizes = [2, 32], strides = [1, 1]} : vector<2x128xf32> to vector<2x32xf32>
    %608 = math.tanh %607 : vector<2x32xf32>
    %609 = vector.extract_strided_slice %606 {offsets = [0, 0], sizes = [2, 32], strides = [1, 1]} : vector<2x128xf32> to vector<2x32xf32>
    %610 = vector.extract_strided_slice %606 {offsets = [0, 32], sizes = [2, 32], strides = [1, 1]} : vector<2x128xf32> to vector<2x32xf32>
    %611 = vector.extract_strided_slice %606 {offsets = [0, 64], sizes = [2, 32], strides = [1, 1]} : vector<2x128xf32> to vector<2x32xf32>
    %612 = arith.mulf %610, %574 : vector<2x32xf32>
    %613 = arith.mulf %609, %608 : vector<2x32xf32>
    %614 = arith.addf %612, %613 : vector<2x32xf32>
    %615 = math.tanh %614 : vector<2x32xf32>
    %616 = arith.mulf %611, %615 : vector<2x32xf32>
    %617 = arith.negf %601 : vector<2x128xf32>
    %618 = math.exp %617 : vector<2x128xf32>
    %cst_322 = arith.constant 1.000000e+00 : f32
    %619 = vector.broadcast %cst_322 : f32 to vector<2x128xf32>
    %620 = arith.addf %619, %618 : vector<2x128xf32>
    %621 = arith.divf %619, %620 : vector<2x128xf32>
    %622 = vector.extract_strided_slice %601 {offsets = [0, 96], sizes = [2, 32], strides = [1, 1]} : vector<2x128xf32> to vector<2x32xf32>
    %623 = math.tanh %622 : vector<2x32xf32>
    %624 = vector.extract_strided_slice %621 {offsets = [0, 0], sizes = [2, 32], strides = [1, 1]} : vector<2x128xf32> to vector<2x32xf32>
    %625 = vector.extract_strided_slice %621 {offsets = [0, 32], sizes = [2, 32], strides = [1, 1]} : vector<2x128xf32> to vector<2x32xf32>
    %626 = vector.extract_strided_slice %621 {offsets = [0, 64], sizes = [2, 32], strides = [1, 1]} : vector<2x128xf32> to vector<2x32xf32>
    %627 = arith.mulf %625, %589 : vector<2x32xf32>
    %628 = arith.mulf %624, %623 : vector<2x32xf32>
    %629 = arith.addf %627, %628 : vector<2x32xf32>
    %630 = math.tanh %629 : vector<2x32xf32>
    %631 = arith.mulf %626, %630 : vector<2x32xf32>
    %c2_323 = arith.constant 2 : index
    %c0_324 = arith.constant 0 : index
    %c0_325 = arith.constant 0 : index
    %632 = vector.load %arg17[%c2_323, %c0_324, %c0_325] : memref<8x2x256xf32, #tpu.memory_space<vmem>>, vector<1x2x256xf32>
    %633 = vector.shape_cast %632 : vector<1x2x256xf32> to vector<2x256xf32>
    %634 = vector.extract_strided_slice %633 {offsets = [0, 0], sizes = [2, 128], strides = [1, 1]} : vector<2x256xf32> to vector<2x128xf32>
    %cst_326 = arith.constant dense<0.000000e+00> : vector<2x128xf32>
    %635 = tpu.matmul %616, %546, %cst_326 {dimension_numbers = #tpu.dot_dimension_numbers<[1], [0], [0], [1], [0, 0, 1, 1], [], []>} : vector<2x32xf32>, vector<32x128xf32>, vector<2x128xf32> -> vector<2x128xf32>
    %636 = arith.addf %634, %635 : vector<2x128xf32>
    %c5_327 = arith.constant 5 : index
    %c0_328 = arith.constant 0 : index
    %c0_329 = arith.constant 0 : index
    %637 = vector.load %arg17[%c5_327, %c0_328, %c0_329] : memref<8x2x256xf32, #tpu.memory_space<vmem>>, vector<1x2x256xf32>
    %638 = vector.shape_cast %637 : vector<1x2x256xf32> to vector<2x256xf32>
    %639 = vector.extract_strided_slice %638 {offsets = [0, 128], sizes = [2, 128], strides = [1, 1]} : vector<2x256xf32> to vector<2x128xf32>
    %cst_330 = arith.constant dense<0.000000e+00> : vector<2x128xf32>
    %640 = tpu.matmul %631, %547, %cst_330 {dimension_numbers = #tpu.dot_dimension_numbers<[1], [0], [0], [1], [0, 0, 1, 1], [], []>} : vector<2x32xf32>, vector<32x128xf32>, vector<2x128xf32> -> vector<2x128xf32>
    %641 = arith.addf %639, %640 : vector<2x128xf32>
    %642 = arith.negf %636 : vector<2x128xf32>
    %643 = math.exp %642 : vector<2x128xf32>
    %cst_331 = arith.constant 1.000000e+00 : f32
    %644 = vector.broadcast %cst_331 : f32 to vector<2x128xf32>
    %645 = arith.addf %644, %643 : vector<2x128xf32>
    %646 = arith.divf %644, %645 : vector<2x128xf32>
    %647 = vector.extract_strided_slice %636 {offsets = [0, 96], sizes = [2, 32], strides = [1, 1]} : vector<2x128xf32> to vector<2x32xf32>
    %648 = math.tanh %647 : vector<2x32xf32>
    %649 = vector.extract_strided_slice %646 {offsets = [0, 0], sizes = [2, 32], strides = [1, 1]} : vector<2x128xf32> to vector<2x32xf32>
    %650 = vector.extract_strided_slice %646 {offsets = [0, 32], sizes = [2, 32], strides = [1, 1]} : vector<2x128xf32> to vector<2x32xf32>
    %651 = vector.extract_strided_slice %646 {offsets = [0, 64], sizes = [2, 32], strides = [1, 1]} : vector<2x128xf32> to vector<2x32xf32>
    %652 = arith.mulf %650, %614 : vector<2x32xf32>
    %653 = arith.mulf %649, %648 : vector<2x32xf32>
    %654 = arith.addf %652, %653 : vector<2x32xf32>
    %655 = math.tanh %654 : vector<2x32xf32>
    %656 = arith.mulf %651, %655 : vector<2x32xf32>
    %657 = arith.negf %641 : vector<2x128xf32>
    %658 = math.exp %657 : vector<2x128xf32>
    %cst_332 = arith.constant 1.000000e+00 : f32
    %659 = vector.broadcast %cst_332 : f32 to vector<2x128xf32>
    %660 = arith.addf %659, %658 : vector<2x128xf32>
    %661 = arith.divf %659, %660 : vector<2x128xf32>
    %662 = vector.extract_strided_slice %641 {offsets = [0, 96], sizes = [2, 32], strides = [1, 1]} : vector<2x128xf32> to vector<2x32xf32>
    %663 = math.tanh %662 : vector<2x32xf32>
    %664 = vector.extract_strided_slice %661 {offsets = [0, 0], sizes = [2, 32], strides = [1, 1]} : vector<2x128xf32> to vector<2x32xf32>
    %665 = vector.extract_strided_slice %661 {offsets = [0, 32], sizes = [2, 32], strides = [1, 1]} : vector<2x128xf32> to vector<2x32xf32>
    %666 = vector.extract_strided_slice %661 {offsets = [0, 64], sizes = [2, 32], strides = [1, 1]} : vector<2x128xf32> to vector<2x32xf32>
    %667 = arith.mulf %665, %629 : vector<2x32xf32>
    %668 = arith.mulf %664, %663 : vector<2x32xf32>
    %669 = arith.addf %667, %668 : vector<2x32xf32>
    %670 = math.tanh %669 : vector<2x32xf32>
    %671 = arith.mulf %666, %670 : vector<2x32xf32>
    %c3_333 = arith.constant 3 : index
    %c0_334 = arith.constant 0 : index
    %c0_335 = arith.constant 0 : index
    %672 = vector.load %arg17[%c3_333, %c0_334, %c0_335] : memref<8x2x256xf32, #tpu.memory_space<vmem>>, vector<1x2x256xf32>
    %673 = vector.shape_cast %672 : vector<1x2x256xf32> to vector<2x256xf32>
    %674 = vector.extract_strided_slice %673 {offsets = [0, 0], sizes = [2, 128], strides = [1, 1]} : vector<2x256xf32> to vector<2x128xf32>
    %cst_336 = arith.constant dense<0.000000e+00> : vector<2x128xf32>
    %675 = tpu.matmul %656, %546, %cst_336 {dimension_numbers = #tpu.dot_dimension_numbers<[1], [0], [0], [1], [0, 0, 1, 1], [], []>} : vector<2x32xf32>, vector<32x128xf32>, vector<2x128xf32> -> vector<2x128xf32>
    %676 = arith.addf %674, %675 : vector<2x128xf32>
    %c4_337 = arith.constant 4 : index
    %c0_338 = arith.constant 0 : index
    %c0_339 = arith.constant 0 : index
    %677 = vector.load %arg17[%c4_337, %c0_338, %c0_339] : memref<8x2x256xf32, #tpu.memory_space<vmem>>, vector<1x2x256xf32>
    %678 = vector.shape_cast %677 : vector<1x2x256xf32> to vector<2x256xf32>
    %679 = vector.extract_strided_slice %678 {offsets = [0, 128], sizes = [2, 128], strides = [1, 1]} : vector<2x256xf32> to vector<2x128xf32>
    %cst_340 = arith.constant dense<0.000000e+00> : vector<2x128xf32>
    %680 = tpu.matmul %671, %547, %cst_340 {dimension_numbers = #tpu.dot_dimension_numbers<[1], [0], [0], [1], [0, 0, 1, 1], [], []>} : vector<2x32xf32>, vector<32x128xf32>, vector<2x128xf32> -> vector<2x128xf32>
    %681 = arith.addf %679, %680 : vector<2x128xf32>
    %682 = arith.negf %676 : vector<2x128xf32>
    %683 = math.exp %682 : vector<2x128xf32>
    %cst_341 = arith.constant 1.000000e+00 : f32
    %684 = vector.broadcast %cst_341 : f32 to vector<2x128xf32>
    %685 = arith.addf %684, %683 : vector<2x128xf32>
    %686 = arith.divf %684, %685 : vector<2x128xf32>
    %687 = vector.extract_strided_slice %676 {offsets = [0, 96], sizes = [2, 32], strides = [1, 1]} : vector<2x128xf32> to vector<2x32xf32>
    %688 = math.tanh %687 : vector<2x32xf32>
    %689 = vector.extract_strided_slice %686 {offsets = [0, 0], sizes = [2, 32], strides = [1, 1]} : vector<2x128xf32> to vector<2x32xf32>
    %690 = vector.extract_strided_slice %686 {offsets = [0, 32], sizes = [2, 32], strides = [1, 1]} : vector<2x128xf32> to vector<2x32xf32>
    %691 = vector.extract_strided_slice %686 {offsets = [0, 64], sizes = [2, 32], strides = [1, 1]} : vector<2x128xf32> to vector<2x32xf32>
    %692 = arith.mulf %690, %654 : vector<2x32xf32>
    %693 = arith.mulf %689, %688 : vector<2x32xf32>
    %694 = arith.addf %692, %693 : vector<2x32xf32>
    %695 = math.tanh %694 : vector<2x32xf32>
    %696 = arith.mulf %691, %695 : vector<2x32xf32>
    %697 = arith.negf %681 : vector<2x128xf32>
    %698 = math.exp %697 : vector<2x128xf32>
    %cst_342 = arith.constant 1.000000e+00 : f32
    %699 = vector.broadcast %cst_342 : f32 to vector<2x128xf32>
    %700 = arith.addf %699, %698 : vector<2x128xf32>
    %701 = arith.divf %699, %700 : vector<2x128xf32>
    %702 = vector.extract_strided_slice %681 {offsets = [0, 96], sizes = [2, 32], strides = [1, 1]} : vector<2x128xf32> to vector<2x32xf32>
    %703 = math.tanh %702 : vector<2x32xf32>
    %704 = vector.extract_strided_slice %701 {offsets = [0, 0], sizes = [2, 32], strides = [1, 1]} : vector<2x128xf32> to vector<2x32xf32>
    %705 = vector.extract_strided_slice %701 {offsets = [0, 32], sizes = [2, 32], strides = [1, 1]} : vector<2x128xf32> to vector<2x32xf32>
    %706 = vector.extract_strided_slice %701 {offsets = [0, 64], sizes = [2, 32], strides = [1, 1]} : vector<2x128xf32> to vector<2x32xf32>
    %707 = arith.mulf %705, %669 : vector<2x32xf32>
    %708 = arith.mulf %704, %703 : vector<2x32xf32>
    %709 = arith.addf %707, %708 : vector<2x32xf32>
    %710 = math.tanh %709 : vector<2x32xf32>
    %711 = arith.mulf %706, %710 : vector<2x32xf32>
    %c4_343 = arith.constant 4 : index
    %c0_344 = arith.constant 0 : index
    %c0_345 = arith.constant 0 : index
    %712 = vector.load %arg17[%c4_343, %c0_344, %c0_345] : memref<8x2x256xf32, #tpu.memory_space<vmem>>, vector<1x2x256xf32>
    %713 = vector.shape_cast %712 : vector<1x2x256xf32> to vector<2x256xf32>
    %714 = vector.extract_strided_slice %713 {offsets = [0, 0], sizes = [2, 128], strides = [1, 1]} : vector<2x256xf32> to vector<2x128xf32>
    %cst_346 = arith.constant dense<0.000000e+00> : vector<2x128xf32>
    %715 = tpu.matmul %696, %546, %cst_346 {dimension_numbers = #tpu.dot_dimension_numbers<[1], [0], [0], [1], [0, 0, 1, 1], [], []>} : vector<2x32xf32>, vector<32x128xf32>, vector<2x128xf32> -> vector<2x128xf32>
    %716 = arith.addf %714, %715 : vector<2x128xf32>
    %c3_347 = arith.constant 3 : index
    %c0_348 = arith.constant 0 : index
    %c0_349 = arith.constant 0 : index
    %717 = vector.load %arg17[%c3_347, %c0_348, %c0_349] : memref<8x2x256xf32, #tpu.memory_space<vmem>>, vector<1x2x256xf32>
    %718 = vector.shape_cast %717 : vector<1x2x256xf32> to vector<2x256xf32>
    %719 = vector.extract_strided_slice %718 {offsets = [0, 128], sizes = [2, 128], strides = [1, 1]} : vector<2x256xf32> to vector<2x128xf32>
    %cst_350 = arith.constant dense<0.000000e+00> : vector<2x128xf32>
    %720 = tpu.matmul %711, %547, %cst_350 {dimension_numbers = #tpu.dot_dimension_numbers<[1], [0], [0], [1], [0, 0, 1, 1], [], []>} : vector<2x32xf32>, vector<32x128xf32>, vector<2x128xf32> -> vector<2x128xf32>
    %721 = arith.addf %719, %720 : vector<2x128xf32>
    %722 = arith.negf %716 : vector<2x128xf32>
    %723 = math.exp %722 : vector<2x128xf32>
    %cst_351 = arith.constant 1.000000e+00 : f32
    %724 = vector.broadcast %cst_351 : f32 to vector<2x128xf32>
    %725 = arith.addf %724, %723 : vector<2x128xf32>
    %726 = arith.divf %724, %725 : vector<2x128xf32>
    %727 = vector.extract_strided_slice %716 {offsets = [0, 96], sizes = [2, 32], strides = [1, 1]} : vector<2x128xf32> to vector<2x32xf32>
    %728 = math.tanh %727 : vector<2x32xf32>
    %729 = vector.extract_strided_slice %726 {offsets = [0, 0], sizes = [2, 32], strides = [1, 1]} : vector<2x128xf32> to vector<2x32xf32>
    %730 = vector.extract_strided_slice %726 {offsets = [0, 32], sizes = [2, 32], strides = [1, 1]} : vector<2x128xf32> to vector<2x32xf32>
    %731 = vector.extract_strided_slice %726 {offsets = [0, 64], sizes = [2, 32], strides = [1, 1]} : vector<2x128xf32> to vector<2x32xf32>
    %732 = arith.mulf %730, %694 : vector<2x32xf32>
    %733 = arith.mulf %729, %728 : vector<2x32xf32>
    %734 = arith.addf %732, %733 : vector<2x32xf32>
    %735 = math.tanh %734 : vector<2x32xf32>
    %736 = arith.mulf %731, %735 : vector<2x32xf32>
    %737 = arith.negf %721 : vector<2x128xf32>
    %738 = math.exp %737 : vector<2x128xf32>
    %cst_352 = arith.constant 1.000000e+00 : f32
    %739 = vector.broadcast %cst_352 : f32 to vector<2x128xf32>
    %740 = arith.addf %739, %738 : vector<2x128xf32>
    %741 = arith.divf %739, %740 : vector<2x128xf32>
    %742 = vector.extract_strided_slice %721 {offsets = [0, 96], sizes = [2, 32], strides = [1, 1]} : vector<2x128xf32> to vector<2x32xf32>
    %743 = math.tanh %742 : vector<2x32xf32>
    %744 = vector.extract_strided_slice %741 {offsets = [0, 0], sizes = [2, 32], strides = [1, 1]} : vector<2x128xf32> to vector<2x32xf32>
    %745 = vector.extract_strided_slice %741 {offsets = [0, 32], sizes = [2, 32], strides = [1, 1]} : vector<2x128xf32> to vector<2x32xf32>
    %746 = vector.extract_strided_slice %741 {offsets = [0, 64], sizes = [2, 32], strides = [1, 1]} : vector<2x128xf32> to vector<2x32xf32>
    %747 = arith.mulf %745, %709 : vector<2x32xf32>
    %748 = arith.mulf %744, %743 : vector<2x32xf32>
    %749 = arith.addf %747, %748 : vector<2x32xf32>
    %750 = math.tanh %749 : vector<2x32xf32>
    %751 = arith.mulf %746, %750 : vector<2x32xf32>
    %c5_353 = arith.constant 5 : index
    %c0_354 = arith.constant 0 : index
    %c0_355 = arith.constant 0 : index
    %752 = vector.load %arg17[%c5_353, %c0_354, %c0_355] : memref<8x2x256xf32, #tpu.memory_space<vmem>>, vector<1x2x256xf32>
    %753 = vector.shape_cast %752 : vector<1x2x256xf32> to vector<2x256xf32>
    %754 = vector.extract_strided_slice %753 {offsets = [0, 0], sizes = [2, 128], strides = [1, 1]} : vector<2x256xf32> to vector<2x128xf32>
    %cst_356 = arith.constant dense<0.000000e+00> : vector<2x128xf32>
    %755 = tpu.matmul %736, %546, %cst_356 {dimension_numbers = #tpu.dot_dimension_numbers<[1], [0], [0], [1], [0, 0, 1, 1], [], []>} : vector<2x32xf32>, vector<32x128xf32>, vector<2x128xf32> -> vector<2x128xf32>
    %756 = arith.addf %754, %755 : vector<2x128xf32>
    %c2_357 = arith.constant 2 : index
    %c0_358 = arith.constant 0 : index
    %c0_359 = arith.constant 0 : index
    %757 = vector.load %arg17[%c2_357, %c0_358, %c0_359] : memref<8x2x256xf32, #tpu.memory_space<vmem>>, vector<1x2x256xf32>
    %758 = vector.shape_cast %757 : vector<1x2x256xf32> to vector<2x256xf32>
    %759 = vector.extract_strided_slice %758 {offsets = [0, 128], sizes = [2, 128], strides = [1, 1]} : vector<2x256xf32> to vector<2x128xf32>
    %cst_360 = arith.constant dense<0.000000e+00> : vector<2x128xf32>
    %760 = tpu.matmul %751, %547, %cst_360 {dimension_numbers = #tpu.dot_dimension_numbers<[1], [0], [0], [1], [0, 0, 1, 1], [], []>} : vector<2x32xf32>, vector<32x128xf32>, vector<2x128xf32> -> vector<2x128xf32>
    %761 = arith.addf %759, %760 : vector<2x128xf32>
    %762 = arith.negf %756 : vector<2x128xf32>
    %763 = math.exp %762 : vector<2x128xf32>
    %cst_361 = arith.constant 1.000000e+00 : f32
    %764 = vector.broadcast %cst_361 : f32 to vector<2x128xf32>
    %765 = arith.addf %764, %763 : vector<2x128xf32>
    %766 = arith.divf %764, %765 : vector<2x128xf32>
    %767 = vector.extract_strided_slice %756 {offsets = [0, 96], sizes = [2, 32], strides = [1, 1]} : vector<2x128xf32> to vector<2x32xf32>
    %768 = math.tanh %767 : vector<2x32xf32>
    %769 = vector.extract_strided_slice %766 {offsets = [0, 0], sizes = [2, 32], strides = [1, 1]} : vector<2x128xf32> to vector<2x32xf32>
    %770 = vector.extract_strided_slice %766 {offsets = [0, 32], sizes = [2, 32], strides = [1, 1]} : vector<2x128xf32> to vector<2x32xf32>
    %771 = vector.extract_strided_slice %766 {offsets = [0, 64], sizes = [2, 32], strides = [1, 1]} : vector<2x128xf32> to vector<2x32xf32>
    %772 = arith.mulf %770, %734 : vector<2x32xf32>
    %773 = arith.mulf %769, %768 : vector<2x32xf32>
    %774 = arith.addf %772, %773 : vector<2x32xf32>
    %775 = math.tanh %774 : vector<2x32xf32>
    %776 = arith.mulf %771, %775 : vector<2x32xf32>
    %777 = arith.negf %761 : vector<2x128xf32>
    %778 = math.exp %777 : vector<2x128xf32>
    %cst_362 = arith.constant 1.000000e+00 : f32
    %779 = vector.broadcast %cst_362 : f32 to vector<2x128xf32>
    %780 = arith.addf %779, %778 : vector<2x128xf32>
    %781 = arith.divf %779, %780 : vector<2x128xf32>
    %782 = vector.extract_strided_slice %761 {offsets = [0, 96], sizes = [2, 32], strides = [1, 1]} : vector<2x128xf32> to vector<2x32xf32>
    %783 = math.tanh %782 : vector<2x32xf32>
    %784 = vector.extract_strided_slice %781 {offsets = [0, 0], sizes = [2, 32], strides = [1, 1]} : vector<2x128xf32> to vector<2x32xf32>
    %785 = vector.extract_strided_slice %781 {offsets = [0, 32], sizes = [2, 32], strides = [1, 1]} : vector<2x128xf32> to vector<2x32xf32>
    %786 = vector.extract_strided_slice %781 {offsets = [0, 64], sizes = [2, 32], strides = [1, 1]} : vector<2x128xf32> to vector<2x32xf32>
    %787 = arith.mulf %785, %749 : vector<2x32xf32>
    %788 = arith.mulf %784, %783 : vector<2x32xf32>
    %789 = arith.addf %787, %788 : vector<2x32xf32>
    %790 = math.tanh %789 : vector<2x32xf32>
    %791 = arith.mulf %786, %790 : vector<2x32xf32>
    %c6_363 = arith.constant 6 : index
    %c0_364 = arith.constant 0 : index
    %c0_365 = arith.constant 0 : index
    %792 = vector.load %arg17[%c6_363, %c0_364, %c0_365] : memref<8x2x256xf32, #tpu.memory_space<vmem>>, vector<1x2x256xf32>
    %793 = vector.shape_cast %792 : vector<1x2x256xf32> to vector<2x256xf32>
    %794 = vector.extract_strided_slice %793 {offsets = [0, 0], sizes = [2, 128], strides = [1, 1]} : vector<2x256xf32> to vector<2x128xf32>
    %cst_366 = arith.constant dense<0.000000e+00> : vector<2x128xf32>
    %795 = tpu.matmul %776, %546, %cst_366 {dimension_numbers = #tpu.dot_dimension_numbers<[1], [0], [0], [1], [0, 0, 1, 1], [], []>} : vector<2x32xf32>, vector<32x128xf32>, vector<2x128xf32> -> vector<2x128xf32>
    %796 = arith.addf %794, %795 : vector<2x128xf32>
    %c1_367 = arith.constant 1 : index
    %c0_368 = arith.constant 0 : index
    %c0_369 = arith.constant 0 : index
    %797 = vector.load %arg17[%c1_367, %c0_368, %c0_369] : memref<8x2x256xf32, #tpu.memory_space<vmem>>, vector<1x2x256xf32>
    %798 = vector.shape_cast %797 : vector<1x2x256xf32> to vector<2x256xf32>
    %799 = vector.extract_strided_slice %798 {offsets = [0, 128], sizes = [2, 128], strides = [1, 1]} : vector<2x256xf32> to vector<2x128xf32>
    %cst_370 = arith.constant dense<0.000000e+00> : vector<2x128xf32>
    %800 = tpu.matmul %791, %547, %cst_370 {dimension_numbers = #tpu.dot_dimension_numbers<[1], [0], [0], [1], [0, 0, 1, 1], [], []>} : vector<2x32xf32>, vector<32x128xf32>, vector<2x128xf32> -> vector<2x128xf32>
    %801 = arith.addf %799, %800 : vector<2x128xf32>
    %802 = arith.negf %796 : vector<2x128xf32>
    %803 = math.exp %802 : vector<2x128xf32>
    %cst_371 = arith.constant 1.000000e+00 : f32
    %804 = vector.broadcast %cst_371 : f32 to vector<2x128xf32>
    %805 = arith.addf %804, %803 : vector<2x128xf32>
    %806 = arith.divf %804, %805 : vector<2x128xf32>
    %807 = vector.extract_strided_slice %796 {offsets = [0, 96], sizes = [2, 32], strides = [1, 1]} : vector<2x128xf32> to vector<2x32xf32>
    %808 = math.tanh %807 : vector<2x32xf32>
    %809 = vector.extract_strided_slice %806 {offsets = [0, 0], sizes = [2, 32], strides = [1, 1]} : vector<2x128xf32> to vector<2x32xf32>
    %810 = vector.extract_strided_slice %806 {offsets = [0, 32], sizes = [2, 32], strides = [1, 1]} : vector<2x128xf32> to vector<2x32xf32>
    %811 = vector.extract_strided_slice %806 {offsets = [0, 64], sizes = [2, 32], strides = [1, 1]} : vector<2x128xf32> to vector<2x32xf32>
    %812 = arith.mulf %810, %774 : vector<2x32xf32>
    %813 = arith.mulf %809, %808 : vector<2x32xf32>
    %814 = arith.addf %812, %813 : vector<2x32xf32>
    %815 = math.tanh %814 : vector<2x32xf32>
    %816 = arith.mulf %811, %815 : vector<2x32xf32>
    %817 = arith.negf %801 : vector<2x128xf32>
    %818 = math.exp %817 : vector<2x128xf32>
    %cst_372 = arith.constant 1.000000e+00 : f32
    %819 = vector.broadcast %cst_372 : f32 to vector<2x128xf32>
    %820 = arith.addf %819, %818 : vector<2x128xf32>
    %821 = arith.divf %819, %820 : vector<2x128xf32>
    %822 = vector.extract_strided_slice %801 {offsets = [0, 96], sizes = [2, 32], strides = [1, 1]} : vector<2x128xf32> to vector<2x32xf32>
    %823 = math.tanh %822 : vector<2x32xf32>
    %824 = vector.extract_strided_slice %821 {offsets = [0, 0], sizes = [2, 32], strides = [1, 1]} : vector<2x128xf32> to vector<2x32xf32>
    %825 = vector.extract_strided_slice %821 {offsets = [0, 32], sizes = [2, 32], strides = [1, 1]} : vector<2x128xf32> to vector<2x32xf32>
    %826 = vector.extract_strided_slice %821 {offsets = [0, 64], sizes = [2, 32], strides = [1, 1]} : vector<2x128xf32> to vector<2x32xf32>
    %827 = arith.mulf %825, %789 : vector<2x32xf32>
    %828 = arith.mulf %824, %823 : vector<2x32xf32>
    %829 = arith.addf %827, %828 : vector<2x32xf32>
    %830 = math.tanh %829 : vector<2x32xf32>
    %831 = arith.mulf %826, %830 : vector<2x32xf32>
    %c7_373 = arith.constant 7 : index
    %c0_374 = arith.constant 0 : index
    %c0_375 = arith.constant 0 : index
    %832 = vector.load %arg17[%c7_373, %c0_374, %c0_375] : memref<8x2x256xf32, #tpu.memory_space<vmem>>, vector<1x2x256xf32>
    %833 = vector.shape_cast %832 : vector<1x2x256xf32> to vector<2x256xf32>
    %834 = vector.extract_strided_slice %833 {offsets = [0, 0], sizes = [2, 128], strides = [1, 1]} : vector<2x256xf32> to vector<2x128xf32>
    %cst_376 = arith.constant dense<0.000000e+00> : vector<2x128xf32>
    %835 = tpu.matmul %816, %546, %cst_376 {dimension_numbers = #tpu.dot_dimension_numbers<[1], [0], [0], [1], [0, 0, 1, 1], [], []>} : vector<2x32xf32>, vector<32x128xf32>, vector<2x128xf32> -> vector<2x128xf32>
    %836 = arith.addf %834, %835 : vector<2x128xf32>
    %c0_377 = arith.constant 0 : index
    %c0_378 = arith.constant 0 : index
    %c0_379 = arith.constant 0 : index
    %837 = vector.load %arg17[%c0_377, %c0_378, %c0_379] : memref<8x2x256xf32, #tpu.memory_space<vmem>>, vector<1x2x256xf32>
    %838 = vector.shape_cast %837 : vector<1x2x256xf32> to vector<2x256xf32>
    %839 = vector.extract_strided_slice %838 {offsets = [0, 128], sizes = [2, 128], strides = [1, 1]} : vector<2x256xf32> to vector<2x128xf32>
    %cst_380 = arith.constant dense<0.000000e+00> : vector<2x128xf32>
    %840 = tpu.matmul %831, %547, %cst_380 {dimension_numbers = #tpu.dot_dimension_numbers<[1], [0], [0], [1], [0, 0, 1, 1], [], []>} : vector<2x32xf32>, vector<32x128xf32>, vector<2x128xf32> -> vector<2x128xf32>
    %841 = arith.addf %839, %840 : vector<2x128xf32>
    %842 = arith.negf %836 : vector<2x128xf32>
    %843 = math.exp %842 : vector<2x128xf32>
    %cst_381 = arith.constant 1.000000e+00 : f32
    %844 = vector.broadcast %cst_381 : f32 to vector<2x128xf32>
    %845 = arith.addf %844, %843 : vector<2x128xf32>
    %846 = arith.divf %844, %845 : vector<2x128xf32>
    %847 = vector.extract_strided_slice %836 {offsets = [0, 96], sizes = [2, 32], strides = [1, 1]} : vector<2x128xf32> to vector<2x32xf32>
    %848 = math.tanh %847 : vector<2x32xf32>
    %849 = vector.extract_strided_slice %846 {offsets = [0, 0], sizes = [2, 32], strides = [1, 1]} : vector<2x128xf32> to vector<2x32xf32>
    %850 = vector.extract_strided_slice %846 {offsets = [0, 32], sizes = [2, 32], strides = [1, 1]} : vector<2x128xf32> to vector<2x32xf32>
    %851 = vector.extract_strided_slice %846 {offsets = [0, 64], sizes = [2, 32], strides = [1, 1]} : vector<2x128xf32> to vector<2x32xf32>
    %852 = arith.mulf %850, %814 : vector<2x32xf32>
    %853 = arith.mulf %849, %848 : vector<2x32xf32>
    %854 = arith.addf %852, %853 : vector<2x32xf32>
    %855 = math.tanh %854 : vector<2x32xf32>
    %856 = arith.mulf %851, %855 : vector<2x32xf32>
    %857 = arith.negf %841 : vector<2x128xf32>
    %858 = math.exp %857 : vector<2x128xf32>
    %cst_382 = arith.constant 1.000000e+00 : f32
    %859 = vector.broadcast %cst_382 : f32 to vector<2x128xf32>
    %860 = arith.addf %859, %858 : vector<2x128xf32>
    %861 = arith.divf %859, %860 : vector<2x128xf32>
    %862 = vector.extract_strided_slice %841 {offsets = [0, 96], sizes = [2, 32], strides = [1, 1]} : vector<2x128xf32> to vector<2x32xf32>
    %863 = math.tanh %862 : vector<2x32xf32>
    %864 = vector.extract_strided_slice %861 {offsets = [0, 0], sizes = [2, 32], strides = [1, 1]} : vector<2x128xf32> to vector<2x32xf32>
    %865 = vector.extract_strided_slice %861 {offsets = [0, 32], sizes = [2, 32], strides = [1, 1]} : vector<2x128xf32> to vector<2x32xf32>
    %866 = vector.extract_strided_slice %861 {offsets = [0, 64], sizes = [2, 32], strides = [1, 1]} : vector<2x128xf32> to vector<2x32xf32>
    %867 = arith.mulf %865, %829 : vector<2x32xf32>
    %868 = arith.mulf %864, %863 : vector<2x32xf32>
    %869 = arith.addf %867, %868 : vector<2x32xf32>
    %870 = math.tanh %869 : vector<2x32xf32>
    %871 = arith.mulf %866, %870 : vector<2x32xf32>
    %c0_383 = arith.constant 0 : index
    %c0_384 = arith.constant 0 : index
    %872 = vector.load %arg10[%c0_383, %c0_384] : memref<32x2xf32, #tpu.memory_space<vmem>>, vector<32x2xf32>
    %cst_385 = arith.constant dense<0.000000e+00> : vector<2x2xf32>
    %873 = tpu.matmul %856, %872, %cst_385 {dimension_numbers = #tpu.dot_dimension_numbers<[1], [0], [0], [1], [0, 0, 1, 1], [], []>} : vector<2x32xf32>, vector<32x2xf32>, vector<2x2xf32> -> vector<2x2xf32>
    %c0_386 = arith.constant 0 : index
    %c0_387 = arith.constant 0 : index
    %874 = vector.load %arg11[%c0_386, %c0_387] : memref<32x2xf32, #tpu.memory_space<vmem>>, vector<32x2xf32>
    %cst_388 = arith.constant dense<0.000000e+00> : vector<2x2xf32>
    %875 = tpu.matmul %871, %874, %cst_388 {dimension_numbers = #tpu.dot_dimension_numbers<[1], [0], [0], [1], [0, 0, 1, 1], [], []>} : vector<2x32xf32>, vector<32x2xf32>, vector<2x2xf32> -> vector<2x2xf32>
    %876 = arith.addf %873, %875 : vector<2x2xf32>
    %c0_389 = arith.constant 0 : index
    %c0_390 = arith.constant 0 : index
    %877 = vector.load %arg12[%c0_389, %c0_390] : memref<1x2xf32, #tpu.memory_space<vmem>>, vector<1x2xf32>
    %878 = vector.broadcast %877 : vector<1x2xf32> to vector<2x2xf32>
    %879 = arith.addf %876, %878 : vector<2x2xf32>
    %c0_391 = arith.constant 0 : index
    %c0_392 = arith.constant 0 : index
    %880 = vector.load %arg13[%c0_391, %c0_392] : memref<2x2xf32, #tpu.memory_space<vmem>>, vector<2x2xf32>
    tpu.vector_store %arg13[%c0_391, %c0_392], %879 {strides = array<i32>} : memref<2x2xf32, #tpu.memory_space<vmem>>, vector<2x2xf32>,
    return
  }
}

</mosaic_0001>

<bundles_post_ra>
// kernel: lstm_classifier_forward.1
= control target key start
LH: loop header
LB: loop body
LE: loop exit
PB: predicated region body
PF: predicated region fallthrough
CT: control target
= control target key end

     0   :  { %v7262_v7 = vmov 0.0   ;;  %vm66_vm0 = vcmask 261120   ;;  %s8249_s0 = inlined_call_operand.vmem [shape: f32[8,2,32], index: 0, kind: input, shape index: {}]   ;;  %s8250_s1 = inlined_call_operand.vmem [shape: f32[32,256], index: 1, kind: input, shape index: {}]   ;;  %s8251_s2 = inlined_call_operand.vmem [shape: f32[1,256], index: 2, kind: input, shape index: {}]   ;;  %s8252_s3 = inlined_call_operand.vmem [shape: f32[32,128], index: 3, kind: input, shape index: {}]   ;;  %s8253_s4 = inlined_call_operand.vmem [shape: f32[32,128], index: 4, kind: input, shape index: {}]   ;;  %s8254_s5 = inlined_call_operand.vmem [shape: f32[32,256], index: 5, kind: input, shape index: {}]   ;;  %s8255_s6 = inlined_call_operand.vmem [shape: f32[32,256], index: 6, kind: input, shape index: {}]   ;;  %s8256_s7 = inlined_call_operand.vmem [shape: f32[1,256], index: 7, kind: input, shape index: {}]   ;;  %s8257_s8 = inlined_call_operand.vmem [shape: f32[32,128], index: 8, kind: input, shape index: {}]   ;;  %s8258_s9 = inlined_call_operand.vmem [shape: f32[32,128], index: 9, kind: input, shape index: {}]   ;;  %s8259_s10 = inlined_call_operand.vmem [shape: f32[32,2], index: 10, kind: input, shape index: {}]   ;;  %s8260_s11 = inlined_call_operand.vmem [shape: f32[32,2], index: 11, kind: input, shape index: {}]   ;;  %s8261_s12 = inlined_call_operand.vmem [shape: f32[1,2], index: 12, kind: input, shape index: {}]   ;;  %s8262_s13 = inlined_call_operand.hbm [shape: f32[2,2], index: 13, kind: output, shape index: {}]  }
   0x1   :  { %v156_v0 = vld [vmem:[%s8250_s1 + $0x8] sm:$0xff]  ;;  %v158_v1 = vld [vmem:[%s8250_s1 + $0x18] sm:$0xff]  ;;  %v155_v2 = vld [vmem:[%s8250_s1] sm:$0xff]  ;;  %230 = vmatprep.mubr.f32.mxu1 %v7262_v7  ;;  %134 = vmatprep.mubr.f32.mxu0 %v7262_v7 }
   0x2   :  { %v6571_v3 = vpack.c.bf16 %v158_v1, %v156_v0  ;;  %v157_v4 = vld [vmem:[%s8250_s1 + $0x10] sm:$0xff]  ;;  %v160_v5 = vld [vmem:[%s8250_s1 + $0x28] sm:$0xff]  ;;  %v162_v6 = vld [vmem:[%s8250_s1 + $0x38] sm:$0xff] }
   0x3   :  { %v6573_v8 = vpack.c.bf16 %v157_v4, %v155_v2  ;;  %v6575_v9 = vpack.c.bf16 %v162_v6, %v160_v5  ;;  %v159_v10 = vld [vmem:[%s8250_s1 + $0x20] sm:$0xff]  ;;  %v161_v11 = vld [vmem:[%s8250_s1 + $0x30] sm:$0xff] }
   0x4   :  { %6572 = vmatprep.subr.bf16.mxu1 %v6571_v3  ;;  %6564 = vmatprep.subr.bf16.mxu0 %v6571_v3  ;;  %v6577_v12 = vpack.c.bf16 %v161_v11, %v159_v10  ;;  %v5911_v13 = vld [vmem:[%s8249_s0 + $0x2] sm:$0x3]  ;;  %v46_v14 = vld [vmem:[%s8249_s0] sm:$0x3] }
   0x5   :  { %6574 = vmatpush1.bf16.msra.mxu1 %v6573_v8  ;;  %6566 = vmatpush1.bf16.msra.mxu0 %v6573_v8 }
   0x6   :  { %6576 = vmatprep.subr.bf16.mxu1 %v6575_v9  ;;  %6568 = vmatprep.subr.bf16.mxu0 %v6575_v9 }
   0x9   :  { %6578 = vmatpush1.bf16.msra.mxu1 %v6577_v12  ;;  %6570 = vmatpush1.bf16.msra.mxu0 %v6577_v12 }
   0xa   :  { %18 = vsyncpa [#allocation7], 0  ;;  %6588 = vmatprep.subr.bf16.mxu1 %v6571_v3  ;;  %6580 = vmatprep.subr.bf16.mxu0 %v6571_v3  ;;  %v5917_v15 = vld [vmem:[%s8249_s0 + $0x6] sm:$0x3]  ;;  %v5914_v16 = vld [vmem:[%s8249_s0 + $0x4] sm:$0x3]  ;;  %v56_v34 = vlaneseq }
   0xb   :  { %v5923_v17 = vld [vmem:[%s8249_s0 + $0xa] sm:$0x3]  ;;  %v5920_v18 = vld [vmem:[%s8249_s0 + $0x8] sm:$0x3]  ;;  %v836_v19 = vld [vmem:[%s8253_s4] sm:$0xff]  ;;  %v7263_v25 = vmov 0.0|0.0  }
   0xc   :  { %5912 = vmatmul.mubr.msk.f32.vlgmr.msra.gmra.mrb[0].mxu1 %vm66_vm0, %v5911_v13  ;;  %5909 = vmatmul.mubr.msk.f32.vlgmr.msra.gmra.mrb[0].mxu0 %vm66_vm0, %v46_v14  ;;  %v837_v20 = vld [vmem:[%s8253_s4 + $0x8] sm:$0xff]  ;;  %v832_v21 = vld [vmem:[%s8252_s3] sm:$0xff]  ;;  %v838_v26 = vld [vmem:[%s8253_s4 + $0x10] sm:$0xff]  ;;  %vm7264_vm1 = vmmov 0   ;;  %v7463_v35 = vshrl.u32 %v56_v34, 7  ;;  %vm1049_vm2 = vcmask 254976  }
   0xd   :  { %6590 = vmatpush1.bf16.msra.mxu1 %v6573_v8  ;;  %424 = vmatprep.mubr.f32.mxu1 %v7262_v7  ;;  %v833_v22 = vld [vmem:[%s8252_s3 + $0x8] sm:$0xff]  ;;  %v7410_v24 = vpack.c.bf16 %v837_v20, %v836_v19  ;;  %v839_v27 = vld [vmem:[%s8253_s4 + $0x18] sm:$0xff]  ;;  %v834_v30 = vld [vmem:[%s8252_s3 + $0x10] sm:$0xff]  ;;  %s7267_s4 = smov 64   ;;  %s7268_s19 = smov [#allocation6]   ;;  %vm5893_vm3 = vcmask 9216  }
   0xe   :  { %6592 = vmatprep.subr.bf16.mxu1 %v6575_v9  ;;  %6582 = vmatpush1.bf16.msra.mxu0 %v6573_v8  ;;  %v5929_v23 = vld [vmem:[%s8249_s0 + $0xe] sm:$0x3]  ;;  %v5926_v28 = vld [vmem:[%s8249_s0 + $0xc] sm:$0x3]  ;;  %v7422_v29 = vpack.c.bf16 %v833_v22, %v832_v21  ;;  %v835_v31 = vld [vmem:[%s8252_s3 + $0x18] sm:$0xff]  ;;  %v7433_v32 = vpack.c.bf16 %v839_v27, %v838_v26  ;;  %v58_v36 = vsub.s32 0, %v7463_v35 }
   0xf   :  { %6584 = vmatprep.subr.bf16.mxu0 %v6575_v9  ;;  %327 = vmatprep.mubr.f32.mxu0 %v7262_v7  ;;  %v7440_v33 = vpack.c.bf16 %v835_v31, %v834_v30  ;;  %v45_v37 = vld [vmem:[%s8251_s2] sm:$0x3]  ;;  %v62_v38 = vsub.s32 1, %v7463_v35  ;;  %s7265_s2 = smov 32   ;;  %s5901_s0 = sshll.u32 %s7268_s19, 4  ;;  %s5902_s0 = int_to_ptr.vmem [resolvable:$true] %s5901_s0 }
  0x10   :  { %v59_v39 = vrot.slane %v45_v37, %v58_v36  ;;  %p7243_p1 = scmp.lt.s32.totalorder %s5902_s0, %s5902_s0 }
  0x11   :  { %6594 = vmatpush1.bf16.msra.mxu1 %v6577_v12  ;;  %v63_v40 = vrot.slane %v45_v37, %v62_v38 }
  0x12   :  { %6604 = vmatprep.subr.bf16.mxu1 %v6571_v3  ;;  %6586 = vmatpush1.bf16.msra.mxu0 %v6577_v12 }
  0x13   :  { %6596 = vmatprep.subr.bf16.mxu0 %v6571_v3 }
  0x14   :  { %5918 = vmatmul.mubr.msk.f32.vlgmr.msra.gmra.mrb[2].mxu1 %vm66_vm0, %v5917_v15 }
  0x15   :  { %6606 = vmatpush1.bf16.msra.mxu1 %v6573_v8  ;;  %618 = vmatprep.mubr.f32.mxu1 %v7262_v7 }
  0x16   :  { %6608 = vmatprep.subr.bf16.mxu1 %v6575_v9  ;;  %5915 = vmatmul.mubr.msk.f32.vlgmr.msra.gmra.mrb[2].mxu0 %vm66_vm0, %v5914_v16 }
  0x17   :  { %6598 = vmatpush1.bf16.msra.mxu0 %v6573_v8  ;;  %521 = vmatprep.mubr.f32.mxu0 %v7262_v7 }
  0x18   :  { %6600 = vmatprep.subr.bf16.mxu0 %v6575_v9 }
  0x19   :  { %6610 = vmatpush1.bf16.msra.mxu1 %v6577_v12 }
  0x1a   :  { %6620 = vmatprep.subr.bf16.mxu1 %v6571_v3 }
  0x1b   :  { %6602 = vmatpush1.bf16.msra.mxu0 %v6577_v12 }
  0x1c   :  { %5924 = vmatmul.mubr.msk.f32.vlgmr.msra.gmra.mrb[4].mxu1 %vm66_vm0, %v5923_v17  ;;  %6612 = vmatprep.subr.bf16.mxu0 %v6571_v3 }
  0x1d   :  { %6622 = vmatpush1.bf16.msra.mxu1 %v6573_v8  ;;  %812 = vmatprep.mubr.f32.mxu1 %v7262_v7 }
  0x1e   :  { %6624 = vmatprep.subr.bf16.mxu1 %v6575_v9  ;;  %5921 = vmatmul.mubr.msk.f32.vlgmr.msra.gmra.mrb[4].mxu0 %vm66_vm0, %v5920_v18 }
  0x1f   :  { %6614 = vmatpush1.bf16.msra.mxu0 %v6573_v8  ;;  %715 = vmatprep.mubr.f32.mxu0 %v7262_v7 }
  0x20   :  { %6616 = vmatprep.subr.bf16.mxu0 %v6575_v9 }
  0x21   :  { %6626 = vmatpush1.bf16.msra.mxu1 %v6577_v12 }
  0x22   :  { %6633 = vmatprep.subr.bf16.mxu1 %v7263_v25 }
  0x23   :  { %6618 = vmatpush1.bf16.msra.mxu0 %v6577_v12 }
  0x24   :  { %5930 = vmatmul.mubr.msk.f32.vlgmr.msra.gmra.mrb[6].mxu1 %vm66_vm0, %v5929_v23  ;;  %6627 = vmatprep.subr.bf16.mxu0 %v7263_v25 }
  0x25   :  { %6635 = vmatpush3.bf16.msra.mxu1 %v7410_v24  ;;  %6208 = vmatprep.mubr.msk.f32.mxu1 %vm7264_vm1, %v7262_v7 }
  0x26   :  { %6636 = vmatprep.subr.bf16.mxu1 %v7263_v25  ;;  %5927 = vmatmul.mubr.msk.f32.vlgmr.msra.gmra.mrb[6].mxu0 %vm66_vm0, %v5926_v28 }
  0x27   :  { %6629 = vmatpush3.bf16.msra.mxu0 %v7422_v29  ;;  %6197 = vmatprep.mubr.msk.f32.mxu0 %vm7264_vm1, %v7262_v7 }
  0x28   :  { %6630 = vmatprep.subr.bf16.mxu0 %v7263_v25 }
  0x29   :  { %6638 = vmatpush3.bf16.msra.mxu1 %v7433_v32 }
  0x2a   :  { %6645 = vmatprep.subr.bf16.mxu1 %v7263_v25 }
  0x2b   :  { %6632 = vmatpush3.bf16.msra.mxu0 %v7440_v33 }
  0x2c   :  { %6209 = vmatmul.mubr.f32.vlgmr.msra.gmra.mrb[8].mxu1 %v7262_v7  ;;  %6639 = vmatprep.subr.bf16.mxu0 %v7263_v25 }
  0x2d   :  { %6647 = vmatpush3.bf16.msra.mxu1 %v7410_v24  ;;  %6230 = vmatprep.mubr.msk.f32.mxu1 %vm7264_vm1, %v7262_v7 }
  0x2e   :  { %6198 = vmatmul.mubr.f32.vlgmr.msra.gmra.mrb[8].mxu0 %v7262_v7  ;;  %6648 = vmatprep.subr.bf16.mxu1 %v7263_v25 }
  0x2f   :  { %6641 = vmatpush3.bf16.msra.mxu0 %v7422_v29  ;;  %6219 = vmatprep.mubr.msk.f32.mxu0 %vm7264_vm1, %v7262_v7 }
  0x30   :  { %6642 = vmatprep.subr.bf16.mxu0 %v7263_v25 }
  0x31   :  { %6650 = vmatpush3.bf16.msra.mxu1 %v7433_v32 }
  0x32   :  { %6657 = vmatprep.subr.bf16.mxu1 %v7263_v25 }
  0x33   :  { %6644 = vmatpush3.bf16.msra.mxu0 %v7440_v33 }
  0x34   :  { %6651 = vmatprep.subr.bf16.mxu0 %v7263_v25 }
  0xdf   :  { %v232_v41 = vpop.f32.mrb[0].mxu1  ;;  %v136_v42 = vpop.f32.mrb[0].mxu0 }
  0xe0   :  { %v233_v43 = vadd.f32 %v232_v41, %v59_v39  ;;  %v234_v44 = vpop.f32.mrb[1].mxu1  ;;  %v137_v45 = vadd.f32 %v136_v42, %v59_v39  ;;  %v138_v46 = vpop.f32.mrb[1].mxu0 }
  0xe1   :  { %v235_v47 = vadd.f32 %v234_v44, %v63_v40  ;;  %v139_v48 = vadd.f32 %v138_v46, %v63_v40 }
  0xe3   :  { %v239_v49 = vcombine.low %v233_v43, %v235_v47  ;;  %v143_v50 = vcombine.low %v137_v45, %v139_v48 }
  0xe5   :  { %5913 = vst.sshfl [vmem:[#allocation2 + $0x4] sm:$0x33 pattern:$0x76325410] %v239_v49 }
  0xe6   :  { %5910 = vst.sshfl [vmem:[#allocation2] sm:$0x33 pattern:$0x76325410] %v143_v50 }
  0xe7   :  { %v426_v51 = vpop.f32.mrb[2].mxu1 }
  0xe8   :  { %v427_v52 = vadd.f32 %v426_v51, %v59_v39  ;;  %v428_v53 = vpop.f32.mrb[3].mxu1 }
  0xe9   :  { %v429_v54 = vadd.f32 %v428_v53, %v63_v40  ;;  %v329_v55 = vpop.f32.mrb[2].mxu0 }
  0xea   :  { %v330_v56 = vadd.f32 %v329_v55, %v59_v39  ;;  %v331_v57 = vpop.f32.mrb[3].mxu0 }
  0xeb   :  { %v433_v58 = vcombine.low %v427_v52, %v429_v54  ;;  %v332_v59 = vadd.f32 %v331_v57, %v63_v40  ;;  %v7266_v57 = vmov 1983009808  }
  0xed   :  { %5919 = vst.sshfl [vmem:[#allocation2 + $0xc] sm:$0x33 pattern:$0x76325410] %v433_v58  ;;  %v336_v60 = vcombine.low %v330_v56, %v332_v59  ;;  %v840_v23 = vld [vmem:[#allocation2] sm:$0xf]  ;;  %v1040_v58 = vunpack.c.l.s4 %v7266_v57 }
  0xef   :  { %v620_v61 = vpop.f32.mrb[4].mxu1  ;;  %5916 = vst.sshfl [vmem:[#allocation2 + $0x8] sm:$0x33 pattern:$0x76325410] %v336_v60  ;;  %v1041_v59 = vunpack.c.0.s8 %v1040_v58 }
  0xf0   :  { %v621_v62 = vadd.f32 %v620_v61, %v59_v39  ;;  %v622_v63 = vpop.f32.mrb[5].mxu1 }
  0xf1   :  { %v623_v0 = vadd.f32 %v622_v63, %v63_v40  ;;  %v523_v1 = vpop.f32.mrb[4].mxu0  ;;  %v7487_v60 = vsub.s32 %v1041_v59, %v7463_v35 }
  0xf2   :  { %v524_v2 = vadd.f32 %v523_v1, %v59_v39  ;;  %v525_v3 = vpop.f32.mrb[5].mxu0 }
  0xf3   :  { %v627_v4 = vcombine.low %v621_v62, %v623_v0  ;;  %v526_v5 = vadd.f32 %v525_v3, %v63_v40 }
  0xf5   :  { %5925 = vst.sshfl [vmem:[#allocation2 + $0x14] sm:$0x33 pattern:$0x76325410] %v627_v4  ;;  %v530_v6 = vcombine.low %v524_v2, %v526_v5 }
  0xf6   :  { %v1289_v58 = vld [vmem:[#allocation2 + $0x8] sm:$0xf] }
  0xf7   :  { %v814_v8 = vpop.f32.mrb[6].mxu1  ;;  %5922 = vst.sshfl [vmem:[#allocation2 + $0x10] sm:$0x33 pattern:$0x76325410] %v530_v6 }
  0xf8   :  { %v815_v9 = vadd.f32 %v814_v8, %v59_v39  ;;  %v816_v10 = vpop.f32.mrb[7].mxu1 }
  0xf9   :  { %v817_v11 = vadd.f32 %v816_v10, %v63_v40  ;;  %v717_v12 = vpop.f32.mrb[6].mxu0 }
  0xfa   :  { %v718_v13 = vadd.f32 %v717_v12, %v59_v39  ;;  %v719_v14 = vpop.f32.mrb[7].mxu0 }
  0xfb   :  { %v821_v15 = vcombine.low %v815_v9, %v817_v11  ;;  %v720_v16 = vadd.f32 %v719_v14, %v63_v40  ;;  %v1064_v11 = vld [vmem:[#allocation2 + $0x4] sm:$0xf] }
  0xfd   :  { %5931 = vst.sshfl [vmem:[#allocation2 + $0x1c] sm:$0x33 pattern:$0x76325410] %v821_v15  ;;  %v724_v17 = vcombine.low %v718_v13, %v720_v16 }
  0xff   :  { %v982_v18 = vpop.f32.mrb[8].mxu1  ;;  %5928 = vst.sshfl [vmem:[#allocation2 + $0x18] sm:$0x33 pattern:$0x76325410] %v724_v17 }
 0x100   :  { %v6210_v19 = vpop.f32.mrb[9].mxu1 }
 0x101   :  { %v910_v20 = vpop.f32.mrb[8].mxu0 }
 0x102   :  { %v6199_v21 = vpop.f32.mrb[9].mxu0  ;;  %v914_v28 = vadd.f32 %v910_v20, %v840_v23 }
 0x104   :  { %v915_v22 = vld [vmem:[#allocation2 + $0x1c] sm:$0xf]  ;;  %v5932_v37 = vmul.f32 -1.442695, %v914_v28 }
 0x105   :  { %v987_v26 = vrot.slane %v915_v22, 2 }
 0x106   :  { %v1138_v5 = vld [vmem:[#allocation2 + $0x18] sm:$0xf] }
 0x107   :  { %v989_v27 = vadd.f32 %v987_v26, %v982_v18  ;;  %v1212_v6 = vrot.slane %v1138_v5, 2 }
 0x109   :  { %6982 = vtanh.f32 %v989_v27  ;;  %v5933_v34 = vmul.f32 -1.442695, %v989_v27 }
 0x10a   :  { %6984 = vtanh.f32 %v914_v28 }
 0x10b   :  { %6986 = vpow2.f32 %v5933_v34 }
 0x10c   :  { %6988 = vpow2.f32 %v5932_v37 }
 0x113   :  { %v6983_v30 = vpop.eup %6982 }
 0x114   :  { %1023 = vrot.lane.b32.xlu0 %v6983_v30, %s7265_s2  ;;  %v6985_v31 = vpop.eup %6984 }
 0x115   :  { %v6987_v39 = vpop.eup %6986 }
 0x116   :  { %v1017_v40 = vadd.f32 1.0, %v6987_v39  ;;  %v6989_v41 = vpop.eup %6988 }
 0x117   :  { %v993_v42 = vadd.f32 1.0, %v6989_v41 }
 0x118   :  { %999 = vrot.lane.b32.xlu0 %v6985_v31, %s7265_s2  ;;  %6990 = vrcp.f32 %v1017_v40 }
 0x119   :  { %6992 = vrcp.f32 %v993_v42 }
 0x122   :  { %v6991_v43 = vpop.eup %6990 }
 0x123   :  { %v6993_v46 = vpop.eup %6992  ;;  %v1021_v49 = vmul.f32 0.0, %v6991_v43 }
 0x124   :  { %v997_v52 = vmul.f32 0.0, %v6993_v46 }
 0x186   :  { %v1024_v44 = vpop.permute.xlu0 %1023 }
 0x187   :  { %v1026_v45 = vmul.f32 %v6991_v43, %v1024_v44 }
 0x189   :  { %1028 = vrot.lane.b32.xlu1 %v1026_v45, %s7265_s2 }
 0x18a   :  { %v1000_v47 = vpop.permute.xlu0 %999 }
 0x18b   :  { %v1002_v48 = vmul.f32 %v6993_v46, %v1000_v47 }
 0x18d   :  { %1004 = vrot.lane.b32.xlu1 %v1002_v48, %s7265_s2 }
 0x1fb   :  { %v1029_v50 = vpop.permute.xlu1 %1028 }
 0x1fc   :  { %v7478_v51 = vadd.f32 %v1029_v50, %v1021_v49 }
 0x1fe   :  { %6994 = vtanh.f32 %v7478_v51 }
 0x1ff   :  { %v1005_v53 = vpop.permute.xlu1 %1004 }
 0x200   :  { %v7481_v54 = vadd.f32 %v1005_v53, %v997_v52  ;;  %v1363_v53 = vld [vmem:[#allocation2 + $0x14] sm:$0xf] }
 0x202   :  { %6996 = vtanh.f32 %v7481_v54 }
 0x208   :  { %v6995_v55 = vpop.eup %6994 }
 0x209   :  { %1034 = vrot.lane.b32.xlu0 %v6995_v55, %s7265_s2 }
 0x20c   :  { %v6997_v56 = vpop.eup %6996 }
 0x20d   :  { %1010 = vrot.lane.b32.xlu1 %v6997_v56, %s7265_s2 }
 0x27b   :  { %v1035_v61 = vpop.permute.xlu0 %1034 }
 0x27c   :  { %v1037_v62 = vmul.f32 %v6991_v43, %v1035_v61 }
 0x27e   :  { %v1058_v63 = vrot.slane %v1037_v62, %v7487_v60 }
 0x27f   :  { %v1011_v0 = vpop.permute.xlu1 %1010 }
 0x280   :  { %v1013_v1 = vmul.f32 %v6993_v46, %v1011_v0  ;;  %1059 = vrot.lane.b32.xlu0 %v1058_v63, %s7267_s4 }
 0x282   :  { %v1045_v2 = vrot.slane %v1013_v1, %v7487_v60 }
 0x284   :  { %1046 = vrot.lane.b32.xlu1 %v1045_v2, %s7267_s4 }
 0x2f2   :  { %v1060_v3 = vpop.permute.xlu0 %1059 }
 0x2f3   :  { %1063 = vst.msk [vmem:[#allocation4 + $0xe] sm:$0x3] %vm1049_vm2, %v1060_v3  ;;  %6231 = vmatmul.mubr.msk.f32.vlgmr.msra.gmra.mrb[10].mxu1 %vm66_vm0, %v1060_v3 }
 0x2f4   :  { %6659 = vmatpush3.bf16.msra.mxu1 %v7410_v24  ;;  %6252 = vmatprep.mubr.msk.f32.mxu1 %vm7264_vm1, %v7262_v7 }
 0x2f5   :  { %6660 = vmatprep.subr.bf16.mxu1 %v7263_v25 }
 0x2f6   :  { %v1047_v4 = vpop.permute.xlu1 %1046 }
 0x2f7   :  { %1050 = vst.msk [vmem:[#allocation3] sm:$0x3] %vm1049_vm2, %v1047_v4  ;;  %6220 = vmatmul.mubr.msk.f32.vlgmr.msra.gmra.mrb[10].mxu0 %vm66_vm0, %v1047_v4 }
 0x2f8   :  { %6653 = vmatpush3.bf16.msra.mxu0 %v7422_v29  ;;  %6662 = vmatpush3.bf16.msra.mxu1 %v7433_v32 }
 0x2f9   :  { %6654 = vmatprep.subr.bf16.mxu0 %v7263_v25  ;;  %6241 = vmatprep.mubr.msk.f32.mxu0 %vm7264_vm1, %v7262_v7 }
 0x2fa   :  { %6669 = vmatprep.subr.bf16.mxu1 %v7263_v25 }
 0x2fc   :  { %6656 = vmatpush3.bf16.msra.mxu0 %v7440_v33 }
 0x2fd   :  { %6663 = vmatprep.subr.bf16.mxu0 %v7263_v25 }
 0x3c6   :  { %v1207_v8 = vpop.f32.mrb[10].mxu1 }
 0x3c7   :  { %v1214_v9 = vadd.f32 %v1212_v6, %v1207_v8  ;;  %v6232_v10 = vpop.f32.mrb[11].mxu1 }
 0x3c9   :  { %6998 = vtanh.f32 %v1214_v9  ;;  %v5937_v17 = vmul.f32 -1.442695, %v1214_v9 }
 0x3ca   :  { %v1133_v12 = vpop.f32.mrb[10].mxu0 }
 0x3cb   :  { %v1137_v13 = vadd.f32 %v1133_v12, %v1064_v11  ;;  %v6221_v14 = vpop.f32.mrb[11].mxu0 }
 0x3cd   :  { %7000 = vtanh.f32 %v1137_v13  ;;  %v5936_v18 = vmul.f32 -1.442695, %v1137_v13 }
 0x3ce   :  { %7002 = vpow2.f32 %v5937_v17 }
 0x3cf   :  { %7004 = vpow2.f32 %v5936_v18 }
 0x3d3   :  { %v6999_v15 = vpop.eup %6998 }
 0x3d4   :  { %1248 = vrot.lane.b32.xlu0 %v6999_v15, %s7265_s2 }
 0x3d7   :  { %v7001_v16 = vpop.eup %7000 }
 0x3d8   :  { %1224 = vrot.lane.b32.xlu1 %v7001_v16, %s7265_s2  ;;  %v7003_v19 = vpop.eup %7002 }
 0x3d9   :  { %v1242_v20 = vadd.f32 1.0, %v7003_v19  ;;  %v7005_v21 = vpop.eup %7004 }
 0x3da   :  { %v1218_v22 = vadd.f32 1.0, %v7005_v21 }
 0x3db   :  { %7006 = vrcp.f32 %v1242_v20 }
 0x3dc   :  { %7008 = vrcp.f32 %v1218_v22 }
 0x3e5   :  { %v7007_v23 = vpop.eup %7006 }
 0x3e6   :  { %v7009_v28 = vpop.eup %7008  ;;  %v1246_v34 = vmul.f32 %v7007_v23, %v7478_v51 }
 0x3e7   :  { %v1222_v40 = vmul.f32 %v7009_v28, %v7481_v54  ;;  %v1437_v54 = vrot.slane %v1363_v53, 2 }
 0x446   :  { %v1249_v26 = vpop.permute.xlu0 %1248 }
 0x447   :  { %v1251_v27 = vmul.f32 %v7007_v23, %v1249_v26 }
 0x449   :  { %1253 = vrot.lane.b32.xlu0 %v1251_v27, %s7265_s2 }
 0x44a   :  { %v1225_v30 = vpop.permute.xlu1 %1224 }
 0x44b   :  { %v1227_v31 = vmul.f32 %v7009_v28, %v1225_v30 }
 0x44d   :  { %1229 = vrot.lane.b32.xlu1 %v1227_v31, %s7265_s2 }
 0x4bb   :  { %v1254_v37 = vpop.permute.xlu0 %1253 }
 0x4bc   :  { %v7514_v39 = vadd.f32 %v1254_v37, %v1246_v34  ;;  %v1588_v37 = vld [vmem:[#allocation2 + $0x10] sm:$0xf] }
 0x4be   :  { %7010 = vtanh.f32 %v7514_v39 }
 0x4bf   :  { %v1230_v41 = vpop.permute.xlu1 %1229 }
 0x4c0   :  { %v7518_v42 = vadd.f32 %v1230_v41, %v1222_v40 }
 0x4c2   :  { %7012 = vtanh.f32 %v7518_v42 }
 0x4c8   :  { %v7011_v43 = vpop.eup %7010 }
 0x4c9   :  { %1259 = vrot.lane.b32.xlu0 %v7011_v43, %s7265_s2  ;;  %v1514_v43 = vld [vmem:[#allocation2 + $0xc] sm:$0xf] }
 0x4cc   :  { %v7013_v44 = vpop.eup %7012 }
 0x4cd   :  { %1235 = vrot.lane.b32.xlu1 %v7013_v44, %s7265_s2 }
 0x53b   :  { %v1260_v45 = vpop.permute.xlu0 %1259 }
 0x53c   :  { %v1262_v46 = vmul.f32 %v7007_v23, %v1260_v45 }
 0x53e   :  { %v1283_v47 = vrot.slane %v1262_v46, %v7487_v60 }
 0x53f   :  { %v1236_v48 = vpop.permute.xlu1 %1235 }
 0x540   :  { %v1238_v49 = vmul.f32 %v7009_v28, %v1236_v48  ;;  %1284 = vrot.lane.b32.xlu0 %v1283_v47, %s7267_s4 }
 0x542   :  { %v1270_v50 = vrot.slane %v1238_v49, %v7487_v60 }
 0x544   :  { %1271 = vrot.lane.b32.xlu1 %v1270_v50, %s7267_s4 }
 0x5b2   :  { %v1285_v51 = vpop.permute.xlu0 %1284 }
 0x5b3   :  { %1288 = vst.msk [vmem:[#allocation4 + $0xc] sm:$0x3] %vm1049_vm2, %v1285_v51  ;;  %6253 = vmatmul.mubr.msk.f32.vlgmr.msra.gmra.mrb[12].mxu1 %vm66_vm0, %v1285_v51 }
 0x5b4   :  { %6671 = vmatpush3.bf16.msra.mxu1 %v7410_v24  ;;  %6274 = vmatprep.mubr.msk.f32.mxu1 %vm7264_vm1, %v7262_v7 }
 0x5b5   :  { %6672 = vmatprep.subr.bf16.mxu1 %v7263_v25 }
 0x5b6   :  { %v1272_v52 = vpop.permute.xlu1 %1271 }
 0x5b7   :  { %1275 = vst.msk [vmem:[#allocation3 + $0x2] sm:$0x3] %vm1049_vm2, %v1272_v52  ;;  %6242 = vmatmul.mubr.msk.f32.vlgmr.msra.gmra.mrb[12].mxu0 %vm66_vm0, %v1272_v52 }
 0x5b8   :  { %6665 = vmatpush3.bf16.msra.mxu0 %v7422_v29  ;;  %6674 = vmatpush3.bf16.msra.mxu1 %v7433_v32 }
 0x5b9   :  { %6666 = vmatprep.subr.bf16.mxu0 %v7263_v25  ;;  %6263 = vmatprep.mubr.msk.f32.mxu0 %vm7264_vm1, %v7262_v7 }
 0x5ba   :  { %6681 = vmatprep.subr.bf16.mxu1 %v7263_v25 }
 0x5bc   :  { %6668 = vmatpush3.bf16.msra.mxu0 %v7440_v33 }
 0x5bd   :  { %6675 = vmatprep.subr.bf16.mxu0 %v7263_v25 }
 0x686   :  { %v1432_v55 = vpop.f32.mrb[12].mxu1 }
 0x687   :  { %v1439_v56 = vadd.f32 %v1437_v54, %v1432_v55  ;;  %v6254_v57 = vpop.f32.mrb[13].mxu1 }
 0x689   :  { %7014 = vtanh.f32 %v1439_v56  ;;  %v5941_v1 = vmul.f32 -1.442695, %v1439_v56 }
 0x68a   :  { %v1358_v59 = vpop.f32.mrb[12].mxu0 }
 0x68b   :  { %v1362_v61 = vadd.f32 %v1358_v59, %v1289_v58  ;;  %v6243_v62 = vpop.f32.mrb[13].mxu0 }
 0x68d   :  { %7016 = vtanh.f32 %v1362_v61  ;;  %v5940_v2 = vmul.f32 -1.442695, %v1362_v61 }
 0x68e   :  { %7018 = vpow2.f32 %v5941_v1 }
 0x68f   :  { %7020 = vpow2.f32 %v5940_v2 }
 0x693   :  { %v7015_v63 = vpop.eup %7014 }
 0x694   :  { %1473 = vrot.lane.b32.xlu0 %v7015_v63, %s7265_s2 }
 0x697   :  { %v7017_v0 = vpop.eup %7016 }
 0x698   :  { %1449 = vrot.lane.b32.xlu1 %v7017_v0, %s7265_s2  ;;  %v7019_v3 = vpop.eup %7018 }
 0x699   :  { %v1467_v4 = vadd.f32 1.0, %v7019_v3  ;;  %v7021_v5 = vpop.eup %7020 }
 0x69a   :  { %v1443_v6 = vadd.f32 1.0, %v7021_v5 }
 0x69b   :  { %7022 = vrcp.f32 %v1467_v4 }
 0x69c   :  { %7024 = vrcp.f32 %v1443_v6 }
 0x6a5   :  { %v7023_v8 = vpop.eup %7022 }
 0x6a6   :  { %v7025_v11 = vpop.eup %7024  ;;  %v1471_v14 = vmul.f32 %v7023_v8, %v7514_v39  ;;  %v1662_v39 = vrot.slane %v1588_v37, 2 }
 0x6a7   :  { %v1447_v17 = vmul.f32 %v7025_v11, %v7518_v42 }
 0x706   :  { %v1474_v9 = vpop.permute.xlu0 %1473 }
 0x707   :  { %v1476_v10 = vmul.f32 %v7023_v8, %v1474_v9 }
 0x709   :  { %1478 = vrot.lane.b32.xlu0 %v1476_v10, %s7265_s2 }
 0x70a   :  { %v1450_v12 = vpop.permute.xlu1 %1449 }
 0x70b   :  { %v1452_v13 = vmul.f32 %v7025_v11, %v1450_v12 }
 0x70d   :  { %1454 = vrot.lane.b32.xlu1 %v1452_v13, %s7265_s2 }
 0x77b   :  { %v1479_v15 = vpop.permute.xlu0 %1478 }
 0x77c   :  { %v7548_v16 = vadd.f32 %v1479_v15, %v1471_v14  ;;  %v1813_v15 = vld [vmem:[#allocation2 + $0xc] sm:$0xf] }
 0x77e   :  { %7026 = vtanh.f32 %v7548_v16 }
 0x77f   :  { %v1455_v18 = vpop.permute.xlu1 %1454 }
 0x780   :  { %v7552_v19 = vadd.f32 %v1455_v18, %v1447_v17 }
 0x782   :  { %7028 = vtanh.f32 %v7552_v19 }
 0x788   :  { %v7027_v20 = vpop.eup %7026 }
 0x789   :  { %1484 = vrot.lane.b32.xlu0 %v7027_v20, %s7265_s2  ;;  %v1739_v20 = vld [vmem:[#allocation2 + $0x10] sm:$0xf] }
 0x78c   :  { %v7029_v21 = vpop.eup %7028 }
 0x78d   :  { %1460 = vrot.lane.b32.xlu1 %v7029_v21, %s7265_s2 }
 0x7fb   :  { %v1485_v22 = vpop.permute.xlu0 %1484 }
 0x7fc   :  { %v1487_v23 = vmul.f32 %v7023_v8, %v1485_v22 }
 0x7fe   :  { %v1508_v26 = vrot.slane %v1487_v23, %v7487_v60 }
 0x7ff   :  { %v1461_v27 = vpop.permute.xlu1 %1460 }
 0x800   :  { %v1463_v28 = vmul.f32 %v7025_v11, %v1461_v27  ;;  %1509 = vrot.lane.b32.xlu0 %v1508_v26, %s7267_s4 }
 0x802   :  { %v1495_v30 = vrot.slane %v1463_v28, %v7487_v60 }
 0x804   :  { %1496 = vrot.lane.b32.xlu1 %v1495_v30, %s7267_s4 }
 0x872   :  { %v1510_v31 = vpop.permute.xlu0 %1509 }
 0x873   :  { %1513 = vst.msk [vmem:[#allocation4 + $0xa] sm:$0x3] %vm1049_vm2, %v1510_v31  ;;  %6275 = vmatmul.mubr.msk.f32.vlgmr.msra.gmra.mrb[14].mxu1 %vm66_vm0, %v1510_v31 }
 0x874   :  { %6683 = vmatpush3.bf16.msra.mxu1 %v7410_v24  ;;  %6296 = vmatprep.mubr.msk.f32.mxu1 %vm7264_vm1, %v7262_v7 }
 0x875   :  { %6684 = vmatprep.subr.bf16.mxu1 %v7263_v25 }
 0x876   :  { %v1497_v34 = vpop.permute.xlu1 %1496 }
 0x877   :  { %1500 = vst.msk [vmem:[#allocation3 + $0x4] sm:$0x3] %vm1049_vm2, %v1497_v34  ;;  %6264 = vmatmul.mubr.msk.f32.vlgmr.msra.gmra.mrb[14].mxu0 %vm66_vm0, %v1497_v34 }
 0x878   :  { %6677 = vmatpush3.bf16.msra.mxu0 %v7422_v29  ;;  %6686 = vmatpush3.bf16.msra.mxu1 %v7433_v32 }
 0x879   :  { %6678 = vmatprep.subr.bf16.mxu0 %v7263_v25  ;;  %6285 = vmatprep.mubr.msk.f32.mxu0 %vm7264_vm1, %v7262_v7 }
 0x87a   :  { %6693 = vmatprep.subr.bf16.mxu1 %v7263_v25 }
 0x87c   :  { %6680 = vmatpush3.bf16.msra.mxu0 %v7440_v33 }
 0x87d   :  { %6687 = vmatprep.subr.bf16.mxu0 %v7263_v25 }
 0x946   :  { %v1657_v40 = vpop.f32.mrb[14].mxu1 }
 0x947   :  { %v1664_v41 = vadd.f32 %v1662_v39, %v1657_v40  ;;  %v6276_v42 = vpop.f32.mrb[15].mxu1 }
 0x949   :  { %7030 = vtanh.f32 %v1664_v41  ;;  %v5945_v49 = vmul.f32 -1.442695, %v1664_v41 }
 0x94a   :  { %v1583_v44 = vpop.f32.mrb[14].mxu0 }
 0x94b   :  { %v1587_v45 = vadd.f32 %v1583_v44, %v1514_v43  ;;  %v6265_v46 = vpop.f32.mrb[15].mxu0 }
 0x94d   :  { %7032 = vtanh.f32 %v1587_v45  ;;  %v5944_v50 = vmul.f32 -1.442695, %v1587_v45 }
 0x94e   :  { %7034 = vpow2.f32 %v5945_v49 }
 0x94f   :  { %7036 = vpow2.f32 %v5944_v50 }
 0x953   :  { %v7031_v47 = vpop.eup %7030 }
 0x954   :  { %1698 = vrot.lane.b32.xlu0 %v7031_v47, %s7265_s2 }
 0x957   :  { %v7033_v48 = vpop.eup %7032 }
 0x958   :  { %1674 = vrot.lane.b32.xlu1 %v7033_v48, %s7265_s2  ;;  %v7035_v51 = vpop.eup %7034 }
 0x959   :  { %v1692_v52 = vadd.f32 1.0, %v7035_v51  ;;  %v7037_v53 = vpop.eup %7036 }
 0x95a   :  { %v1668_v54 = vadd.f32 1.0, %v7037_v53 }
 0x95b   :  { %7038 = vrcp.f32 %v1692_v52 }
 0x95c   :  { %7040 = vrcp.f32 %v1668_v54 }
 0x965   :  { %v7039_v55 = vpop.eup %7038 }
 0x966   :  { %v7041_v58 = vpop.eup %7040  ;;  %v1696_v62 = vmul.f32 %v7039_v55, %v7548_v16  ;;  %v1887_v16 = vrot.slane %v1813_v15, 2 }
 0x967   :  { %v1672_v1 = vmul.f32 %v7041_v58, %v7552_v19 }
 0x9c6   :  { %v1699_v56 = vpop.permute.xlu0 %1698 }
 0x9c7   :  { %v1701_v57 = vmul.f32 %v7039_v55, %v1699_v56 }
 0x9c9   :  { %1703 = vrot.lane.b32.xlu0 %v1701_v57, %s7265_s2 }
 0x9ca   :  { %v1675_v59 = vpop.permute.xlu1 %1674 }
 0x9cb   :  { %v1677_v61 = vmul.f32 %v7041_v58, %v1675_v59 }
 0x9cd   :  { %1679 = vrot.lane.b32.xlu1 %v1677_v61, %s7265_s2 }
 0xa3b   :  { %v1704_v63 = vpop.permute.xlu0 %1703 }
 0xa3c   :  { %v7582_v0 = vadd.f32 %v1704_v63, %v1696_v62  ;;  %v2038_v63 = vld [vmem:[#allocation2 + $0x8] sm:$0xf] }
 0xa3e   :  { %7042 = vtanh.f32 %v7582_v0 }
 0xa3f   :  { %v1680_v2 = vpop.permute.xlu1 %1679 }
 0xa40   :  { %v7586_v3 = vadd.f32 %v1680_v2, %v1672_v1 }
 0xa42   :  { %7044 = vtanh.f32 %v7586_v3 }
 0xa48   :  { %v7043_v4 = vpop.eup %7042 }
 0xa49   :  { %1709 = vrot.lane.b32.xlu0 %v7043_v4, %s7265_s2  ;;  %v1964_v4 = vld [vmem:[#allocation2 + $0x14] sm:$0xf] }
 0xa4c   :  { %v7045_v5 = vpop.eup %7044 }
 0xa4d   :  { %1685 = vrot.lane.b32.xlu1 %v7045_v5, %s7265_s2 }
 0xabb   :  { %v1710_v6 = vpop.permute.xlu0 %1709 }
 0xabc   :  { %v1712_v8 = vmul.f32 %v7039_v55, %v1710_v6 }
 0xabe   :  { %v1733_v9 = vrot.slane %v1712_v8, %v7487_v60 }
 0xabf   :  { %v1686_v10 = vpop.permute.xlu1 %1685 }
 0xac0   :  { %v1688_v11 = vmul.f32 %v7041_v58, %v1686_v10  ;;  %1734 = vrot.lane.b32.xlu0 %v1733_v9, %s7267_s4 }
 0xac2   :  { %v1720_v12 = vrot.slane %v1688_v11, %v7487_v60 }
 0xac4   :  { %1721 = vrot.lane.b32.xlu1 %v1720_v12, %s7267_s4 }
 0xb32   :  { %v1735_v13 = vpop.permute.xlu0 %1734 }
 0xb33   :  { %1738 = vst.msk [vmem:[#allocation4 + $0x8] sm:$0x3] %vm1049_vm2, %v1735_v13  ;;  %6297 = vmatmul.mubr.msk.f32.vlgmr.msra.gmra.mrb[16].mxu1 %vm66_vm0, %v1735_v13 }
 0xb34   :  { %6695 = vmatpush3.bf16.msra.mxu1 %v7410_v24  ;;  %6318 = vmatprep.mubr.msk.f32.mxu1 %vm7264_vm1, %v7262_v7 }
 0xb35   :  { %6696 = vmatprep.subr.bf16.mxu1 %v7263_v25 }
 0xb36   :  { %v1722_v14 = vpop.permute.xlu1 %1721 }
 0xb37   :  { %1725 = vst.msk [vmem:[#allocation3 + $0x6] sm:$0x3] %vm1049_vm2, %v1722_v14  ;;  %6286 = vmatmul.mubr.msk.f32.vlgmr.msra.gmra.mrb[16].mxu0 %vm66_vm0, %v1722_v14 }
 0xb38   :  { %6689 = vmatpush3.bf16.msra.mxu0 %v7422_v29  ;;  %6698 = vmatpush3.bf16.msra.mxu1 %v7433_v32 }
 0xb39   :  { %6690 = vmatprep.subr.bf16.mxu0 %v7263_v25  ;;  %6307 = vmatprep.mubr.msk.f32.mxu0 %vm7264_vm1, %v7262_v7 }
 0xb3a   :  { %6705 = vmatprep.subr.bf16.mxu1 %v7263_v25 }
 0xb3c   :  { %6692 = vmatpush3.bf16.msra.mxu0 %v7440_v33 }
 0xb3d   :  { %6699 = vmatprep.subr.bf16.mxu0 %v7263_v25 }
 0xc06   :  { %v1882_v17 = vpop.f32.mrb[16].mxu1 }
 0xc07   :  { %v1889_v18 = vadd.f32 %v1887_v16, %v1882_v17  ;;  %v6298_v19 = vpop.f32.mrb[17].mxu1 }
 0xc09   :  { %7046 = vtanh.f32 %v1889_v18  ;;  %v5949_v28 = vmul.f32 -1.442695, %v1889_v18 }
 0xc0a   :  { %v1808_v21 = vpop.f32.mrb[16].mxu0 }
 0xc0b   :  { %v1812_v22 = vadd.f32 %v1808_v21, %v1739_v20  ;;  %v6287_v23 = vpop.f32.mrb[17].mxu0 }
 0xc0d   :  { %7048 = vtanh.f32 %v1812_v22  ;;  %v5948_v30 = vmul.f32 -1.442695, %v1812_v22 }
 0xc0e   :  { %7050 = vpow2.f32 %v5949_v28 }
 0xc0f   :  { %7052 = vpow2.f32 %v5948_v30 }
 0xc13   :  { %v7047_v26 = vpop.eup %7046 }
 0xc14   :  { %1923 = vrot.lane.b32.xlu0 %v7047_v26, %s7265_s2 }
 0xc17   :  { %v7049_v27 = vpop.eup %7048 }
 0xc18   :  { %1899 = vrot.lane.b32.xlu1 %v7049_v27, %s7265_s2  ;;  %v7051_v31 = vpop.eup %7050 }
 0xc19   :  { %v1917_v34 = vadd.f32 1.0, %v7051_v31  ;;  %v7053_v37 = vpop.eup %7052 }
 0xc1a   :  { %v1893_v39 = vadd.f32 1.0, %v7053_v37 }
 0xc1b   :  { %7054 = vrcp.f32 %v1917_v34 }
 0xc1c   :  { %7056 = vrcp.f32 %v1893_v39 }
 0xc25   :  { %v7055_v40 = vpop.eup %7054 }
 0xc26   :  { %v7057_v43 = vpop.eup %7056  ;;  %v1921_v46 = vmul.f32 %v7055_v40, %v7582_v0  ;;  %v2112_v0 = vrot.slane %v2038_v63, 2 }
 0xc27   :  { %v1897_v49 = vmul.f32 %v7057_v43, %v7586_v3 }
 0xc86   :  { %v1924_v41 = vpop.permute.xlu0 %1923 }
 0xc87   :  { %v1926_v42 = vmul.f32 %v7055_v40, %v1924_v41 }
 0xc89   :  { %1928 = vrot.lane.b32.xlu0 %v1926_v42, %s7265_s2 }
 0xc8a   :  { %v1900_v44 = vpop.permute.xlu1 %1899 }
 0xc8b   :  { %v1902_v45 = vmul.f32 %v7057_v43, %v1900_v44 }
 0xc8d   :  { %1904 = vrot.lane.b32.xlu1 %v1902_v45, %s7265_s2 }
 0xcfb   :  { %v1929_v47 = vpop.permute.xlu0 %1928 }
 0xcfc   :  { %v7616_v48 = vadd.f32 %v1929_v47, %v1921_v46 }
 0xcfe   :  { %7058 = vtanh.f32 %v7616_v48 }
 0xcff   :  { %v1905_v50 = vpop.permute.xlu1 %1904 }
 0xd00   :  { %v7620_v51 = vadd.f32 %v1905_v50, %v1897_v49 }
 0xd02   :  { %7060 = vtanh.f32 %v7620_v51 }
 0xd08   :  { %v7059_v52 = vpop.eup %7058 }
 0xd09   :  { %1934 = vrot.lane.b32.xlu0 %v7059_v52, %s7265_s2 }
 0xd0c   :  { %v7061_v53 = vpop.eup %7060 }
 0xd0d   :  { %1910 = vrot.lane.b32.xlu1 %v7061_v53, %s7265_s2 }
 0xd7b   :  { %v1935_v54 = vpop.permute.xlu0 %1934 }
 0xd7c   :  { %v1937_v55 = vmul.f32 %v7055_v40, %v1935_v54 }
 0xd7e   :  { %v1958_v56 = vrot.slane %v1937_v55, %v7487_v60 }
 0xd7f   :  { %v1911_v57 = vpop.permute.xlu1 %1910 }
 0xd80   :  { %v1913_v58 = vmul.f32 %v7057_v43, %v1911_v57  ;;  %1959 = vrot.lane.b32.xlu0 %v1958_v56, %s7267_s4 }
 0xd82   :  { %v1945_v59 = vrot.slane %v1913_v58, %v7487_v60 }
 0xd84   :  { %1946 = vrot.lane.b32.xlu1 %v1945_v59, %s7267_s4 }
 0xdf2   :  { %v1960_v61 = vpop.permute.xlu0 %1959 }
 0xdf3   :  { %1963 = vst.msk [vmem:[#allocation4 + $0x6] sm:$0x3] %vm1049_vm2, %v1960_v61  ;;  %6319 = vmatmul.mubr.msk.f32.vlgmr.msra.gmra.mrb[18].mxu1 %vm66_vm0, %v1960_v61 }
 0xdf4   :  { %6707 = vmatpush3.bf16.msra.mxu1 %v7410_v24  ;;  %6340 = vmatprep.mubr.msk.f32.mxu1 %vm7264_vm1, %v7262_v7 }
 0xdf5   :  { %6708 = vmatprep.subr.bf16.mxu1 %v7263_v25 }
 0xdf6   :  { %v1947_v62 = vpop.permute.xlu1 %1946 }
 0xdf7   :  { %1950 = vst.msk [vmem:[#allocation3 + $0x8] sm:$0x3] %vm1049_vm2, %v1947_v62  ;;  %6308 = vmatmul.mubr.msk.f32.vlgmr.msra.gmra.mrb[18].mxu0 %vm66_vm0, %v1947_v62 }
 0xdf8   :  { %6701 = vmatpush3.bf16.msra.mxu0 %v7422_v29  ;;  %6710 = vmatpush3.bf16.msra.mxu1 %v7433_v32 }
 0xdf9   :  { %6702 = vmatprep.subr.bf16.mxu0 %v7263_v25  ;;  %6329 = vmatprep.mubr.msk.f32.mxu0 %vm7264_vm1, %v7262_v7 }
 0xdfa   :  { %6717 = vmatprep.subr.bf16.mxu1 %v7263_v25 }
 0xdfc   :  { %6704 = vmatpush3.bf16.msra.mxu0 %v7440_v33 }
 0xdfd   :  { %6711 = vmatprep.subr.bf16.mxu0 %v7263_v25 }
 0xec6   :  { %v2107_v1 = vpop.f32.mrb[18].mxu1 }
 0xec7   :  { %v2114_v2 = vadd.f32 %v2112_v0, %v2107_v1  ;;  %v6320_v3 = vpop.f32.mrb[19].mxu1 }
 0xec9   :  { %7062 = vtanh.f32 %v2114_v2  ;;  %v5953_v11 = vmul.f32 -1.442695, %v2114_v2 }
 0xeca   :  { %v2033_v5 = vpop.f32.mrb[18].mxu0 }
 0xecb   :  { %v2037_v6 = vadd.f32 %v2033_v5, %v1964_v4  ;;  %v6309_v8 = vpop.f32.mrb[19].mxu0 }
 0xecd   :  { %7064 = vtanh.f32 %v2037_v6  ;;  %v5952_v12 = vmul.f32 -1.442695, %v2037_v6 }
 0xece   :  { %7066 = vpow2.f32 %v5953_v11  ;;  %v2650_v11 = vld [vmem:[%s8255_s6 + $0x18] sm:$0xff] }
 0xecf   :  { %7068 = vpow2.f32 %v5952_v12 }
 0xed3   :  { %v7063_v9 = vpop.eup %7062 }
 0xed4   :  { %2148 = vrot.lane.b32.xlu0 %v7063_v9, %s7265_s2 }
 0xed7   :  { %v7065_v10 = vpop.eup %7064 }
 0xed8   :  { %2124 = vrot.lane.b32.xlu1 %v7065_v10, %s7265_s2  ;;  %v7067_v13 = vpop.eup %7066  ;;  %v2648_v10 = vld [vmem:[%s8255_s6 + $0x8] sm:$0xff] }
 0xed9   :  { %v2142_v14 = vadd.f32 1.0, %v7067_v13  ;;  %v7069_v15 = vpop.eup %7068  ;;  %v7695_v12 = vpack.c.bf16 %v2650_v11, %v2648_v10 }
 0xeda   :  { %v2118_v16 = vadd.f32 1.0, %v7069_v15 }
 0xedb   :  { %7070 = vrcp.f32 %v2142_v14 }
 0xedc   :  { %7072 = vrcp.f32 %v2118_v16 }
 0xee5   :  { %v7071_v17 = vpop.eup %7070 }
 0xee6   :  { %v7073_v20 = vpop.eup %7072  ;;  %v2146_v23 = vmul.f32 %v7071_v17, %v7616_v48 }
 0xee7   :  { %v2122_v28 = vmul.f32 %v7073_v20, %v7620_v51  ;;  %v2189_v51 = vld [vmem:[#allocation2 + $0x18] sm:$0xf] }
 0xf46   :  { %v2149_v18 = vpop.permute.xlu0 %2148 }
 0xf47   :  { %v2151_v19 = vmul.f32 %v7071_v17, %v2149_v18 }
 0xf49   :  { %2153 = vrot.lane.b32.xlu0 %v2151_v19, %s7265_s2 }
 0xf4a   :  { %v2125_v21 = vpop.permute.xlu1 %2124 }
 0xf4b   :  { %v2127_v22 = vmul.f32 %v7073_v20, %v2125_v21  ;;  %v2647_v21 = vld [vmem:[%s8255_s6] sm:$0xff] }
 0xf4d   :  { %2129 = vrot.lane.b32.xlu1 %v2127_v22, %s7265_s2  ;;  %v2649_v22 = vld [vmem:[%s8255_s6 + $0x10] sm:$0xff] }
 0xfbb   :  { %v2154_v26 = vpop.permute.xlu0 %2153 }
 0xfbc   :  { %v7650_v27 = vadd.f32 %v2154_v26, %v2146_v23  ;;  %v2652_v23 = vld [vmem:[%s8255_s6 + $0x28] sm:$0xff]  ;;  %v2654_v26 = vld [vmem:[%s8255_s6 + $0x38] sm:$0xff] }
 0xfbe   :  { %7074 = vtanh.f32 %v7650_v27 }
 0xfbf   :  { %v2130_v30 = vpop.permute.xlu1 %2129 }
 0xfc0   :  { %v7654_v31 = vadd.f32 %v2130_v30, %v2122_v28  ;;  %v7719_v28 = vpack.c.bf16 %v2654_v26, %v2652_v23  ;;  %v2651_v30 = vld [vmem:[%s8255_s6 + $0x20] sm:$0xff] }
 0xfc2   :  { %7076 = vtanh.f32 %v7654_v31 }
 0xfc8   :  { %v7075_v34 = vpop.eup %7074 }
 0xfc9   :  { %2159 = vrot.lane.b32.xlu0 %v7075_v34, %s7265_s2 }
 0xfcc   :  { %v7077_v37 = vpop.eup %7076 }
 0xfcd   :  { %2135 = vrot.lane.b32.xlu1 %v7077_v37, %s7265_s2  ;;  %v2640_v37 = vld [vmem:[%s8254_s5 + $0x8] sm:$0xff] }
0x103b   :  { %v2160_v39 = vpop.permute.xlu0 %2159 }
0x103c   :  { %v2162_v40 = vmul.f32 %v7071_v17, %v2160_v39  ;;  %v2642_v39 = vld [vmem:[%s8254_s5 + $0x18] sm:$0xff] }
0x103e   :  { %v2183_v41 = vrot.slane %v2162_v40, %v7487_v60 }
0x103f   :  { %v2136_v42 = vpop.permute.xlu1 %2135 }
0x1040   :  { %v2138_v43 = vmul.f32 %v7073_v20, %v2136_v42  ;;  %2184 = vrot.lane.b32.xlu0 %v2183_v41, %s7267_s4  ;;  %v7740_v41 = vpack.c.bf16 %v2642_v39, %v2640_v37  ;;  %v2639_v42 = vld [vmem:[%s8254_s5] sm:$0xff] }
0x1042   :  { %v2170_v44 = vrot.slane %v2138_v43, %v7487_v60  ;;  %v2641_v43 = vld [vmem:[%s8254_s5 + $0x10] sm:$0xff] }
0x1044   :  { %2171 = vrot.lane.b32.xlu1 %v2170_v44, %s7267_s4 }
0x10b2   :  { %v2185_v45 = vpop.permute.xlu0 %2184 }
0x10b3   :  { %2188 = vst.msk [vmem:[#allocation4 + $0x4] sm:$0x3] %vm1049_vm2, %v2185_v45  ;;  %6341 = vmatmul.mubr.msk.f32.vlgmr.msra.gmra.mrb[20].mxu1 %vm66_vm0, %v2185_v45  ;;  %v2644_v45 = vld [vmem:[%s8254_s5 + $0x28] sm:$0xff] }
0x10b4   :  { %6719 = vmatpush3.bf16.msra.mxu1 %v7410_v24  ;;  %6362 = vmatprep.mubr.msk.f32.mxu1 %vm7264_vm1, %v7262_v7  ;;  %v2263_v24 = vld [vmem:[#allocation2 + $0x4] sm:$0xf] }
0x10b5   :  { %6720 = vmatprep.subr.bf16.mxu1 %v7263_v25  ;;  %v2337_v47 = vrot.slane %v2263_v24, 2  ;;  %v7757_v24 = vpack.c.bf16 %v2641_v43, %v2639_v42 }
0x10b6   :  { %v2172_v46 = vpop.permute.xlu1 %2171 }
0x10b7   :  { %2175 = vst.msk [vmem:[#allocation3 + $0xa] sm:$0x3] %vm1049_vm2, %v2172_v46  ;;  %6330 = vmatmul.mubr.msk.f32.vlgmr.msra.gmra.mrb[20].mxu0 %vm66_vm0, %v2172_v46  ;;  %v2646_v46 = vld [vmem:[%s8254_s5 + $0x38] sm:$0xff] }
0x10b8   :  { %6722 = vmatpush3.bf16.msra.mxu1 %v7433_v32  ;;  %6713 = vmatpush3.bf16.msra.mxu0 %v7422_v29 }
0x10b9   :  { %6714 = vmatprep.subr.bf16.mxu0 %v7263_v25  ;;  %6351 = vmatprep.mubr.msk.f32.mxu0 %vm7264_vm1, %v7262_v7 }
0x10ba   :  { %6740 = vmatprep.subr.bf16.mxu1 %v7695_v12 }
0x10bc   :  { %6716 = vmatpush3.bf16.msra.mxu0 %v7440_v33 }
0x10bd   :  { %6724 = vmatprep.subr.bf16.mxu0 %v7695_v12 }
0x1186   :  { %v2332_v48 = vpop.f32.mrb[20].mxu1 }
0x1187   :  { %v2339_v49 = vadd.f32 %v2337_v47, %v2332_v48  ;;  %v6342_v50 = vpop.f32.mrb[21].mxu1  ;;  %v7761_v47 = vpack.c.bf16 %v2646_v46, %v2644_v45  ;;  %v2643_v48 = vld [vmem:[%s8254_s5 + $0x20] sm:$0xff] }
0x1189   :  { %7078 = vtanh.f32 %v2339_v49  ;;  %v5957_v55 = vmul.f32 -1.442695, %v2339_v49  ;;  %v2645_v49 = vld [vmem:[%s8254_s5 + $0x30] sm:$0xff] }
0x118a   :  { %v2258_v52 = vpop.f32.mrb[20].mxu0 }
0x118b   :  { %v2262_v53 = vadd.f32 %v2258_v52, %v2189_v51  ;;  %v6331_v54 = vpop.f32.mrb[21].mxu0  ;;  %v7773_v51 = vpack.c.bf16 %v2645_v49, %v2643_v48  ;;  %v2830_v52 = vld [vmem:[#allocation3 + $0x2] sm:$0x3] }
0x118c   :  { %v3160_v54 = vld [vmem:[#allocation3 + $0x6] sm:$0x3] }
0x118d   :  { %7080 = vtanh.f32 %v2262_v53  ;;  %v5956_v33 = vmul.f32 -1.442695, %v2262_v53  ;;  %v3161_v53 = vld [vmem:[#allocation4 + $0x6] sm:$0x3] }
0x118e   :  { %7082 = vpow2.f32 %v5957_v55  ;;  %v3821_v55 = vld [vmem:[#allocation4 + $0xe] sm:$0x3] }
0x118f   :  { %7084 = vpow2.f32 %v5956_v33  ;;  %v2488_v33 = vld [vmem:[#allocation2] sm:$0xf] }
0x1193   :  { %v7079_v32 = vpop.eup %7078 }
0x1194   :  { %2373 = vrot.lane.b32.xlu0 %v7079_v32, %s7265_s2  ;;  %v3491_v32 = vld [vmem:[#allocation4 + $0xa] sm:$0x3] }
0x1197   :  { %v7081_v29 = vpop.eup %7080 }
0x1198   :  { %2349 = vrot.lane.b32.xlu1 %v7081_v29, %s7265_s2  ;;  %v7083_v56 = vpop.eup %7082  ;;  %v3490_v29 = vld [vmem:[#allocation3 + $0xa] sm:$0x3] }
0x1199   :  { %v2367_v57 = vadd.f32 1.0, %v7083_v56  ;;  %v7085_v58 = vpop.eup %7084  ;;  %v2562_v56 = vrot.slane %v2488_v33, 2 }
0x119a   :  { %v2343_v59 = vadd.f32 1.0, %v7085_v58 }
0x119b   :  { %7086 = vrcp.f32 %v2367_v57 }
0x119c   :  { %7088 = vrcp.f32 %v2343_v59 }
0x11a5   :  { %v7087_v61 = vpop.eup %7086 }
0x11a6   :  { %v7089_v0 = vpop.eup %7088  ;;  %v2371_v3 = vmul.f32 %v7087_v61, %v7650_v27  ;;  %v7717_v27 = vpack.c.bf16 %v2649_v22, %v2647_v21 }
0x11a7   :  { %v2347_v6 = vmul.f32 %v7089_v0, %v7654_v31  ;;  %v2653_v31 = vld [vmem:[%s8255_s6 + $0x30] sm:$0xff] }
0x11a8   :  { %v7736_v40 = vpack.c.bf16 %v2653_v31, %v2651_v30 }
0x1206   :  { %v2374_v62 = vpop.permute.xlu0 %2373 }
0x1207   :  { %v2376_v63 = vmul.f32 %v7087_v61, %v2374_v62 }
0x1209   :  { %2378 = vrot.lane.b32.xlu0 %v2376_v63, %s7265_s2 }
0x120a   :  { %v2350_v1 = vpop.permute.xlu1 %2349 }
0x120b   :  { %v2352_v2 = vmul.f32 %v7089_v0, %v2350_v1  ;;  %v2638_v1 = vld [vmem:[%s8256_s7] sm:$0x3] }
0x120d   :  { %2354 = vrot.lane.b32.xlu1 %v2352_v2, %s7265_s2 }
0x127b   :  { %v2379_v4 = vpop.permute.xlu0 %2378 }
0x127c   :  { %v7682_v5 = vadd.f32 %v2379_v4, %v2371_v3  ;;  %v7822_v3 = vrot.slane %v2638_v1, %v58_v36  ;;  %v7827_v4 = vrot.slane %v2638_v1, %v62_v38  ;;  %v3991_v1 = vld [vmem:[%s8258_s9 + $0x10] sm:$0xff] }
0x127e   :  { %7090 = vtanh.f32 %v7682_v5 }
0x127f   :  { %v2355_v8 = vpop.permute.xlu1 %2354 }
0x1280   :  { %v7686_v9 = vadd.f32 %v2355_v8, %v2347_v6 }
0x1282   :  { %7092 = vtanh.f32 %v7686_v9 }
0x1288   :  { %v7091_v13 = vpop.eup %7090 }
0x1289   :  { %2384 = vrot.lane.b32.xlu0 %v7091_v13, %s7265_s2 }
0x128c   :  { %v7093_v14 = vpop.eup %7092 }
0x128d   :  { %2360 = vrot.lane.b32.xlu1 %v7093_v14, %s7265_s2 }
0x12fb   :  { %v2385_v15 = vpop.permute.xlu0 %2384 }
0x12fc   :  { %v2387_v16 = vmul.f32 %v7087_v61, %v2385_v15  ;;  %v2414_v61 = vld [vmem:[#allocation2 + $0x1c] sm:$0xf] }
0x12fe   :  { %v2408_v17 = vrot.slane %v2387_v16, %v7487_v60 }
0x12ff   :  { %v2361_v18 = vpop.permute.xlu1 %2360 }
0x1300   :  { %v2363_v19 = vmul.f32 %v7089_v0, %v2361_v18  ;;  %2409 = vrot.lane.b32.xlu0 %v2408_v17, %s7267_s4 }
0x1302   :  { %v2395_v20 = vrot.slane %v2363_v19, %v7487_v60 }
0x1304   :  { %2396 = vrot.lane.b32.xlu1 %v2395_v20, %s7267_s4 }
0x1372   :  { %v2410_v34 = vpop.permute.xlu0 %2409 }
0x1373   :  { %2413 = vst.msk [vmem:[#allocation4 + $0x2] sm:$0x3] %vm1049_vm2, %v2410_v34  ;;  %6363 = vmatmul.mubr.msk.f32.vlgmr.msra.gmra.mrb[22].mxu1 %vm66_vm0, %v2410_v34 }
0x1374   :  { %6742 = vmatpush1.bf16.msra.mxu1 %v7717_v27  ;;  %2899 = vmatprep.mubr.f32.mxu1 %v7262_v7 }
0x1375   :  { %6744 = vmatprep.subr.bf16.mxu1 %v7719_v28 }
0x1376   :  { %v2397_v44 = vpop.permute.xlu1 %2396 }
0x1377   :  { %2400 = vst.msk [vmem:[#allocation3 + $0xc] sm:$0x3] %vm1049_vm2, %v2397_v44  ;;  %6352 = vmatmul.mubr.msk.f32.vlgmr.msra.gmra.mrb[22].mxu0 %vm66_vm0, %v2397_v44 }
0x1378   :  { %6746 = vmatpush1.bf16.msra.mxu1 %v7736_v40  ;;  %6726 = vmatpush1.bf16.msra.mxu0 %v7717_v27 }
0x1379   :  { %6748 = vmatprep.subr.bf16.mxu1 %v7740_v41  ;;  %6728 = vmatprep.subr.bf16.mxu0 %v7719_v28 }
0x137a   :  { %v2831_v50 = vld [vmem:[#allocation4 + $0x2] sm:$0x3]  ;;  %2724 = vmatprep.mubr.f32.mxu0 %v7262_v7 }
0x137b   :  { %5965 = vmatmul.mubr.msk.f32.vlgmr.msra.gmra.mrb[24].mxu1 %vm66_vm0, %v2831_v50 }
0x137c   :  { %6750 = vmatpush1.bf16.msra.mxu1 %v7757_v24  ;;  %2973 = vmatprep.mubr.f32.mxu1 %v7262_v7 }
0x137d   :  { %6752 = vmatprep.subr.bf16.mxu1 %v7761_v47  ;;  %6730 = vmatpush1.bf16.msra.mxu0 %v7736_v40 }
0x137e   :  { %6732 = vmatprep.subr.bf16.mxu0 %v7740_v41 }
0x1380   :  { %6754 = vmatpush1.bf16.msra.mxu1 %v7773_v51 }
0x1381   :  { %6772 = vmatprep.subr.bf16.mxu1 %v7695_v12 }
0x1383   :  { %5966 = vmatmul.mubr.msk.f32.vlgmr.msra.gmra.mrb[24].mxu1 %vm66_vm0, %v2830_v52 }
0x1384   :  { %6774 = vmatpush1.bf16.msra.mxu1 %v7717_v27  ;;  %3229 = vmatprep.mubr.f32.mxu1 %v7262_v7 }
0x1385   :  { %6776 = vmatprep.subr.bf16.mxu1 %v7719_v28 }
0x1388   :  { %6778 = vmatpush1.bf16.msra.mxu1 %v7736_v40 }
0x1389   :  { %6780 = vmatprep.subr.bf16.mxu1 %v7740_v41 }
0x138b   :  { %5971 = vmatmul.mubr.msk.f32.vlgmr.msra.gmra.mrb[26].mxu1 %vm66_vm0, %v3161_v53 }
0x138c   :  { %6782 = vmatpush1.bf16.msra.mxu1 %v7757_v24  ;;  %3303 = vmatprep.mubr.f32.mxu1 %v7262_v7 }
0x138d   :  { %6784 = vmatprep.subr.bf16.mxu1 %v7761_v47 }
0x1390   :  { %6786 = vmatpush1.bf16.msra.mxu1 %v7773_v51 }
0x1391   :  { %6804 = vmatprep.subr.bf16.mxu1 %v7695_v12 }
0x1393   :  { %5972 = vmatmul.mubr.msk.f32.vlgmr.msra.gmra.mrb[26].mxu1 %vm66_vm0, %v3160_v54 }
0x1394   :  { %6806 = vmatpush1.bf16.msra.mxu1 %v7717_v27  ;;  %3559 = vmatprep.mubr.f32.mxu1 %v7262_v7 }
0x1395   :  { %6808 = vmatprep.subr.bf16.mxu1 %v7719_v28 }
0x1398   :  { %6810 = vmatpush1.bf16.msra.mxu1 %v7736_v40 }
0x1399   :  { %6812 = vmatprep.subr.bf16.mxu1 %v7740_v41 }
0x139b   :  { %5977 = vmatmul.mubr.msk.f32.vlgmr.msra.gmra.mrb[28].mxu1 %vm66_vm0, %v3491_v32 }
0x139c   :  { %6814 = vmatpush1.bf16.msra.mxu1 %v7757_v24  ;;  %3633 = vmatprep.mubr.f32.mxu1 %v7262_v7 }
0x139d   :  { %6816 = vmatprep.subr.bf16.mxu1 %v7761_v47 }
0x13a0   :  { %6818 = vmatpush1.bf16.msra.mxu1 %v7773_v51 }
0x13a1   :  { %6836 = vmatprep.subr.bf16.mxu1 %v7695_v12 }
0x13a3   :  { %5978 = vmatmul.mubr.msk.f32.vlgmr.msra.gmra.mrb[28].mxu1 %vm66_vm0, %v3490_v29 }
0x13a4   :  { %6838 = vmatpush1.bf16.msra.mxu1 %v7717_v27  ;;  %3889 = vmatprep.mubr.f32.mxu1 %v7262_v7 }
0x13a5   :  { %6840 = vmatprep.subr.bf16.mxu1 %v7719_v28 }
0x13a8   :  { %6842 = vmatpush1.bf16.msra.mxu1 %v7736_v40 }
0x13a9   :  { %6844 = vmatprep.subr.bf16.mxu1 %v7740_v41 }
0x13ab   :  { %5983 = vmatmul.mubr.msk.f32.vlgmr.msra.gmra.mrb[30].mxu1 %vm66_vm0, %v3821_v55 }
0x13ac   :  { %6846 = vmatpush1.bf16.msra.mxu1 %v7757_v24  ;;  %3963 = vmatprep.mubr.f32.mxu1 %v7262_v7 }
0x13ad   :  { %6848 = vmatprep.subr.bf16.mxu1 %v7761_v47 }
0x13b0   :  { %6850 = vmatpush1.bf16.msra.mxu1 %v7773_v51 }
0x13b1   :  { %6857 = vmatprep.subr.bf16.mxu1 %v7263_v25 }
0x1446   :  { %v2557_v57 = vpop.f32.mrb[22].mxu1 }
0x1447   :  { %v2564_v58 = vadd.f32 %v2562_v56, %v2557_v57  ;;  %v6364_v59 = vpop.f32.mrb[23].mxu1 }
0x1448   :  { %v3989_v59 = vld [vmem:[%s8258_s9] sm:$0xff] }
0x1449   :  { %7094 = vtanh.f32 %v2564_v58  ;;  %v5961_v22 = vmul.f32 -1.442695, %v2564_v58 }
0x144a   :  { %v2483_v62 = vpop.f32.mrb[22].mxu0 }
0x144b   :  { %v2487_v63 = vadd.f32 %v2483_v62, %v2414_v61  ;;  %v6353_v0 = vpop.f32.mrb[23].mxu0  ;;  %v3990_v61 = vld [vmem:[%s8258_s9 + $0x8] sm:$0xff] }
0x144d   :  { %7096 = vtanh.f32 %v2487_v63  ;;  %v5960_v23 = vmul.f32 -1.442695, %v2487_v63  ;;  %v7857_v63 = vpack.c.bf16 %v3990_v61, %v3989_v59 }
0x144e   :  { %7098 = vpow2.f32 %v5961_v22 }
0x144f   :  { %7100 = vpow2.f32 %v5960_v23 }
0x1453   :  { %v7095_v2 = vpop.eup %7094 }
0x1454   :  { %2598 = vrot.lane.b32.xlu0 %v7095_v2, %s7265_s2  ;;  %v3992_v2 = vld [vmem:[%s8258_s9 + $0x18] sm:$0xff] }
0x1456   :  { %v2975_v6 = vpop.f32.mrb[24].mxu1 }
0x1457   :  { %v7097_v8 = vpop.eup %7096  ;;  %v2980_v10 = vadd.f32 %v2975_v6, %v7822_v3  ;;  %v2977_v11 = vpop.f32.mrb[25].mxu1  ;;  %v7871_v6 = vpack.c.bf16 %v3992_v2, %v3991_v1 }
0x1458   :  { %v2981_v13 = vadd.f32 %v2977_v11, %v7827_v4  ;;  %2574 = vrot.lane.b32.xlu1 %v7097_v8, %s7265_s2  ;;  %v7099_v26 = vpop.eup %7098  ;;  %v2655_v8 = vld [vmem:[#allocation3] sm:$0x3]  ;;  %v2995_v11 = vld [vmem:[#allocation3 + $0x4] sm:$0x3] }
0x1459   :  { %v2592_v30 = vadd.f32 1.0, %v7099_v26  ;;  %v7101_v31 = vpop.eup %7100 }
0x145a   :  { %v2984_v14 = vcombine.low %v2980_v10, %v2981_v13  ;;  %v2568_v34 = vadd.f32 1.0, %v7101_v31  ;;  %v2996_v10 = vld [vmem:[#allocation4 + $0x4] sm:$0x3]  ;;  %v3326_v13 = vld [vmem:[#allocation4 + $0x8] sm:$0x3] }
0x145b   :  { %7102 = vrcp.f32 %v2592_v30 }
0x145c   :  { %5967 = vst.sshfl [vmem:[#allocation5 + $0x4] sm:$0x33 pattern:$0x76325410] %v2984_v14  ;;  %7104 = vrcp.f32 %v2568_v34  ;;  %v3325_v14 = vld [vmem:[#allocation3 + $0x8] sm:$0x3] }
0x1465   :  { %v7103_v37 = vpop.eup %7102 }
0x1466   :  { %v3305_v15 = vpop.f32.mrb[26].mxu1  ;;  %v7105_v43 = vpop.eup %7104  ;;  %v2596_v46 = vmul.f32 %v7103_v37, %v7682_v5 }
0x1467   :  { %v3310_v36 = vadd.f32 %v3305_v15, %v7822_v3  ;;  %v3307_v16 = vpop.f32.mrb[27].mxu1  ;;  %v2572_v50 = vmul.f32 %v7105_v43, %v7686_v9  ;;  %v3656_v15 = vld [vmem:[#allocation4 + $0xc] sm:$0x3] }
0x1468   :  { %v3311_v17 = vadd.f32 %v3307_v16, %v7827_v4 }
0x146a   :  { %v3314_v35 = vcombine.low %v3310_v36, %v3311_v17 }
0x146c   :  { %5973 = vst.sshfl [vmem:[#allocation5 + $0xc] sm:$0x33 pattern:$0x76325410] %v3314_v35 }
0x1476   :  { %v3635_v38 = vpop.f32.mrb[28].mxu1 }
0x1477   :  { %v3640_v18 = vadd.f32 %v3635_v38, %v7822_v3  ;;  %v3637_v19 = vpop.f32.mrb[29].mxu1 }
0x1478   :  { %v3641_v20 = vadd.f32 %v3637_v19, %v7827_v4 }
0x147a   :  { %v3644_v21 = vcombine.low %v3640_v18, %v3641_v20 }
0x147c   :  { %5979 = vst.sshfl [vmem:[#allocation5 + $0x14] sm:$0x33 pattern:$0x76325410] %v3644_v21 }
0x14c6   :  { %v2599_v39 = vpop.permute.xlu0 %2598 }
0x14c7   :  { %v2601_v42 = vmul.f32 %v7103_v37, %v2599_v39 }
0x14c9   :  { %2603 = vrot.lane.b32.xlu0 %v2601_v42, %s7265_s2 }
0x14ca   :  { %v2575_v44 = vpop.permute.xlu1 %2574 }
0x14cb   :  { %v2577_v45 = vmul.f32 %v7105_v43, %v2575_v44 }
0x14cd   :  { %2579 = vrot.lane.b32.xlu1 %v2577_v45, %s7265_s2 }
0x153b   :  { %v2604_v48 = vpop.permute.xlu0 %2603 }
0x153c   :  { %v2606_v49 = vadd.f32 %v2604_v48, %v2596_v46 }
0x153e   :  { %7106 = vtanh.f32 %v2606_v49 }
0x153f   :  { %v2580_v52 = vpop.permute.xlu1 %2579 }
0x1540   :  { %v2582_v53 = vadd.f32 %v2580_v52, %v2572_v50 }
0x1542   :  { %7108 = vtanh.f32 %v2582_v53 }
0x1548   :  { %v7107_v54 = vpop.eup %7106 }
0x1549   :  { %2609 = vrot.lane.b32.xlu0 %v7107_v54, %s7265_s2 }
0x154c   :  { %v7109_v32 = vpop.eup %7108 }
0x154d   :  { %2585 = vrot.lane.b32.xlu1 %v7109_v32, %s7265_s2 }
0x15bb   :  { %v2610_v29 = vpop.permute.xlu0 %2609 }
0x15bc   :  { %v2612_v55 = vmul.f32 %v7103_v37, %v2610_v29 }
0x15be   :  { %v2633_v33 = vrot.slane %v2612_v55, %v7487_v60 }
0x15bf   :  { %v2586_v56 = vpop.permute.xlu1 %2585 }
0x15c0   :  { %v2588_v5 = vmul.f32 %v7105_v43, %v2586_v56  ;;  %2634 = vrot.lane.b32.xlu0 %v2633_v33, %s7267_s4 }
0x15c2   :  { %v2620_v57 = vrot.slane %v2588_v5, %v7487_v60 }
0x15c4   :  { %2621 = vrot.lane.b32.xlu1 %v2620_v57, %s7267_s4 }
0x1632   :  { %v2635_v9 = vpop.permute.xlu0 %2634 }
0x1633   :  { %2637 = vst.msk [vmem:[#allocation4] sm:$0x3] %vm1049_vm2, %v2635_v9 }
0x1636   :  { %v2622_v58 = vpop.permute.xlu1 %2621 }
0x1637   :  { %2625 = vst.msk [vmem:[#allocation3 + $0xe] sm:$0x3] %vm1049_vm2, %v2622_v58 }
0x163a   :  { %v2656_v62 = vld [vmem:[#allocation4] sm:$0x3] }
0x163b   :  { %5962 = vmatmul.mubr.msk.f32.vlgmr.msra.gmra.mrb[24].mxu0 %vm66_vm0, %v2656_v62 }
0x163c   :  { %6734 = vmatpush1.bf16.msra.mxu0 %v7757_v24  ;;  %2798 = vmatprep.mubr.f32.mxu0 %v7262_v7 }
0x163d   :  { %6736 = vmatprep.subr.bf16.mxu0 %v7761_v47 }
0x163e   :  { %v3820_v0 = vld [vmem:[#allocation3 + $0xe] sm:$0x3] }
0x163f   :  { %5984 = vmatmul.mubr.msk.f32.vlgmr.msra.gmra.mrb[30].mxu1 %vm66_vm0, %v3820_v0 }
0x1640   :  { %6738 = vmatpush1.bf16.msra.mxu0 %v7773_v51  ;;  %6859 = vmatpush3.bf16.msra.mxu1 %v7857_v63 }
0x1641   :  { %6756 = vmatprep.subr.bf16.mxu0 %v7695_v12  ;;  %6860 = vmatprep.subr.bf16.mxu1 %v7263_v25 }
0x1642   :  { %6384 = vmatprep.mubr.msk.f32.mxu1 %vm7264_vm1, %v7262_v7 }
0x1643   :  { %5963 = vmatmul.mubr.msk.f32.vlgmr.msra.gmra.mrb[24].mxu0 %vm66_vm0, %v2655_v8 }
0x1644   :  { %6758 = vmatpush1.bf16.msra.mxu0 %v7717_v27  ;;  %3064 = vmatprep.mubr.f32.mxu0 %v7262_v7 }
0x1645   :  { %6760 = vmatprep.subr.bf16.mxu0 %v7719_v28  ;;  %6862 = vmatpush3.bf16.msra.mxu1 %v7871_v6 }
0x1646   :  { %6869 = vmatprep.subr.bf16.mxu1 %v7263_v25 }
0x1648   :  { %6762 = vmatpush1.bf16.msra.mxu0 %v7736_v40  ;;  %6385 = vmatmul.mubr.f32.vlgmr.msra.gmra.mrb[32].mxu1 %v7262_v7 }
0x1649   :  { %6764 = vmatprep.subr.bf16.mxu0 %v7740_v41  ;;  %6871 = vmatpush3.bf16.msra.mxu1 %v7857_v63 }
0x164a   :  { %6872 = vmatprep.subr.bf16.mxu1 %v7263_v25  ;;  %6406 = vmatprep.mubr.msk.f32.mxu1 %vm7264_vm1, %v7262_v7 }
0x164b   :  { %5968 = vmatmul.mubr.msk.f32.vlgmr.msra.gmra.mrb[26].mxu0 %vm66_vm0, %v2996_v10 }
0x164c   :  { %6766 = vmatpush1.bf16.msra.mxu0 %v7757_v24  ;;  %3138 = vmatprep.mubr.f32.mxu0 %v7262_v7 }
0x164d   :  { %6768 = vmatprep.subr.bf16.mxu0 %v7761_v47  ;;  %6874 = vmatpush3.bf16.msra.mxu1 %v7871_v6 }
0x164e   :  { %6881 = vmatprep.subr.bf16.mxu1 %v7263_v25 }
0x1650   :  { %6770 = vmatpush1.bf16.msra.mxu0 %v7773_v51 }
0x1651   :  { %6788 = vmatprep.subr.bf16.mxu0 %v7695_v12 }
0x1653   :  { %5969 = vmatmul.mubr.msk.f32.vlgmr.msra.gmra.mrb[26].mxu0 %vm66_vm0, %v2995_v11 }
0x1654   :  { %6790 = vmatpush1.bf16.msra.mxu0 %v7717_v27  ;;  %3394 = vmatprep.mubr.f32.mxu0 %v7262_v7 }
0x1655   :  { %6792 = vmatprep.subr.bf16.mxu0 %v7719_v28 }
0x1658   :  { %6794 = vmatpush1.bf16.msra.mxu0 %v7736_v40 }
0x1659   :  { %6796 = vmatprep.subr.bf16.mxu0 %v7740_v41 }
0x165b   :  { %5974 = vmatmul.mubr.msk.f32.vlgmr.msra.gmra.mrb[28].mxu0 %vm66_vm0, %v3326_v13 }
0x165c   :  { %6798 = vmatpush1.bf16.msra.mxu0 %v7757_v24  ;;  %3468 = vmatprep.mubr.f32.mxu0 %v7262_v7 }
0x165d   :  { %6800 = vmatprep.subr.bf16.mxu0 %v7761_v47 }
0x1660   :  { %6802 = vmatpush1.bf16.msra.mxu0 %v7773_v51 }
0x1661   :  { %6820 = vmatprep.subr.bf16.mxu0 %v7695_v12  ;;  %v3985_v12 = vld [vmem:[%s8257_s8] sm:$0xff] }
0x1663   :  { %5975 = vmatmul.mubr.msk.f32.vlgmr.msra.gmra.mrb[28].mxu0 %vm66_vm0, %v3325_v14 }
0x1664   :  { %6822 = vmatpush1.bf16.msra.mxu0 %v7717_v27  ;;  %3724 = vmatprep.mubr.f32.mxu0 %v7262_v7  ;;  %v3986_v27 = vld [vmem:[%s8257_s8 + $0x8] sm:$0xff] }
0x1665   :  { %6824 = vmatprep.subr.bf16.mxu0 %v7719_v28  ;;  %v7925_v28 = vpack.c.bf16 %v3986_v27, %v3985_v12 }
0x1668   :  { %6826 = vmatpush1.bf16.msra.mxu0 %v7736_v40  ;;  %v3987_v40 = vld [vmem:[%s8257_s8 + $0x10] sm:$0xff] }
0x1669   :  { %6828 = vmatprep.subr.bf16.mxu0 %v7740_v41  ;;  %v3988_v41 = vld [vmem:[%s8257_s8 + $0x18] sm:$0xff] }
0x166b   :  { %5980 = vmatmul.mubr.msk.f32.vlgmr.msra.gmra.mrb[30].mxu0 %vm66_vm0, %v3656_v15 }
0x166c   :  { %6830 = vmatpush1.bf16.msra.mxu0 %v7757_v24  ;;  %3798 = vmatprep.mubr.f32.mxu0 %v7262_v7  ;;  %v3655_v24 = vld [vmem:[#allocation3 + $0xc] sm:$0x3] }
0x166d   :  { %6832 = vmatprep.subr.bf16.mxu0 %v7761_v47  ;;  %v7936_v47 = vpack.c.bf16 %v3988_v41, %v3987_v40 }
0x1670   :  { %6834 = vmatpush1.bf16.msra.mxu0 %v7773_v51 }
0x1671   :  { %6851 = vmatprep.subr.bf16.mxu0 %v7263_v25 }
0x1673   :  { %5981 = vmatmul.mubr.msk.f32.vlgmr.msra.gmra.mrb[30].mxu0 %vm66_vm0, %v3655_v24 }
0x1674   :  { %6853 = vmatpush3.bf16.msra.mxu0 %v7925_v28  ;;  %6373 = vmatprep.mubr.msk.f32.mxu0 %vm7264_vm1, %v7262_v7 }
0x1675   :  { %6854 = vmatprep.subr.bf16.mxu0 %v7263_v25 }
0x1678   :  { %6856 = vmatpush3.bf16.msra.mxu0 %v7936_v47 }
0x1679   :  { %6863 = vmatprep.subr.bf16.mxu0 %v7263_v25 }
0x167b   :  { %6374 = vmatmul.mubr.f32.vlgmr.msra.gmra.mrb[32].mxu0 %v7262_v7 }
0x167c   :  { %6865 = vmatpush3.bf16.msra.mxu0 %v7925_v28  ;;  %6395 = vmatprep.mubr.msk.f32.mxu0 %vm7264_vm1, %v7262_v7 }
0x167d   :  { %6866 = vmatprep.subr.bf16.mxu0 %v7263_v25 }
0x1680   :  { %6868 = vmatpush3.bf16.msra.mxu0 %v7936_v47 }
0x1681   :  { %6875 = vmatprep.subr.bf16.mxu0 %v7263_v25 }
0x1712   :  { %v3965_v51 = vpop.f32.mrb[30].mxu1 }
0x1713   :  { %v3970_v36 = vadd.f32 %v3965_v51, %v7822_v3  ;;  %v3967_v16 = vpop.f32.mrb[31].mxu1 }
0x1714   :  { %v3971_v17 = vadd.f32 %v3967_v16, %v7827_v4 }
0x1716   :  { %v3974_v35 = vcombine.low %v3970_v36, %v3971_v17  ;;  %v2800_v38 = vpop.f32.mrb[24].mxu0 }
0x1717   :  { %v2816_v18 = vadd.f32 %v7822_v3, %v2800_v38  ;;  %v2802_v19 = vpop.f32.mrb[25].mxu0 }
0x1718   :  { %5985 = vst.sshfl [vmem:[#allocation5 + $0x1c] sm:$0x33 pattern:$0x76325410] %v3974_v35  ;;  %v2817_v20 = vadd.f32 %v7827_v4, %v2802_v19 }
0x171a   :  { %v2820_v21 = vcombine.low %v2816_v18, %v2817_v20 }
0x171b   :  { %v4132_v22 = vpop.f32.mrb[32].mxu1 }
0x171c   :  { %5964 = vst.sshfl [vmem:[#allocation5] sm:$0x33 pattern:$0x76325410] %v2820_v21  ;;  %v6386_v23 = vpop.f32.mrb[33].mxu1 }
0x171f   :  { %v7954_v26 = vld [vmem:[#allocation5 + $0x1c] sm:$0xf] }
0x1720   :  { %v4137_v30 = vrot.slane %v7954_v26, 2 }
0x1722   :  { %v4139_v31 = vadd.f32 %v4137_v30, %v4132_v22 }
0x1723   :  { %v7964_v55 = vld [vmem:[#allocation5] sm:$0xf] }
0x1724   :  { %7110 = vtanh.f32 %v4139_v31  ;;  %v5987_v9 = vmul.f32 -1.442695, %v4139_v31  ;;  %v8000_v31 = vld [vmem:[#allocation5 + $0x4] sm:$0xf] }
0x1726   :  { %v3140_v34 = vpop.f32.mrb[26].mxu0 }
0x1727   :  { %v3145_v37 = vadd.f32 %v3140_v34, %v7822_v3  ;;  %v3142_v39 = vpop.f32.mrb[27].mxu0 }
0x1728   :  { %v3146_v42 = vadd.f32 %v3142_v39, %v7827_v4 }
0x172a   :  { %v3149_v43 = vcombine.low %v3145_v37, %v3146_v42 }
0x172c   :  { %5970 = vst.sshfl [vmem:[#allocation5 + $0x8] sm:$0x33 pattern:$0x76325410] %v3149_v43 }
0x172e   :  { %v7111_v44 = vpop.eup %7110 }
0x172f   :  { %4173 = vrot.lane.b32.xlu1 %v7111_v44, %s7265_s2 }
0x1736   :  { %v3470_v45 = vpop.f32.mrb[28].mxu0 }
0x1737   :  { %v3475_v46 = vadd.f32 %v3470_v45, %v7822_v3  ;;  %v3472_v48 = vpop.f32.mrb[29].mxu0 }
0x1738   :  { %v3476_v49 = vadd.f32 %v3472_v48, %v7827_v4 }
0x173a   :  { %v3479_v50 = vcombine.low %v3475_v46, %v3476_v49 }
0x173c   :  { %5976 = vst.sshfl [vmem:[#allocation5 + $0x10] sm:$0x33 pattern:$0x76325410] %v3479_v50 }
0x1746   :  { %v3800_v52 = vpop.f32.mrb[30].mxu0 }
0x1747   :  { %v3805_v53 = vadd.f32 %v3800_v52, %v7822_v3  ;;  %v3802_v54 = vpop.f32.mrb[31].mxu0 }
0x1748   :  { %v3806_v32 = vadd.f32 %v3802_v54, %v7827_v4 }
0x174a   :  { %v3809_v29 = vcombine.low %v3805_v53, %v3806_v32 }
0x174c   :  { %5982 = vst.sshfl [vmem:[#allocation5 + $0x18] sm:$0x33 pattern:$0x76325410] %v3809_v29 }
0x174e   :  { %v4060_v33 = vpop.f32.mrb[32].mxu0 }
0x174f   :  { %v4064_v56 = vadd.f32 %v4060_v33, %v7964_v55  ;;  %v6375_v5 = vpop.f32.mrb[33].mxu0 }
0x1751   :  { %7112 = vtanh.f32 %v4064_v56  ;;  %v5986_v62 = vmul.f32 -1.442695, %v4064_v56 }
0x1752   :  { %7114 = vpow2.f32 %v5987_v9 }
0x1753   :  { %v7996_v19 = vld [vmem:[#allocation5 + $0x18] sm:$0xf] }
0x1754   :  { %v4356_v20 = vrot.slane %v7996_v19, 2 }
0x175b   :  { %v7113_v57 = vpop.eup %7112 }
0x175c   :  { %4149 = vrot.lane.b32.xlu0 %v7113_v57, %s7265_s2  ;;  %v7115_v58 = vpop.eup %7114 }
0x175d   :  { %v4167_v59 = vadd.f32 1.0, %v7115_v58 }
0x175f   :  { %7116 = vrcp.f32 %v4167_v59 }
0x1760   :  { %7118 = vpow2.f32 %v5986_v62 }
0x1769   :  { %v7117_v3 = vpop.eup %7116 }
0x176a   :  { %v7119_v0 = vpop.eup %7118  ;;  %v4171_v11 = vmul.f32 0.0, %v7117_v3 }
0x176b   :  { %v4143_v1 = vadd.f32 1.0, %v7119_v0 }
0x176d   :  { %7120 = vrcp.f32 %v4143_v1 }
0x1777   :  { %v7121_v2 = vpop.eup %7120 }
0x1778   :  { %v4147_v12 = vmul.f32 0.0, %v7121_v2 }
0x17a1   :  { %v4174_v61 = vpop.permute.xlu1 %4173 }
0x17a2   :  { %v4176_v4 = vmul.f32 %v7117_v3, %v4174_v61 }
0x17a4   :  { %4178 = vrot.lane.b32.xlu1 %v4176_v4, %s7265_s2 }
0x17ce   :  { %v4150_v8 = vpop.permute.xlu0 %4149 }
0x17cf   :  { %v4152_v10 = vmul.f32 %v7121_v2, %v4150_v8 }
0x17d1   :  { %4154 = vrot.lane.b32.xlu0 %v4152_v10, %s7265_s2 }
0x1816   :  { %v4179_v13 = vpop.permute.xlu1 %4178 }
0x1817   :  { %v7970_v14 = vadd.f32 %v4179_v13, %v4171_v11  ;;  %v8034_v11 = vld [vmem:[#allocation5 + $0x14] sm:$0xf] }
0x1818   :  { %v4575_v13 = vrot.slane %v8034_v11, 2 }
0x1819   :  { %7122 = vtanh.f32 %v7970_v14 }
0x1823   :  { %v7123_v15 = vpop.eup %7122 }
0x1824   :  { %4184 = vrot.lane.b32.xlu1 %v7123_v15, %s7265_s2 }
0x1843   :  { %v4155_v27 = vpop.permute.xlu0 %4154 }
0x1844   :  { %v7974_v40 = vadd.f32 %v4155_v27, %v4147_v12 }
0x1846   :  { %7124 = vtanh.f32 %v7974_v40 }
0x1850   :  { %v7125_v41 = vpop.eup %7124 }
0x1851   :  { %4160 = vrot.lane.b32.xlu0 %v7125_v41, %s7265_s2 }
0x1896   :  { %v4185_v24 = vpop.permute.xlu1 %4184 }
0x1897   :  { %v4187_v51 = vmul.f32 %v7117_v3, %v4185_v24 }
0x1899   :  { %v4280_v36 = vrot.slane %v4187_v51, %v7487_v60 }
0x189b   :  { %4281 = vrot.lane.b32.xlu1 %v4280_v36, %s7267_s4 }
0x18c3   :  { %v4161_v16 = vpop.permute.xlu0 %4160 }
0x18c4   :  { %v4163_v17 = vmul.f32 %v7121_v2, %v4161_v16 }
0x18c6   :  { %v4196_v35 = vrot.slane %v4163_v17, %v7487_v60 }
0x18c8   :  { %4197 = vrot.lane.b32.xlu0 %v4196_v35, %s7267_s4 }
0x190d   :  { %v4282_v38 = vpop.permute.xlu1 %4281 }
0x190e   :  { %6407 = vmatmul.mubr.msk.f32.vlgmr.msra.gmra.mrb[34].mxu1 %vm66_vm0, %v4282_v38 }
0x190f   :  { %6883 = vmatpush3.bf16.msra.mxu1 %v7857_v63  ;;  %6428 = vmatprep.mubr.msk.f32.mxu1 %vm7264_vm1, %v7262_v7 }
0x1910   :  { %6884 = vmatprep.subr.bf16.mxu1 %v7263_v25 }
0x1913   :  { %6886 = vmatpush3.bf16.msra.mxu1 %v7871_v6 }
0x1914   :  { %6893 = vmatprep.subr.bf16.mxu1 %v7263_v25 }
0x193a   :  { %v4198_v18 = vpop.permute.xlu0 %4197 }
0x193b   :  { %6396 = vmatmul.mubr.msk.f32.vlgmr.msra.gmra.mrb[34].mxu0 %vm66_vm0, %v4198_v18 }
0x193c   :  { %6877 = vmatpush3.bf16.msra.mxu0 %v7925_v28  ;;  %6417 = vmatprep.mubr.msk.f32.mxu0 %vm7264_vm1, %v7262_v7 }
0x193d   :  { %6878 = vmatprep.subr.bf16.mxu0 %v7263_v25 }
0x1940   :  { %6880 = vmatpush3.bf16.msra.mxu0 %v7936_v47 }
0x1941   :  { %6887 = vmatprep.subr.bf16.mxu0 %v7263_v25 }
0x19e1   :  { %v4351_v21 = vpop.f32.mrb[34].mxu1 }
0x19e2   :  { %v4358_v22 = vadd.f32 %v4356_v20, %v4351_v21  ;;  %v6408_v23 = vpop.f32.mrb[35].mxu1 }
0x19e4   :  { %7126 = vtanh.f32 %v4358_v22  ;;  %v5991_v43 = vmul.f32 -1.442695, %v4358_v22 }
0x19ee   :  { %v7127_v30 = vpop.eup %7126 }
0x19ef   :  { %4392 = vrot.lane.b32.xlu1 %v7127_v30, %s7265_s2 }
0x1a0e   :  { %v4267_v34 = vpop.f32.mrb[34].mxu0 }
0x1a0f   :  { %v4271_v37 = vadd.f32 %v4267_v34, %v8000_v31  ;;  %v6397_v39 = vpop.f32.mrb[35].mxu0 }
0x1a11   :  { %7128 = vtanh.f32 %v4271_v37  ;;  %v5990_v50 = vmul.f32 -1.442695, %v4271_v37 }
0x1a12   :  { %7130 = vpow2.f32 %v5991_v43 }
0x1a1b   :  { %v7129_v42 = vpop.eup %7128 }
0x1a1c   :  { %4368 = vrot.lane.b32.xlu0 %v7129_v42, %s7265_s2  ;;  %v7131_v44 = vpop.eup %7130 }
0x1a1d   :  { %v4386_v45 = vadd.f32 1.0, %v7131_v44 }
0x1a1f   :  { %7132 = vrcp.f32 %v4386_v45 }
0x1a20   :  { %7134 = vpow2.f32 %v5990_v50 }
0x1a29   :  { %v7133_v46 = vpop.eup %7132 }
0x1a2a   :  { %v7135_v52 = vpop.eup %7134  ;;  %v4390_v33 = vmul.f32 %v7133_v46, %v7970_v14 }
0x1a2b   :  { %v4362_v53 = vadd.f32 1.0, %v7135_v52 }
0x1a2d   :  { %7136 = vrcp.f32 %v4362_v53 }
0x1a37   :  { %v7137_v54 = vpop.eup %7136 }
0x1a38   :  { %v4366_v9 = vmul.f32 %v7137_v54, %v7974_v40  ;;  %v8038_v40 = vld [vmem:[#allocation5 + $0x8] sm:$0xf] }
0x1a61   :  { %v4393_v48 = vpop.permute.xlu1 %4392 }
0x1a62   :  { %v4395_v49 = vmul.f32 %v7133_v46, %v4393_v48 }
0x1a64   :  { %4397 = vrot.lane.b32.xlu1 %v4395_v49, %s7265_s2 }
0x1a8e   :  { %v4369_v32 = vpop.permute.xlu0 %4368 }
0x1a8f   :  { %v4371_v29 = vmul.f32 %v7137_v54, %v4369_v32 }
0x1a91   :  { %4373 = vrot.lane.b32.xlu0 %v4371_v29, %s7265_s2 }
0x1ad6   :  { %v4398_v56 = vpop.permute.xlu1 %4397 }
0x1ad7   :  { %v8007_v5 = vadd.f32 %v4398_v56, %v4390_v33 }
0x1ad9   :  { %7138 = vtanh.f32 %v8007_v5 }
0x1ae3   :  { %v7139_v57 = vpop.eup %7138 }
0x1ae4   :  { %4403 = vrot.lane.b32.xlu1 %v7139_v57, %s7265_s2 }
0x1b03   :  { %v4374_v58 = vpop.permute.xlu0 %4373 }
0x1b04   :  { %v8012_v59 = vadd.f32 %v4374_v58, %v4366_v9 }
0x1b06   :  { %7140 = vtanh.f32 %v8012_v59 }
0x1b10   :  { %v7141_v3 = vpop.eup %7140 }
0x1b11   :  { %4379 = vrot.lane.b32.xlu0 %v7141_v3, %s7265_s2 }
0x1b56   :  { %v4404_v61 = vpop.permute.xlu1 %4403 }
0x1b57   :  { %v4406_v4 = vmul.f32 %v7133_v46, %v4404_v61  ;;  %v4626_v61 = vld [vmem:[#allocation5 + $0xc] sm:$0xf] }
0x1b59   :  { %v4499_v62 = vrot.slane %v4406_v4, %v7487_v60 }
0x1b5b   :  { %4500 = vrot.lane.b32.xlu1 %v4499_v62, %s7267_s4 }
0x1b83   :  { %v4380_v0 = vpop.permute.xlu0 %4379 }
0x1b84   :  { %v4382_v1 = vmul.f32 %v7137_v54, %v4380_v0 }
0x1b86   :  { %v4415_v2 = vrot.slane %v4382_v1, %v7487_v60 }
0x1b88   :  { %4416 = vrot.lane.b32.xlu0 %v4415_v2, %s7267_s4 }
0x1bcd   :  { %v4501_v8 = vpop.permute.xlu1 %4500 }
0x1bce   :  { %6429 = vmatmul.mubr.msk.f32.vlgmr.msra.gmra.mrb[36].mxu1 %vm66_vm0, %v4501_v8 }
0x1bcf   :  { %6895 = vmatpush3.bf16.msra.mxu1 %v7857_v63  ;;  %6450 = vmatprep.mubr.msk.f32.mxu1 %vm7264_vm1, %v7262_v7 }
0x1bd0   :  { %6896 = vmatprep.subr.bf16.mxu1 %v7263_v25 }
0x1bd3   :  { %6898 = vmatpush3.bf16.msra.mxu1 %v7871_v6 }
0x1bd4   :  { %6905 = vmatprep.subr.bf16.mxu1 %v7263_v25 }
0x1bfa   :  { %v4417_v10 = vpop.permute.xlu0 %4416 }
0x1bfb   :  { %6418 = vmatmul.mubr.msk.f32.vlgmr.msra.gmra.mrb[36].mxu0 %vm66_vm0, %v4417_v10 }
0x1bfc   :  { %6889 = vmatpush3.bf16.msra.mxu0 %v7925_v28  ;;  %6439 = vmatprep.mubr.msk.f32.mxu0 %vm7264_vm1, %v7262_v7 }
0x1bfd   :  { %6890 = vmatprep.subr.bf16.mxu0 %v7263_v25 }
0x1c00   :  { %6892 = vmatpush3.bf16.msra.mxu0 %v7936_v47 }
0x1c01   :  { %6899 = vmatprep.subr.bf16.mxu0 %v7263_v25 }
0x1ca1   :  { %v4570_v14 = vpop.f32.mrb[36].mxu1 }
0x1ca2   :  { %v4577_v15 = vadd.f32 %v4575_v13, %v4570_v14  ;;  %v6430_v12 = vpop.f32.mrb[37].mxu1 }
0x1ca4   :  { %7142 = vtanh.f32 %v4577_v15  ;;  %v5995_v16 = vmul.f32 -1.442695, %v4577_v15 }
0x1cae   :  { %v7143_v27 = vpop.eup %7142 }
0x1caf   :  { %4611 = vrot.lane.b32.xlu1 %v7143_v27, %s7265_s2 }
0x1cce   :  { %v4486_v41 = vpop.f32.mrb[36].mxu0 }
0x1ccf   :  { %v4490_v24 = vadd.f32 %v4486_v41, %v8038_v40  ;;  %v6419_v51 = vpop.f32.mrb[37].mxu0 }
0x1cd1   :  { %7144 = vtanh.f32 %v4490_v24  ;;  %v5994_v21 = vmul.f32 -1.442695, %v4490_v24 }
0x1cd2   :  { %7146 = vpow2.f32 %v5995_v16 }
0x1cdb   :  { %v7145_v36 = vpop.eup %7144 }
0x1cdc   :  { %4587 = vrot.lane.b32.xlu0 %v7145_v36, %s7265_s2  ;;  %v7147_v17 = vpop.eup %7146 }
0x1cdd   :  { %v4605_v35 = vadd.f32 1.0, %v7147_v17 }
0x1cdf   :  { %7148 = vrcp.f32 %v4605_v35 }
0x1ce0   :  { %7150 = vpow2.f32 %v5994_v21 }
0x1ce9   :  { %v7149_v38 = vpop.eup %7148 }
0x1cea   :  { %v7151_v22 = vpop.eup %7150  ;;  %v4609_v39 = vmul.f32 %v7149_v38, %v8007_v5  ;;  %v8072_v5 = vld [vmem:[#allocation5 + $0x10] sm:$0xf] }
0x1ceb   :  { %v4581_v23 = vadd.f32 1.0, %v7151_v22  ;;  %v4794_v57 = vrot.slane %v8072_v5, 2 }
0x1ced   :  { %7152 = vrcp.f32 %v4581_v23 }
0x1cf7   :  { %v7153_v30 = vpop.eup %7152 }
0x1cf8   :  { %v4585_v45 = vmul.f32 %v7153_v30, %v8012_v59 }
0x1d21   :  { %v4612_v18 = vpop.permute.xlu1 %4611 }
0x1d22   :  { %v4614_v20 = vmul.f32 %v7149_v38, %v4612_v18 }
0x1d24   :  { %4616 = vrot.lane.b32.xlu1 %v4614_v20, %s7265_s2 }
0x1d4e   :  { %v4588_v34 = vpop.permute.xlu0 %4587 }
0x1d4f   :  { %v4590_v37 = vmul.f32 %v7153_v30, %v4588_v34 }
0x1d51   :  { %4592 = vrot.lane.b32.xlu0 %v4590_v37, %s7265_s2 }
0x1d96   :  { %v4617_v42 = vpop.permute.xlu1 %4616 }
0x1d97   :  { %v8045_v43 = vadd.f32 %v4617_v42, %v4609_v39 }
0x1d99   :  { %7154 = vtanh.f32 %v8045_v43 }
0x1da3   :  { %v7155_v44 = vpop.eup %7154 }
0x1da4   :  { %4622 = vrot.lane.b32.xlu1 %v7155_v44, %s7265_s2 }
0x1dc3   :  { %v4593_v46 = vpop.permute.xlu0 %4592 }
0x1dc4   :  { %v8050_v48 = vadd.f32 %v4593_v46, %v4585_v45  ;;  %v5011_v45 = vrot.slane %v4626_v61, 2 }
0x1dc6   :  { %7156 = vtanh.f32 %v8050_v48 }
0x1dd0   :  { %v7157_v49 = vpop.eup %7156 }
0x1dd1   :  { %4598 = vrot.lane.b32.xlu0 %v7157_v49, %s7265_s2 }
0x1e16   :  { %v4623_v50 = vpop.permute.xlu1 %4622 }
0x1e17   :  { %v4625_v52 = vmul.f32 %v7149_v38, %v4623_v50 }
0x1e19   :  { %v4718_v53 = vrot.slane %v4625_v52, %v7487_v60 }
0x1e1b   :  { %4719 = vrot.lane.b32.xlu1 %v4718_v53, %s7267_s4 }
0x1e43   :  { %v4599_v54 = vpop.permute.xlu0 %4598 }
0x1e44   :  { %v4601_v32 = vmul.f32 %v7153_v30, %v4599_v54 }
0x1e46   :  { %v4634_v29 = vrot.slane %v4601_v32, %v7487_v60 }
0x1e48   :  { %4635 = vrot.lane.b32.xlu0 %v4634_v29, %s7267_s4 }
0x1e8d   :  { %v4720_v33 = vpop.permute.xlu1 %4719 }
0x1e8e   :  { %6451 = vmatmul.mubr.msk.f32.vlgmr.msra.gmra.mrb[38].mxu1 %vm66_vm0, %v4720_v33 }
0x1e8f   :  { %6907 = vmatpush3.bf16.msra.mxu1 %v7857_v63  ;;  %6472 = vmatprep.mubr.msk.f32.mxu1 %vm7264_vm1, %v7262_v7 }
0x1e90   :  { %6908 = vmatprep.subr.bf16.mxu1 %v7263_v25 }
0x1e93   :  { %6910 = vmatpush3.bf16.msra.mxu1 %v7871_v6 }
0x1e94   :  { %6917 = vmatprep.subr.bf16.mxu1 %v7263_v25 }
0x1eba   :  { %v4636_v56 = vpop.permute.xlu0 %4635 }
0x1ebb   :  { %6440 = vmatmul.mubr.msk.f32.vlgmr.msra.gmra.mrb[38].mxu0 %vm66_vm0, %v4636_v56 }
0x1ebc   :  { %6901 = vmatpush3.bf16.msra.mxu0 %v7925_v28  ;;  %6461 = vmatprep.mubr.msk.f32.mxu0 %vm7264_vm1, %v7262_v7 }
0x1ebd   :  { %6902 = vmatprep.subr.bf16.mxu0 %v7263_v25 }
0x1ec0   :  { %6904 = vmatpush3.bf16.msra.mxu0 %v7936_v47 }
0x1ec1   :  { %6911 = vmatprep.subr.bf16.mxu0 %v7263_v25 }
0x1f61   :  { %v4789_v9 = vpop.f32.mrb[38].mxu1 }
0x1f62   :  { %v4796_v58 = vadd.f32 %v4794_v57, %v4789_v9  ;;  %v6452_v59 = vpop.f32.mrb[39].mxu1 }
0x1f64   :  { %7158 = vtanh.f32 %v4796_v58  ;;  %v5999_v2 = vmul.f32 -1.442695, %v4796_v58 }
0x1f6e   :  { %v7159_v3 = vpop.eup %7158 }
0x1f6f   :  { %4830 = vrot.lane.b32.xlu1 %v7159_v3, %s7265_s2 }
0x1f8e   :  { %v4705_v4 = vpop.f32.mrb[38].mxu0 }
0x1f8f   :  { %v4709_v62 = vadd.f32 %v4705_v4, %v4626_v61  ;;  %v6441_v0 = vpop.f32.mrb[39].mxu0 }
0x1f91   :  { %7160 = vtanh.f32 %v4709_v62  ;;  %v5998_v12 = vmul.f32 -1.442695, %v4709_v62 }
0x1f92   :  { %7162 = vpow2.f32 %v5999_v2 }
0x1f9b   :  { %v7161_v1 = vpop.eup %7160 }
0x1f9c   :  { %4806 = vrot.lane.b32.xlu0 %v7161_v1, %s7265_s2  ;;  %v7163_v8 = vpop.eup %7162 }
0x1f9d   :  { %v4824_v10 = vadd.f32 1.0, %v7163_v8 }
0x1f9f   :  { %7164 = vrcp.f32 %v4824_v10 }
0x1fa0   :  { %7166 = vpow2.f32 %v5998_v12 }
0x1fa9   :  { %v7165_v13 = vpop.eup %7164 }
0x1faa   :  { %v7167_v27 = vpop.eup %7166  ;;  %v4828_v16 = vmul.f32 %v7165_v13, %v8045_v43 }
0x1fab   :  { %v4800_v41 = vadd.f32 1.0, %v7167_v27 }
0x1fad   :  { %7168 = vrcp.f32 %v4800_v41 }
0x1fb7   :  { %v7169_v24 = vpop.eup %7168 }
0x1fb8   :  { %v4804_v18 = vmul.f32 %v7169_v24, %v8050_v48 }
0x1fe1   :  { %v4831_v14 = vpop.permute.xlu1 %4830 }
0x1fe2   :  { %v4833_v15 = vmul.f32 %v7165_v13, %v4831_v14 }
0x1fe4   :  { %4835 = vrot.lane.b32.xlu1 %v4833_v15, %s7265_s2 }
0x200e   :  { %v4807_v51 = vpop.permute.xlu0 %4806 }
0x200f   :  { %v4809_v36 = vmul.f32 %v7169_v24, %v4807_v51 }
0x2011   :  { %4811 = vrot.lane.b32.xlu0 %v4809_v36, %s7265_s2 }
0x2056   :  { %v4836_v17 = vpop.permute.xlu1 %4835 }
0x2057   :  { %v8080_v35 = vadd.f32 %v4836_v17, %v4828_v16 }
0x2059   :  { %7170 = vtanh.f32 %v8080_v35 }
0x2063   :  { %v7171_v38 = vpop.eup %7170 }
0x2064   :  { %4841 = vrot.lane.b32.xlu1 %v7171_v38, %s7265_s2 }
0x2083   :  { %v4812_v20 = vpop.permute.xlu0 %4811 }
0x2084   :  { %v8085_v21 = vadd.f32 %v4812_v20, %v4804_v18 }
0x2086   :  { %7172 = vtanh.f32 %v8085_v21 }
0x2090   :  { %v7173_v22 = vpop.eup %7172 }
0x2091   :  { %4817 = vrot.lane.b32.xlu0 %v7173_v22, %s7265_s2 }
0x20d6   :  { %v4842_v23 = vpop.permute.xlu1 %4841 }
0x20d7   :  { %v4844_v30 = vmul.f32 %v7165_v13, %v4842_v23 }
0x20d9   :  { %v4935_v34 = vrot.slane %v4844_v30, %v7487_v60 }
0x20db   :  { %4936 = vrot.lane.b32.xlu1 %v4935_v34, %s7267_s4 }
0x2103   :  { %v4818_v37 = vpop.permute.xlu0 %4817 }
0x2104   :  { %v4820_v39 = vmul.f32 %v7169_v24, %v4818_v37 }
0x2106   :  { %v4852_v42 = vrot.slane %v4820_v39, %v7487_v60 }
0x2108   :  { %4853 = vrot.lane.b32.xlu0 %v4852_v42, %s7267_s4 }
0x214d   :  { %v4937_v43 = vpop.permute.xlu1 %4936 }
0x214e   :  { %6473 = vmatmul.mubr.msk.f32.vlgmr.msra.gmra.mrb[40].mxu1 %vm66_vm0, %v4937_v43 }
0x214f   :  { %6919 = vmatpush3.bf16.msra.mxu1 %v7857_v63  ;;  %6494 = vmatprep.mubr.msk.f32.mxu1 %vm7264_vm1, %v7262_v7 }
0x2150   :  { %6920 = vmatprep.subr.bf16.mxu1 %v7263_v25 }
0x2153   :  { %6922 = vmatpush3.bf16.msra.mxu1 %v7871_v6 }
0x2154   :  { %6929 = vmatprep.subr.bf16.mxu1 %v7263_v25 }
0x217a   :  { %v4854_v44 = vpop.permute.xlu0 %4853 }
0x217b   :  { %6462 = vmatmul.mubr.msk.f32.vlgmr.msra.gmra.mrb[40].mxu0 %vm66_vm0, %v4854_v44 }
0x217c   :  { %6913 = vmatpush3.bf16.msra.mxu0 %v7925_v28  ;;  %6483 = vmatprep.mubr.msk.f32.mxu0 %vm7264_vm1, %v7262_v7 }
0x217d   :  { %6914 = vmatprep.subr.bf16.mxu0 %v7263_v25 }
0x2180   :  { %6916 = vmatpush3.bf16.msra.mxu0 %v7936_v47 }
0x2181   :  { %6923 = vmatprep.subr.bf16.mxu0 %v7263_v25 }
0x2221   :  { %v5006_v46 = vpop.f32.mrb[40].mxu1 }
0x2222   :  { %v5013_v48 = vadd.f32 %v5011_v45, %v5006_v46  ;;  %v6474_v49 = vpop.f32.mrb[41].mxu1 }
0x2224   :  { %7174 = vtanh.f32 %v5013_v48  ;;  %v6003_v29 = vmul.f32 -1.442695, %v5013_v48 }
0x222e   :  { %v7175_v50 = vpop.eup %7174 }
0x222f   :  { %5047 = vrot.lane.b32.xlu1 %v7175_v50, %s7265_s2 }
0x224e   :  { %v4923_v52 = vpop.f32.mrb[40].mxu0 }
0x224f   :  { %v4927_v53 = vadd.f32 %v4923_v52, %v8072_v5  ;;  %v6463_v54 = vpop.f32.mrb[41].mxu0 }
0x2251   :  { %7176 = vtanh.f32 %v4927_v53  ;;  %v6002_v59 = vmul.f32 -1.442695, %v4927_v53 }
0x2252   :  { %7178 = vpow2.f32 %v6003_v29 }
0x225b   :  { %v7177_v32 = vpop.eup %7176 }
0x225c   :  { %5023 = vrot.lane.b32.xlu0 %v7177_v32, %s7265_s2  ;;  %v7179_v33 = vpop.eup %7178 }
0x225d   :  { %v5041_v56 = vadd.f32 1.0, %v7179_v33 }
0x225f   :  { %7180 = vrcp.f32 %v5041_v56 }
0x2260   :  { %7182 = vpow2.f32 %v6002_v59 }
0x2269   :  { %v7181_v57 = vpop.eup %7180 }
0x226a   :  { %v7183_v3 = vpop.eup %7182  ;;  %v5045_v0 = vmul.f32 %v7181_v57, %v8080_v35  ;;  %v5228_v35 = vrot.slane %v8038_v40, 2 }
0x226b   :  { %v5017_v61 = vadd.f32 1.0, %v7183_v3 }
0x226d   :  { %7184 = vrcp.f32 %v5017_v61 }
0x2277   :  { %v7185_v5 = vpop.eup %7184 }
0x2278   :  { %v5021_v10 = vmul.f32 %v7185_v5, %v8085_v21 }
0x22a1   :  { %v5048_v9 = vpop.permute.xlu1 %5047 }
0x22a2   :  { %v5050_v58 = vmul.f32 %v7181_v57, %v5048_v9 }
0x22a4   :  { %5052 = vrot.lane.b32.xlu1 %v5050_v58, %s7265_s2 }
0x22ce   :  { %v5024_v4 = vpop.permute.xlu0 %5023 }
0x22cf   :  { %v5026_v62 = vmul.f32 %v7185_v5, %v5024_v4 }
0x22d1   :  { %5028 = vrot.lane.b32.xlu0 %v5026_v62, %s7265_s2 }
0x2316   :  { %v5053_v1 = vpop.permute.xlu1 %5052 }
0x2317   :  { %v8113_v2 = vadd.f32 %v5053_v1, %v5045_v0 }
0x2319   :  { %7186 = vtanh.f32 %v8113_v2 }
0x2323   :  { %v7187_v8 = vpop.eup %7186 }
0x2324   :  { %5058 = vrot.lane.b32.xlu1 %v7187_v8, %s7265_s2 }
0x2343   :  { %v5029_v13 = vpop.permute.xlu0 %5028 }
0x2344   :  { %v8118_v14 = vadd.f32 %v5029_v13, %v5021_v10 }
0x2346   :  { %7188 = vtanh.f32 %v8118_v14 }
0x2350   :  { %v7189_v15 = vpop.eup %7188 }
0x2351   :  { %5034 = vrot.lane.b32.xlu0 %v7189_v15, %s7265_s2 }
0x2396   :  { %v5059_v12 = vpop.permute.xlu1 %5058 }
0x2397   :  { %v5061_v27 = vmul.f32 %v7181_v57, %v5059_v12 }
0x2399   :  { %v5152_v41 = vrot.slane %v5061_v27, %v7487_v60 }
0x239b   :  { %5153 = vrot.lane.b32.xlu1 %v5152_v41, %s7267_s4 }
0x23c3   :  { %v5035_v24 = vpop.permute.xlu0 %5034 }
0x23c4   :  { %v5037_v51 = vmul.f32 %v7185_v5, %v5035_v24 }
0x23c6   :  { %v5069_v36 = vrot.slane %v5037_v51, %v7487_v60 }
0x23c8   :  { %5070 = vrot.lane.b32.xlu0 %v5069_v36, %s7267_s4 }
0x240d   :  { %v5154_v16 = vpop.permute.xlu1 %5153 }
0x240e   :  { %6495 = vmatmul.mubr.msk.f32.vlgmr.msra.gmra.mrb[42].mxu1 %vm66_vm0, %v5154_v16 }
0x240f   :  { %6931 = vmatpush3.bf16.msra.mxu1 %v7857_v63  ;;  %6516 = vmatprep.mubr.msk.f32.mxu1 %vm7264_vm1, %v7262_v7 }
0x2410   :  { %6932 = vmatprep.subr.bf16.mxu1 %v7263_v25 }
0x2413   :  { %6934 = vmatpush3.bf16.msra.mxu1 %v7871_v6 }
0x2414   :  { %6941 = vmatprep.subr.bf16.mxu1 %v7263_v25 }
0x243a   :  { %v5071_v17 = vpop.permute.xlu0 %5070 }
0x243b   :  { %6484 = vmatmul.mubr.msk.f32.vlgmr.msra.gmra.mrb[42].mxu0 %vm66_vm0, %v5071_v17 }
0x243c   :  { %6925 = vmatpush3.bf16.msra.mxu0 %v7925_v28  ;;  %6505 = vmatprep.mubr.msk.f32.mxu0 %vm7264_vm1, %v7262_v7 }
0x243d   :  { %6926 = vmatprep.subr.bf16.mxu0 %v7263_v25 }
0x2440   :  { %6928 = vmatpush3.bf16.msra.mxu0 %v7936_v47 }
0x2441   :  { %6935 = vmatprep.subr.bf16.mxu0 %v7263_v25 }
0x24e1   :  { %v5223_v38 = vpop.f32.mrb[42].mxu1 }
0x24e2   :  { %v5230_v18 = vadd.f32 %v5228_v35, %v5223_v38  ;;  %v6496_v20 = vpop.f32.mrb[43].mxu1 }
0x24e4   :  { %7190 = vtanh.f32 %v5230_v18  ;;  %v6007_v37 = vmul.f32 -1.442695, %v5230_v18 }
0x24ee   :  { %v7191_v21 = vpop.eup %7190 }
0x24ef   :  { %5264 = vrot.lane.b32.xlu1 %v7191_v21, %s7265_s2 }
0x250e   :  { %v5140_v22 = vpop.f32.mrb[42].mxu0 }
0x250f   :  { %v5144_v23 = vadd.f32 %v5140_v22, %v8034_v11  ;;  %v6485_v30 = vpop.f32.mrb[43].mxu0 }
0x2511   :  { %7192 = vtanh.f32 %v5144_v23  ;;  %v6006_v45 = vmul.f32 -1.442695, %v5144_v23 }
0x2512   :  { %7194 = vpow2.f32 %v6007_v37 }
0x251b   :  { %v7193_v34 = vpop.eup %7192 }
0x251c   :  { %5240 = vrot.lane.b32.xlu0 %v7193_v34, %s7265_s2  ;;  %v7195_v39 = vpop.eup %7194 }
0x251d   :  { %v5258_v42 = vadd.f32 1.0, %v7195_v39 }
0x251f   :  { %7196 = vrcp.f32 %v5258_v42 }
0x2520   :  { %7198 = vpow2.f32 %v6006_v45  ;;  %v5662_v45 = vrot.slane %v7964_v55, 2 }
0x2529   :  { %v7197_v40 = vpop.eup %7196 }
0x252a   :  { %v7199_v46 = vpop.eup %7198  ;;  %v5262_v52 = vmul.f32 %v7197_v40, %v8113_v2 }
0x252b   :  { %v5234_v48 = vadd.f32 1.0, %v7199_v46 }
0x252d   :  { %7200 = vrcp.f32 %v5234_v48 }
0x2537   :  { %v7201_v11 = vpop.eup %7200 }
0x2538   :  { %v5238_v29 = vmul.f32 %v7201_v11, %v8118_v14 }
0x2561   :  { %v5265_v43 = vpop.permute.xlu1 %5264 }
0x2562   :  { %v5267_v44 = vmul.f32 %v7197_v40, %v5265_v43 }
0x2564   :  { %5269 = vrot.lane.b32.xlu1 %v5267_v44, %s7265_s2 }
0x258e   :  { %v5241_v49 = vpop.permute.xlu0 %5240 }
0x258f   :  { %v5243_v50 = vmul.f32 %v7201_v11, %v5241_v49 }
0x2591   :  { %5245 = vrot.lane.b32.xlu0 %v5243_v50, %s7265_s2 }
0x25d6   :  { %v5270_v53 = vpop.permute.xlu1 %5269 }
0x25d7   :  { %v8147_v54 = vadd.f32 %v5270_v53, %v5262_v52 }
0x25d9   :  { %7202 = vtanh.f32 %v8147_v54 }
0x25e3   :  { %v7203_v32 = vpop.eup %7202 }
0x25e4   :  { %5275 = vrot.lane.b32.xlu1 %v7203_v32, %s7265_s2 }
0x2603   :  { %v5246_v33 = vpop.permute.xlu0 %5245 }
0x2604   :  { %v8152_v56 = vadd.f32 %v5246_v33, %v5238_v29 }
0x2606   :  { %7204 = vtanh.f32 %v8152_v56 }
0x2610   :  { %v7205_v57 = vpop.eup %7204 }
0x2611   :  { %5251 = vrot.lane.b32.xlu0 %v7205_v57, %s7265_s2 }
0x2656   :  { %v5276_v9 = vpop.permute.xlu1 %5275 }
0x2657   :  { %v5278_v58 = vmul.f32 %v7197_v40, %v5276_v9 }
0x2659   :  { %v5369_v59 = vrot.slane %v5278_v58, %v7487_v60 }
0x265b   :  { %5370 = vrot.lane.b32.xlu1 %v5369_v59, %s7267_s4 }
0x2683   :  { %v5252_v3 = vpop.permute.xlu0 %5251 }
0x2684   :  { %v5254_v61 = vmul.f32 %v7201_v11, %v5252_v3 }
0x2686   :  { %v5286_v5 = vrot.slane %v5254_v61, %v7487_v60 }
0x2688   :  { %5287 = vrot.lane.b32.xlu0 %v5286_v5, %s7267_s4 }
0x26cd   :  { %v5371_v4 = vpop.permute.xlu1 %5370 }
0x26ce   :  { %6517 = vmatmul.mubr.msk.f32.vlgmr.msra.gmra.mrb[44].mxu1 %vm66_vm0, %v5371_v4 }
0x26cf   :  { %6943 = vmatpush3.bf16.msra.mxu1 %v7857_v63  ;;  %6538 = vmatprep.mubr.msk.f32.mxu1 %vm7264_vm1, %v7262_v7  ;;  %v5445_v63 = vrot.slane %v8000_v31, 2 }
0x26d0   :  { %6944 = vmatprep.subr.bf16.mxu1 %v7263_v25 }
0x26d3   :  { %6946 = vmatpush3.bf16.msra.mxu1 %v7871_v6 }
0x26d4   :  { %6953 = vmatprep.subr.bf16.mxu1 %v7263_v25 }
0x26fa   :  { %v5288_v62 = vpop.permute.xlu0 %5287 }
0x26fb   :  { %6506 = vmatmul.mubr.msk.f32.vlgmr.msra.gmra.mrb[44].mxu0 %vm66_vm0, %v5288_v62 }
0x26fc   :  { %6937 = vmatpush3.bf16.msra.mxu0 %v7925_v28  ;;  %6527 = vmatprep.mubr.msk.f32.mxu0 %vm7264_vm1, %v7262_v7 }
0x26fd   :  { %6938 = vmatprep.subr.bf16.mxu0 %v7263_v25 }
0x2700   :  { %6940 = vmatpush3.bf16.msra.mxu0 %v7936_v47 }
0x2701   :  { %6947 = vmatprep.subr.bf16.mxu0 %v7263_v25 }
0x27a1   :  { %v5440_v0 = vpop.f32.mrb[44].mxu1 }
0x27a2   :  { %v5447_v6 = vadd.f32 %v5445_v63, %v5440_v0  ;;  %v6518_v1 = vpop.f32.mrb[45].mxu1 }
0x27a3   :  { %v5717_v1 = vld [vmem:[%s8260_s11] sm:$0xff] }
0x27a4   :  { %7206 = vtanh.f32 %v5447_v6  ;;  %v6011_v47 = vmul.f32 -1.442695, %v5447_v6 }
0x27ae   :  { %v7207_v2 = vpop.eup %7206 }
0x27af   :  { %5481 = vrot.lane.b32.xlu1 %v7207_v2, %s7265_s2  ;;  %v5718_v2 = vld [vmem:[%s8260_s11 + $0x8] sm:$0xff] }
0x27ce   :  { %v5357_v8 = vpop.f32.mrb[44].mxu0 }
0x27cf   :  { %v5361_v28 = vadd.f32 %v5357_v8, %v7996_v19  ;;  %v6507_v10 = vpop.f32.mrb[45].mxu0  ;;  %v5719_v8 = vld [vmem:[%s8260_s11 + $0x10] sm:$0xff] }
0x27d0   :  { %v5720_v10 = vld [vmem:[%s8260_s11 + $0x18] sm:$0xff] }
0x27d1   :  { %7208 = vtanh.f32 %v5361_v28  ;;  %v6010_v41 = vmul.f32 -1.442695, %v5361_v28  ;;  %v6948_v28 = vpack.c.bf16 %v5718_v2, %v5717_v1 }
0x27d2   :  { %7210 = vpow2.f32 %v6011_v47 }
0x27db   :  { %v7209_v13 = vpop.eup %7208 }
0x27dc   :  { %5457 = vrot.lane.b32.xlu0 %v7209_v13, %s7265_s2  ;;  %v7211_v14 = vpop.eup %7210  ;;  %v6951_v13 = vpack.c.bf16 %v5720_v10, %v5719_v8 }
0x27dd   :  { %v5475_v15 = vadd.f32 1.0, %v7211_v14  ;;  %v5713_v14 = vld [vmem:[%s8259_s10] sm:$0xff] }
0x27df   :  { %7212 = vrcp.f32 %v5475_v15  ;;  %v5714_v15 = vld [vmem:[%s8259_s10 + $0x8] sm:$0xff] }
0x27e0   :  { %7214 = vpow2.f32 %v6010_v41 }
0x27e9   :  { %v7213_v31 = vpop.eup %7212 }
0x27ea   :  { %v7215_v24 = vpop.eup %7214  ;;  %v5479_v17 = vmul.f32 %v7213_v31, %v8147_v54 }
0x27eb   :  { %v5451_v51 = vadd.f32 1.0, %v7215_v24 }
0x27ed   :  { %7216 = vrcp.f32 %v5451_v51 }
0x27f7   :  { %v7217_v19 = vpop.eup %7216 }
0x27f8   :  { %v5455_v20 = vmul.f32 %v7217_v19, %v8152_v56 }
0x2821   :  { %v5482_v12 = vpop.permute.xlu1 %5481 }
0x2822   :  { %v5484_v27 = vmul.f32 %v7213_v31, %v5482_v12  ;;  %v6954_v12 = vpack.c.bf16 %v5714_v15, %v5713_v14 }
0x2824   :  { %5486 = vrot.lane.b32.xlu1 %v5484_v27, %s7265_s2  ;;  %v5716_v27 = vld [vmem:[%s8259_s10 + $0x18] sm:$0xff] }
0x284e   :  { %v5458_v36 = vpop.permute.xlu0 %5457 }
0x284f   :  { %v5460_v16 = vmul.f32 %v7217_v19, %v5458_v36 }
0x2851   :  { %5462 = vrot.lane.b32.xlu0 %v5460_v16, %s7265_s2 }
0x2896   :  { %v5487_v35 = vpop.permute.xlu1 %5486 }
0x2897   :  { %v5489_v38 = vadd.f32 %v5487_v35, %v5479_v17 }
0x2899   :  { %7218 = vtanh.f32 %v5489_v38 }
0x28a3   :  { %v7219_v18 = vpop.eup %7218 }
0x28a4   :  { %5492 = vrot.lane.b32.xlu1 %v7219_v18, %s7265_s2 }
0x28c3   :  { %v5463_v21 = vpop.permute.xlu0 %5462 }
0x28c4   :  { %v5465_v22 = vadd.f32 %v5463_v21, %v5455_v20  ;;  %v6018_v21 = vld [vmem:[%s8261_s12] ss:$0 sm:$0xff] }
0x28c6   :  { %7220 = vtanh.f32 %v5465_v22 }
0x28d0   :  { %v7221_v23 = vpop.eup %7220 }
0x28d1   :  { %5468 = vrot.lane.b32.xlu0 %v7221_v23, %s7265_s2 }
0x2916   :  { %v5493_v30 = vpop.permute.xlu1 %5492 }
0x2917   :  { %v5495_v34 = vmul.f32 %v7213_v31, %v5493_v30  ;;  %v5715_v31 = vld [vmem:[%s8259_s10 + $0x10] sm:$0xff] }
0x2918   :  { %v6957_v41 = vpack.c.bf16 %v5716_v27, %v5715_v31 }
0x2919   :  { %v5586_v37 = vrot.slane %v5495_v34, %v7487_v60 }
0x291b   :  { %5587 = vrot.lane.b32.xlu1 %v5586_v37, %s7267_s4 }
0x2943   :  { %v5469_v39 = vpop.permute.xlu0 %5468 }
0x2944   :  { %v5471_v42 = vmul.f32 %v7217_v19, %v5469_v39 }
0x2946   :  { %v5503_v40 = vrot.slane %v5471_v42, %v7487_v60 }
0x2948   :  { %5504 = vrot.lane.b32.xlu0 %v5503_v40, %s7267_s4 }
0x298d   :  { %v5588_v43 = vpop.permute.xlu1 %5587 }
0x298e   :  { %6539 = vmatmul.mubr.msk.f32.vlgmr.msra.gmra.mrb[46].mxu1 %vm66_vm0, %v5588_v43 }
0x298f   :  { %6560 = vmatprep.mubr.msk.f32.mxu1 %vm7264_vm1, %v7262_v7  ;;  %6955 = vmatpush3.bf16.msra.mxu1 %v6954_v12 }
0x2990   :  { %6956 = vmatprep.subr.bf16.mxu1 %v7263_v25 }
0x2993   :  { %6958 = vmatpush3.bf16.msra.mxu1 %v6957_v41 }
0x29ba   :  { %v5505_v44 = vpop.permute.xlu0 %5504 }
0x29bb   :  { %6528 = vmatmul.mubr.msk.f32.vlgmr.msra.gmra.mrb[46].mxu0 %vm66_vm0, %v5505_v44 }
0x29bc   :  { %6549 = vmatprep.mubr.msk.f32.mxu0 %vm7264_vm1, %v7262_v7  ;;  %6949 = vmatpush3.bf16.msra.mxu0 %v6948_v28 }
0x29bd   :  { %6950 = vmatprep.subr.bf16.mxu0 %v7263_v25 }
0x29c0   :  { %6952 = vmatpush3.bf16.msra.mxu0 %v6951_v13 }
0x2a61   :  { %v5657_v46 = vpop.f32.mrb[46].mxu1 }
0x2a62   :  { %v5664_v48 = vadd.f32 %v5662_v45, %v5657_v46  ;;  %v6540_v11 = vpop.f32.mrb[47].mxu1 }
0x2a64   :  { %7222 = vtanh.f32 %v5664_v48  ;;  %v6015_v32 = vmul.f32 -1.442695, %v5664_v48 }
0x2a6e   :  { %v7223_v49 = vpop.eup %7222 }
0x2a6f   :  { %5698 = vrot.lane.b32.xlu1 %v7223_v49, %s7265_s2 }
0x2a8e   :  { %v5574_v50 = vpop.f32.mrb[46].mxu0 }
0x2a8f   :  { %v5578_v52 = vadd.f32 %v5574_v50, %v7954_v26  ;;  %v6529_v53 = vpop.f32.mrb[47].mxu0 }
0x2a91   :  { %7224 = vtanh.f32 %v5578_v52  ;;  %v6014_v57 = vmul.f32 -1.442695, %v5578_v52 }
0x2a92   :  { %7226 = vpow2.f32 %v6015_v32 }
0x2a9b   :  { %v7225_v54 = vpop.eup %7224 }
0x2a9c   :  { %5674 = vrot.lane.b32.xlu0 %v7225_v54, %s7265_s2  ;;  %v7227_v7 = vpop.eup %7226 }
0x2a9d   :  { %v5692_v29 = vadd.f32 1.0, %v7227_v7 }
0x2a9f   :  { %7228 = vrcp.f32 %v5692_v29 }
0x2aa0   :  { %7230 = vpow2.f32 %v6014_v57 }
0x2aa9   :  { %v7229_v55 = vpop.eup %7228 }
0x2aaa   :  { %v7231_v9 = vpop.eup %7230  ;;  %v5696_v61 = vmul.f32 %v7229_v55, %v5489_v38 }
0x2aab   :  { %v5668_v58 = vadd.f32 1.0, %v7231_v9 }
0x2aad   :  { %7232 = vrcp.f32 %v5668_v58 }
0x2ab7   :  { %v7233_v26 = vpop.eup %7232 }
0x2ab8   :  { %v5672_v63 = vmul.f32 %v7233_v26, %v5465_v22 }
0x2ae1   :  { %v5699_v33 = vpop.permute.xlu1 %5698 }
0x2ae2   :  { %v5701_v56 = vmul.f32 %v7229_v55, %v5699_v33 }
0x2ae4   :  { %5703 = vrot.lane.b32.xlu1 %v5701_v56, %s7265_s2 }
0x2b0e   :  { %v5675_v59 = vpop.permute.xlu0 %5674 }
0x2b0f   :  { %v5677_v3 = vmul.f32 %v7233_v26, %v5675_v59 }
0x2b11   :  { %5679 = vrot.lane.b32.xlu0 %v5677_v3, %s7265_s2 }
0x2b56   :  { %v5704_v5 = vpop.permute.xlu1 %5703 }
0x2b57   :  { %v5706_v4 = vadd.f32 %v5704_v5, %v5696_v61 }
0x2b59   :  { %7234 = vtanh.f32 %v5706_v4 }
0x2b63   :  { %v7235_v62 = vpop.eup %7234 }
0x2b64   :  { %5709 = vrot.lane.b32.xlu1 %v7235_v62, %s7265_s2 }
0x2b83   :  { %v5680_v0 = vpop.permute.xlu0 %5679 }
0x2b84   :  { %v5682_v6 = vadd.f32 %v5680_v0, %v5672_v63 }
0x2b86   :  { %7236 = vtanh.f32 %v5682_v6 }
0x2b90   :  { %v7237_v47 = vpop.eup %7236 }
0x2b91   :  { %5685 = vrot.lane.b32.xlu0 %v7237_v47, %s7265_s2 }
0x2bd6   :  { %v5710_v24 = vpop.permute.xlu1 %5709 }
0x2bd7   :  { %v5712_v51 = vmul.f32 %v7229_v55, %v5710_v24 }
0x2bd9   :  { %v5728_v19 = vrot.slane %v5712_v51, %v7487_v60 }
0x2bdb   :  { %5729 = vrot.lane.b32.xlu0 %v5728_v19, %s7267_s4 }
0x2c03   :  { %v5686_v36 = vpop.permute.xlu0 %5685 }
0x2c04   :  { %v5688_v16 = vmul.f32 %v7233_v26, %v5686_v36 }
0x2c06   :  { %v5810_v17 = vrot.slane %v5688_v16, %v7487_v60 }
0x2c08   :  { %5811 = vrot.lane.b32.xlu1 %v5810_v17, %s7267_s4  ;;  %s7238_s4 = scalar_lea.vmem %s5902_s0, 32 }
0x2c09   :  { %p7239_p0 = scmp.ne.s32.totalorder %s5902_s0, %s7238_s4  ;;  %p7244_p2 = scmp.lt.s32.totalorder %s7238_s4, %s7238_s4 }
0x2c0b   :  { %p7245_p3 = por %p7244_p2, %p7243_p1 }
0x2c0d   :  { %p7246_p4 = pnand %p7245_p3, %p7239_p0 }
0x2c4d   :  { %v5730_v35 = vpop.permute.xlu0 %5729 }
0x2c4e   :  { %6550 = vmatmul.mubr.msk.f32.vlgmr.msra.gmra.mrb[48].mxu0 %vm66_vm0, %v5730_v35 }
0x2c7a   :  { %v5812_v38 = vpop.permute.xlu1 %5811 }
0x2c7b   :  { %6561 = vmatmul.mubr.msk.f32.vlgmr.msra.gmra.mrb[48].mxu1 %vm66_vm0, %v5812_v38 }
0x2d21   :  { %v5799_v25 = vpop.f32.mrb[48].mxu0 }
0x2d22   :  { %v6551_v18 = vpop.f32.mrb[49].mxu0 }
0x2d4e   :  { %v5881_v20 = vpop.f32.mrb[48].mxu1 }
0x2d4f   :  { %v5882_v22 = vadd.f32 %v5881_v20, %v5799_v25  ;;  %v6562_v23 = vpop.f32.mrb[49].mxu1 }
0x2d51   :  { %v5892_v60 = vadd.f32 %v6018_v21, %v5882_v22 }
0x2d53   :  { %5894 = vst.msk [vmem:[#allocation6] sm:$0x3] %vm5893_vm3, %v5892_v60 }
0x2d54   :  { %7249 = shalt.err (!%p7246_p4)
}
0x2d55   :  { %s7250_s6 = scalar_lea.hbm %s8262_s13, 32 }
0x2d56   :  { %p7251_p5 = scmp.ne.s32.totalorder %s8262_s13, %s7250_s6  ;;  %p7254_p6 = scmp.lt.u32.totalorder %s7250_s6, %s8262_s13 }
0x2d58   :  { %p7256_p7 = pnand %p7254_p6, %p7251_p5 }
0x2d5a   :  { %7259 = shalt.err (!%p7256_p7)
}
0x2d5b   :  { %5904 = dma.vmem_to_hbm [thread:$0]  %s5902_s0, 32, %s8262_s13, [#allocation7]  }
0x2d5c   :  { %7260 = dma.done.wait [#allocation7], 32  }
0x2d5d   :  { %7261 = vsyncadd [#allocation7], 4294967264 }
0x2d5e   :  { %5908 = vsyncpa [#allocation7], 1 }

</bundles_post_ra>
